<compile_context>
chip_gen: v7x
topology: tpu7x:2x2x1
jax: 0.10.0
libtpu: 0.0.40
codegen_flags: <defaults>
</compile_context>

<pallas_src>
import functools

import jax
import jax.numpy as jnp
from jax import lax
from jax.experimental import pallas as pl
from jax.experimental.pallas import tpu as pltpu

BN_EPS = 1e-5       # torch.nn.BatchNorm2d default eps
NORM_EPS = 1e-12    # torch.nn.functional.normalize default eps


# ---------------------------------------------------------------------------
# small math helpers
# ---------------------------------------------------------------------------
def _elu(x):
    # ELU(alpha=1); exp(min(x,0)) avoids overflow on the unused branch.
    return jnp.where(x > 0, x, jnp.exp(jnp.minimum(x, 0.0)) - 1.0)


def _softmax_last(x):
    m = jnp.max(x, axis=-1, keepdims=True)
    e = jnp.exp(x - m)
    # EUP approximate reciprocal for the denominator (off the VALU slot).
    return e * pl.reciprocal(jnp.sum(e, axis=-1, keepdims=True), approx=True)


def _l2norm_cols(m):
    # F.normalize over the spatial axis (= axis 0 here): x / max(||x||_2, eps)
    # expressed with an EUP rsqrt: rsqrt(max(ss, eps^2)) == 1 / max(sqrt(ss), eps).
    ss = jnp.sum(m * m, axis=0, keepdims=True)
    return m * lax.rsqrt(jnp.maximum(ss, NORM_EPS * NORM_EPS))


def _mm(a, b, dims):
    # MXU matmul: bf16 operands, f32 accumulation, default (single-pass) precision.
    return lax.dot_general(
        a.astype(jnp.bfloat16), b.astype(jnp.bfloat16),
        dimension_numbers=(dims, ((), ())),
        preferred_element_type=jnp.float32)


# ---------------------------------------------------------------------------
# Pallas kernel
# ---------------------------------------------------------------------------
def attention_block_kernel(
    x_ref,                      # (B*N, C)   input, spatial-major / channel-last
    xp_ref,                     # (B*Na, C)  per-anchor-group mean of x
    w1_ref, b1_ref,             # (C16, C), (C16, 1)   ch_att conv #1 (transposed)
    w2_ref, b2_ref,             # (C16, C), (1, C)     ch_att conv #2
    wp_ref, bp_ref,             # (C, P), (1, P)       fused [key|query|anchor|value]
    wd_ref,                     # (C, K)               DWC depthwise taps
    gd_ref, bd_ref,             # (C, 1)               DWC BatchNorm affine
    gf_ref, bf_ref,             # (C, 1)               final BatchNorm affine
    out_ref,                    # (C, B*N)             lane-dense output
    *, B, W, cq, pad):
    M, C = x_ref.shape
    N = M // B
    Na = xp_ref.shape[0] // B
    K = wd_ref.shape[1]

    x = x_ref[...]                                   # (M, C)

    # ---- SE channel attention (per batch; VPU broadcast-multiply + reduce) --
    attv_full_parts, attv_pool_parts = [], []
    for b in range(B):                               # B is static & tiny
        fea_b = jnp.mean(x[b * N:(b + 1) * N], axis=0, keepdims=True)   # (1, C)
        hid = _elu(jnp.sum(fea_b * w1_ref[...], axis=-1, keepdims=True)
                   + b1_ref[...])                                       # (C16, 1)
        attv_b = jax.nn.sigmoid(
            jnp.sum(hid * w2_ref[...], axis=0, keepdims=True) + b2_ref[...])  # (1, C)
        attv_full_parts.append(jnp.broadcast_to(attv_b, (N, C)))
        attv_pool_parts.append(jnp.broadcast_to(attv_b, (Na, C)))

    attv_full = jnp.concatenate(attv_full_parts, axis=0)                # (M, C)
    attv_pool = jnp.concatenate(attv_pool_parts, axis=0)                # (B*Na, C)

    att_x = attv_full * x                                               # att * x
    att_res = att_x + x                                                 # att_x + x
    # AvgPool commutes with the channel-wise linear maps, so the pooled
    # residual rows are just (1 + att) * pooled(x).
    att_res_p = (attv_pool + 1.0) * xp_ref[...]                         # (B*Na, C)

    # ---- fused 1x1 projections: ONE MXU matmul for key/query/anchor/value ---
    proj_in = jnp.concatenate([att_res, att_res_p], axis=0)             # (M+BNa, C)
    proj = _mm(proj_in, wp_ref[...], ((1,), (0,))) + bp_ref[...]        # (M+BNa, P)

    key = proj[:M, 0:cq]                                                # (M, Cq)
    qry = proj[:M, cq:2 * cq]                                           # (M, Cq)
    val = proj[:M, 3 * cq:]                                             # (M, C)
    anc = proj[M:, 2 * cq:3 * cq]                                       # (B*Na, Cq)

    # ---- anchored cross attention (per batch) -------------------------------
    att_parts = []
    for b in range(B):
        key_n = _l2norm_cols(key[b * N:(b + 1) * N])                    # (N, Cq)
        qry_n = _l2norm_cols(qry[b * N:(b + 1) * N])
        anc_n = _l2norm_cols(anc[b * Na:(b + 1) * Na])                  # (Na, Cq)
        val_b = val[b * N:(b + 1) * N]                                  # (N, C)

        key_s = _softmax_last(_mm(key_n, anc_n, ((1,), (1,))))          # (N, Na)
        qry_s = _softmax_last(_mm(anc_n, qry_n, ((1,), (1,))))          # (Na, N)
        z = _mm(key_s, val_b, ((0,), (0,)))                             # (Na, C)
        att_parts.append(_mm(qry_s, z, ((0,), (0,))))                   # (N, C)
    att_out = jnp.concatenate(att_parts, axis=0)                        # (M, C)

    # switch to channel-major (lane-dense) layout for DWC + BN + store
    att_sum_t = (att_out + att_x).T                                     # (C, M)
    val_t = val.T                                                       # (C, M)

    # ---- DWC depthwise width conv: lane rolls + boundary mask (no MXU) ------
    w_pos = lax.broadcasted_iota(jnp.int32, (C, M), 1) % W
    wd = wd_ref[...]
    dwc_t = jnp.zeros((C, M), jnp.float32)
    for k in range(K):
        d = k - 2 * pad
        if d == 0:
            contrib = val_t
        else:
            rolled = pltpu.roll(val_t, shift=(-d) % M, axis=1)
            valid = jnp.logical_and(w_pos + d >= 0, w_pos + d < W)
            contrib = jnp.where(valid, rolled, 0.0)
        dwc_t = dwc_t + contrib * wd[:, k:k + 1]

    inv_m = 1.0 / M

    # ---- BatchNorm2d of DWC branch (train mode: biased batch stats) ---------
    mean_d = jnp.sum(dwc_t, axis=1, keepdims=True) * inv_m              # (C, 1)
    var_d = jnp.sum((dwc_t - mean_d) ** 2, axis=1, keepdims=True) * inv_m
    dwc_out = _elu(gd_ref[...] * (dwc_t - mean_d) * lax.rsqrt(var_d + BN_EPS)
                   + bd_ref[...])

    # ---- final BatchNorm2d (train mode) --------------------------------------
    pre = att_sum_t + dwc_out                                           # (C, M)
    mean_f = jnp.sum(pre, axis=1, keepdims=True) * inv_m
    var_f = jnp.sum((pre - mean_f) ** 2, axis=1, keepdims=True) * inv_m
    out_ref[...] = (gf_ref[...] * (pre - mean_f) * lax.rsqrt(var_f + BN_EPS)
                    + bf_ref[...])


# ---------------------------------------------------------------------------
# wrapper: NCHW <-> kernel layouts, fused weights, pallas_call
# ---------------------------------------------------------------------------
def attention_basic_block(x_nchw, params, *, pad, squeeze_hw):
    B, C, H, W = x_nchw.shape
    N = H * W
    Na = N // squeeze_hw
    Cq = params["wq"].shape[1]

    x_f = x_nchw.astype(jnp.float32)
    x_nc = jnp.transpose(x_f.reshape(B, C, N), (0, 2, 1))               # (B, N, C)
    x_flat = x_nc.reshape(B * N, C)
    # Per-anchor-group mean of the raw input (pooling commutes with the 1x1
    # convs, so the kernel's anchor branch consumes this directly instead of a
    # dense (Na, N) pooling matrix).  ~0.2% of total FLOPs; layout plumbing.
    x_pool = jnp.mean(x_nc.reshape(B * Na, squeeze_hw, C), axis=1)      # (B*Na, C)

    # fused [key | query | anchor | value] projection weight / bias
    wp = jnp.concatenate(
        [params["wk"], params["wq"], params["wa"], params["wv"]], axis=1)
    bp = jnp.concatenate(
        [params["bk"], params["bq"], params["ba"], params["bv"]], axis=1)

    args = (x_flat, x_pool,
            params["w1"].T, params["b1"].T, params["w2"], params["b2"],
            wp, bp,
            params["wd"].T,
            params["gd"].T, params["bd"].T, params["gf"].T, params["bf"].T)

    kernel = functools.partial(attention_block_kernel,
                               B=B, W=W, cq=Cq, pad=pad)

    # Everything is VMEM-resident (tens of KiB at these shapes); for larger
    # H*W the spatial axis would be tiled with BlockSpecs instead.
    out_t = pl.pallas_call(
        kernel,
        out_shape=jax.ShapeDtypeStruct((C, B * N), jnp.float32),
        in_specs=[pl.BlockSpec(memory_space=pltpu.MemorySpace.VMEM)] * len(args),
        out_specs=pl.BlockSpec(memory_space=pltpu.MemorySpace.VMEM),
    )(*args)

    # (C, B*N) lane-dense kernel output -> NCHW
    return jnp.transpose(out_t.reshape(C, B, N), (1, 0, 2)).reshape(B, C, H, W)


# ---------------------------------------------------------------------------
# deterministic parameter init (synthetic; shapes per AttentionBasicBlock)
# ---------------------------------------------------------------------------
def init_params(key, planes, pad):
    C, C16, Cq, K = planes, planes // 16, planes // 12, 4 * pad
    ks = jax.random.split(key, 17)

    def w(k, shape, scale=0.1):
        return (scale * jax.random.normal(k, shape)).astype(jnp.float32)

    return dict(
        w1=w(ks[0], (C, C16)), b1=w(ks[1], (1, C16)),
        w2=w(ks[2], (C16, C)), b2=w(ks[3], (1, C)),
        wq=w(ks[4], (C, Cq)), bq=w(ks[5], (1, Cq)),
        wk=w(ks[6], (C, Cq)), bk=w(ks[7], (1, Cq)),
        wv=w(ks[8], (C, C)), bv=w(ks[9], (1, C)),
        wa=w(ks[10], (C, Cq)), ba=w(ks[11], (1, Cq)),
        wd=w(ks[12], (K, C)),
        gd=1.0 + w(ks[13], (1, C)), bd=w(ks[14], (1, C)),
        gf=1.0 + w(ks[15], (1, C)), bf=w(ks[16], (1, C)),
    )


# ---------------------------------------------------------------------------
# pure-JAX NCHW reference (mirrors the PyTorch forward, train-mode BN, f32)
# ---------------------------------------------------------------------------
def reference_forward(x, p, *, pad, squeeze_hw):
    B, C, H, W = x.shape
    N = H * W
    PREC = lax.Precision.HIGHEST

    def conv1x1(inp, wgt, bias):
        return (jnp.einsum("bihw,io->bohw", inp, wgt, precision=PREC)
                + bias.reshape(1, -1, 1, 1))

    def l2n(v):
        nrm = jnp.sqrt(jnp.sum(v * v, axis=-1, keepdims=True))
        return v / jnp.maximum(nrm, NORM_EPS)

    def bn(v, gamma, beta):
        mean = jnp.mean(v, axis=(0, 2, 3), keepdims=True)
        var = jnp.mean((v - mean) ** 2, axis=(0, 2, 3), keepdims=True)
        return (gamma.reshape(1, -1, 1, 1) * (v - mean) / jnp.sqrt(var + BN_EPS)
                + beta.reshape(1, -1, 1, 1))

    fea = jnp.mean(x, axis=(2, 3), keepdims=True)
    hid = _elu(conv1x1(fea, p["w1"], p["b1"]))
    attv = jax.nn.sigmoid(conv1x1(hid, p["w2"], p["b2"]))
    att_x = attv * x
    att_res = att_x + x

    anc = conv1x1(att_res, p["wa"], p["ba"])
    anc = anc.reshape(B, -1, H, W // squeeze_hw, squeeze_hw).mean(-1)
    anc = anc.reshape(B, -1, N // squeeze_hw)

    key = conv1x1(att_res, p["wk"], p["bk"]).reshape(B, -1, N)
    key_s = jax.nn.softmax(
        jnp.einsum("bcn,bcm->bnm", l2n(key), l2n(anc), precision=PREC), axis=-1)

    val = conv1x1(att_res, p["wv"], p["bv"])
    z = jnp.einsum("bcn,bnm->bcm", val.reshape(B, C, N), key_s, precision=PREC)

    qry = conv1x1(att_res, p["wq"], p["bq"]).reshape(B, -1, N)
    qry_s = jax.nn.softmax(
        jnp.einsum("bcm,bcn->bmn", l2n(anc), l2n(qry), precision=PREC), axis=-1)
    out = jnp.einsum("bcm,bmn->bcn", z, qry_s, precision=PREC).reshape(B, C, H, W)

    padded = jnp.pad(val, ((0, 0), (0, 0), (0, 0), (2 * pad, 2 * pad - 1)))
    dwc = jnp.zeros_like(val)
    for k in range(4 * pad):
        dwc = dwc + padded[..., k:k + W] * p["wd"][k].reshape(1, C, 1, 1)
    dwc = _elu(bn(dwc, p["gd"], p["bd"]))

    return bn(out + dwc + att_x, p["gf"], p["bf"])


if __name__ == "__main__":
    planes, pad, length = 48, 1, 64           # length < 128 -> squeeze_hw = 2
    squeeze_hw = 4 if length >= 128 else 2
    B, H, W = 2, 4, 16                        # x: (B, planes, H, W), NCHW

    key = jax.random.PRNGKey(0)
    kx, kp = jax.random.split(key)
    x = jax.random.normal(kx, (B, planes, H, W), dtype=jnp.float32)
    params = init_params(kp, planes, pad)

    out = attention_basic_block(x, params, pad=pad, squeeze_hw=squeeze_hw)
    out = jax.block_until_ready(out)

    ref = reference_forward(x, params, pad=pad, squeeze_hw=squeeze_hw)
    err = float(jnp.max(jnp.abs(out - ref)))
    assert out.shape == (B, planes, H, W)
    assert jnp.all(jnp.isfinite(out)), "non-finite output"
    # Kernel uses bf16 MXU operands (f32 accumulation) + approx EUP reciprocal
    # per the perf review; tolerance vs the f32 (HIGHEST) reference is sized
    # for that operand precision (output is BatchNorm-normalized, ~unit scale).
    assert err < 8e-2, f"mismatch vs JAX reference: max abs err = {err}"

    print("KERNEL_OK")
</pallas_src>

<mosaic_0001>
module attributes {stable_mosaic.version = 11 : i64} {
  func.func @attention_block_kernel(%arg0: memref<128x48xf32, #tpu.memory_space<vmem>>, %arg1: memref<64x48xf32, #tpu.memory_space<vmem>>, %arg2: memref<3x48xf32, #tpu.memory_space<vmem>>, %arg3: memref<3x1xf32, #tpu.memory_space<vmem>>, %arg4: memref<3x48xf32, #tpu.memory_space<vmem>>, %arg5: memref<1x48xf32, #tpu.memory_space<vmem>>, %arg6: memref<48x60xf32, #tpu.memory_space<vmem>>, %arg7: memref<1x60xf32, #tpu.memory_space<vmem>>, %arg8: memref<48x4xf32, #tpu.memory_space<vmem>>, %arg9: memref<48x1xf32, #tpu.memory_space<vmem>>, %arg10: memref<48x1xf32, #tpu.memory_space<vmem>>, %arg11: memref<48x1xf32, #tpu.memory_space<vmem>>, %arg12: memref<48x1xf32, #tpu.memory_space<vmem>>, %arg13: memref<48x128xf32, #tpu.memory_space<vmem>>) attributes {dimension_semantics = [], scalar_prefetch = 0 : i64, scratch_operands = 0 : i64, tpu.core_type = #tpu.core_type<tc>} {
    %c0 = arith.constant 0 : index
    %c0_0 = arith.constant 0 : index
    %0 = vector.load %arg0[%c0, %c0_0] : memref<128x48xf32, #tpu.memory_space<vmem>>, vector<128x48xf32>
    %1 = vector.extract_strided_slice %0 {offsets = [0, 0], sizes = [64, 48], strides = [1, 1]} : vector<128x48xf32> to vector<64x48xf32>
    %cst = arith.constant dense<0.000000e+00> : vector<48xf32>
    %2 = vector.multi_reduction <add>, %1, %cst [0] : vector<64x48xf32> to vector<48xf32>
    %3 = vector.shape_cast %2 : vector<48xf32> to vector<1x48xf32>
    %cst_1 = arith.constant 6.400000e+01 : f32
    %4 = vector.broadcast %cst_1 : f32 to vector<1x48xf32>
    %5 = arith.divf %3, %4 : vector<1x48xf32>
    %c0_2 = arith.constant 0 : index
    %c0_3 = arith.constant 0 : index
    %6 = vector.load %arg2[%c0_2, %c0_3] : memref<3x48xf32, #tpu.memory_space<vmem>>, vector<3x48xf32>
    %7 = vector.broadcast %5 : vector<1x48xf32> to vector<3x48xf32>
    %8 = arith.mulf %7, %6 : vector<3x48xf32>
    %cst_4 = arith.constant dense<0.000000e+00> : vector<3xf32>
    %9 = vector.multi_reduction <add>, %8, %cst_4 [1] : vector<3x48xf32> to vector<3xf32>
    %10 = vector.shape_cast %9 : vector<3xf32> to vector<3x1xf32>
    %c0_5 = arith.constant 0 : index
    %c0_6 = arith.constant 0 : index
    %11 = vector.load %arg3[%c0_5, %c0_6] : memref<3x1xf32, #tpu.memory_space<vmem>>, vector<3x1xf32>
    %12 = arith.addf %10, %11 : vector<3x1xf32>
    %cst_7 = arith.constant 0.000000e+00 : f32
    %13 = vector.broadcast %cst_7 : f32 to vector<3x1xf32>
    %14 = arith.cmpf ogt, %12, %13 : vector<3x1xf32>
    %cst_8 = arith.constant 0.000000e+00 : f32
    %15 = vector.broadcast %cst_8 : f32 to vector<3x1xf32>
    %16 = arith.minimumf %12, %15 : vector<3x1xf32>
    %17 = math.exp %16 : vector<3x1xf32>
    %cst_9 = arith.constant 1.000000e+00 : f32
    %18 = vector.broadcast %cst_9 : f32 to vector<3x1xf32>
    %19 = arith.subf %17, %18 : vector<3x1xf32>
    %20 = arith.select %14, %12, %19 : vector<3x1xi1>, vector<3x1xf32>
    %c0_10 = arith.constant 0 : index
    %c0_11 = arith.constant 0 : index
    %21 = vector.load %arg4[%c0_10, %c0_11] : memref<3x48xf32, #tpu.memory_space<vmem>>, vector<3x48xf32>
    %22 = vector.broadcast %20 : vector<3x1xf32> to vector<3x48xf32>
    %23 = arith.mulf %22, %21 : vector<3x48xf32>
    %cst_12 = arith.constant dense<0.000000e+00> : vector<48xf32>
    %24 = vector.multi_reduction <add>, %23, %cst_12 [0] : vector<3x48xf32> to vector<48xf32>
    %25 = vector.shape_cast %24 : vector<48xf32> to vector<1x48xf32>
    %c0_13 = arith.constant 0 : index
    %c0_14 = arith.constant 0 : index
    %26 = vector.load %arg5[%c0_13, %c0_14] : memref<1x48xf32, #tpu.memory_space<vmem>>, vector<1x48xf32>
    %27 = arith.addf %25, %26 : vector<1x48xf32>
    %28 = arith.negf %27 : vector<1x48xf32>
    %29 = math.exp %28 : vector<1x48xf32>
    %cst_15 = arith.constant 1.000000e+00 : f32
    %30 = vector.broadcast %cst_15 : f32 to vector<1x48xf32>
    %31 = arith.addf %30, %29 : vector<1x48xf32>
    %32 = arith.divf %30, %31 : vector<1x48xf32>
    %33 = vector.shape_cast %32 : vector<1x48xf32> to vector<1x48xf32>
    %34 = vector.broadcast %33 : vector<1x48xf32> to vector<64x48xf32>
    %35 = vector.shape_cast %32 : vector<1x48xf32> to vector<1x48xf32>
    %36 = vector.broadcast %35 : vector<1x48xf32> to vector<32x48xf32>
    %37 = vector.extract_strided_slice %0 {offsets = [64, 0], sizes = [64, 48], strides = [1, 1]} : vector<128x48xf32> to vector<64x48xf32>
    %cst_16 = arith.constant dense<0.000000e+00> : vector<48xf32>
    %38 = vector.multi_reduction <add>, %37, %cst_16 [0] : vector<64x48xf32> to vector<48xf32>
    %39 = vector.shape_cast %38 : vector<48xf32> to vector<1x48xf32>
    %cst_17 = arith.constant 6.400000e+01 : f32
    %40 = vector.broadcast %cst_17 : f32 to vector<1x48xf32>
    %41 = arith.divf %39, %40 : vector<1x48xf32>
    %c0_18 = arith.constant 0 : index
    %c0_19 = arith.constant 0 : index
    %42 = vector.load %arg2[%c0_18, %c0_19] : memref<3x48xf32, #tpu.memory_space<vmem>>, vector<3x48xf32>
    %43 = vector.broadcast %41 : vector<1x48xf32> to vector<3x48xf32>
    %44 = arith.mulf %43, %42 : vector<3x48xf32>
    %cst_20 = arith.constant dense<0.000000e+00> : vector<3xf32>
    %45 = vector.multi_reduction <add>, %44, %cst_20 [1] : vector<3x48xf32> to vector<3xf32>
    %46 = vector.shape_cast %45 : vector<3xf32> to vector<3x1xf32>
    %c0_21 = arith.constant 0 : index
    %c0_22 = arith.constant 0 : index
    %47 = vector.load %arg3[%c0_21, %c0_22] : memref<3x1xf32, #tpu.memory_space<vmem>>, vector<3x1xf32>
    %48 = arith.addf %46, %47 : vector<3x1xf32>
    %cst_23 = arith.constant 0.000000e+00 : f32
    %49 = vector.broadcast %cst_23 : f32 to vector<3x1xf32>
    %50 = arith.cmpf ogt, %48, %49 : vector<3x1xf32>
    %cst_24 = arith.constant 0.000000e+00 : f32
    %51 = vector.broadcast %cst_24 : f32 to vector<3x1xf32>
    %52 = arith.minimumf %48, %51 : vector<3x1xf32>
    %53 = math.exp %52 : vector<3x1xf32>
    %cst_25 = arith.constant 1.000000e+00 : f32
    %54 = vector.broadcast %cst_25 : f32 to vector<3x1xf32>
    %55 = arith.subf %53, %54 : vector<3x1xf32>
    %56 = arith.select %50, %48, %55 : vector<3x1xi1>, vector<3x1xf32>
    %c0_26 = arith.constant 0 : index
    %c0_27 = arith.constant 0 : index
    %57 = vector.load %arg4[%c0_26, %c0_27] : memref<3x48xf32, #tpu.memory_space<vmem>>, vector<3x48xf32>
    %58 = vector.broadcast %56 : vector<3x1xf32> to vector<3x48xf32>
    %59 = arith.mulf %58, %57 : vector<3x48xf32>
    %cst_28 = arith.constant dense<0.000000e+00> : vector<48xf32>
    %60 = vector.multi_reduction <add>, %59, %cst_28 [0] : vector<3x48xf32> to vector<48xf32>
    %61 = vector.shape_cast %60 : vector<48xf32> to vector<1x48xf32>
    %c0_29 = arith.constant 0 : index
    %c0_30 = arith.constant 0 : index
    %62 = vector.load %arg5[%c0_29, %c0_30] : memref<1x48xf32, #tpu.memory_space<vmem>>, vector<1x48xf32>
    %63 = arith.addf %61, %62 : vector<1x48xf32>
    %64 = arith.negf %63 : vector<1x48xf32>
    %65 = math.exp %64 : vector<1x48xf32>
    %cst_31 = arith.constant 1.000000e+00 : f32
    %66 = vector.broadcast %cst_31 : f32 to vector<1x48xf32>
    %67 = arith.addf %66, %65 : vector<1x48xf32>
    %68 = arith.divf %66, %67 : vector<1x48xf32>
    %69 = vector.shape_cast %68 : vector<1x48xf32> to vector<1x48xf32>
    %70 = vector.broadcast %69 : vector<1x48xf32> to vector<64x48xf32>
    %71 = vector.shape_cast %68 : vector<1x48xf32> to vector<1x48xf32>
    %72 = vector.broadcast %71 : vector<1x48xf32> to vector<32x48xf32>
    %73 = tpu.concatenate %34, %70 in 0 : vector<64x48xf32>, vector<64x48xf32> -> vector<128x48xf32>
    %74 = tpu.concatenate %36, %72 in 0 : vector<32x48xf32>, vector<32x48xf32> -> vector<64x48xf32>
    %75 = arith.mulf %73, %0 : vector<128x48xf32>
    %76 = arith.addf %75, %0 : vector<128x48xf32>
    %cst_32 = arith.constant 1.000000e+00 : f32
    %77 = vector.broadcast %cst_32 : f32 to vector<64x48xf32>
    %78 = arith.addf %74, %77 : vector<64x48xf32>
    %c0_33 = arith.constant 0 : index
    %c0_34 = arith.constant 0 : index
    %79 = vector.load %arg1[%c0_33, %c0_34] : memref<64x48xf32, #tpu.memory_space<vmem>>, vector<64x48xf32>
    %80 = arith.mulf %78, %79 : vector<64x48xf32>
    %81 = tpu.concatenate %76, %80 in 0 : vector<128x48xf32>, vector<64x48xf32> -> vector<192x48xf32>
    %c0_35 = arith.constant 0 : index
    %c0_36 = arith.constant 0 : index
    %82 = vector.load %arg6[%c0_35, %c0_36] : memref<48x60xf32, #tpu.memory_space<vmem>>, vector<48x60xf32>
    %83 = arith.truncf %81 : vector<192x48xf32> to vector<192x48xbf16>
    %84 = arith.truncf %82 : vector<48x60xf32> to vector<48x60xbf16>
    %cst_37 = arith.constant dense<0.000000e+00> : vector<192x60xf32>
    %85 = tpu.matmul %83, %84, %cst_37 {dimension_numbers = #tpu.dot_dimension_numbers<[1], [0], [0], [1], [0, 0, 1, 1], [], []>} : vector<192x48xbf16>, vector<48x60xbf16>, vector<192x60xf32> -> vector<192x60xf32>
    %c0_38 = arith.constant 0 : index
    %c0_39 = arith.constant 0 : index
    %86 = vector.load %arg7[%c0_38, %c0_39] : memref<1x60xf32, #tpu.memory_space<vmem>>, vector<1x60xf32>
    %87 = vector.broadcast %86 : vector<1x60xf32> to vector<192x60xf32>
    %88 = arith.addf %85, %87 : vector<192x60xf32>
    %89 = vector.extract_strided_slice %88 {offsets = [0, 0], sizes = [128, 4], strides = [1, 1]} : vector<192x60xf32> to vector<128x4xf32>
    %90 = vector.extract_strided_slice %88 {offsets = [0, 4], sizes = [128, 4], strides = [1, 1]} : vector<192x60xf32> to vector<128x4xf32>
    %91 = vector.extract_strided_slice %88 {offsets = [0, 12], sizes = [128, 48], strides = [1, 1]} : vector<192x60xf32> to vector<128x48xf32>
    %92 = vector.extract_strided_slice %88 {offsets = [128, 8], sizes = [64, 4], strides = [1, 1]} : vector<192x60xf32> to vector<64x4xf32>
    %93 = vector.extract_strided_slice %89 {offsets = [0, 0], sizes = [64, 4], strides = [1, 1]} : vector<128x4xf32> to vector<64x4xf32>
    %94 = arith.mulf %93, %93 : vector<64x4xf32>
    %cst_40 = arith.constant dense<0.000000e+00> : vector<4xf32>
    %95 = vector.multi_reduction <add>, %94, %cst_40 [0] : vector<64x4xf32> to vector<4xf32>
    %96 = vector.shape_cast %95 : vector<4xf32> to vector<1x4xf32>
    %cst_41 = arith.constant 1.000000e-24 : f32
    %97 = vector.broadcast %cst_41 : f32 to vector<1x4xf32>
    %98 = arith.maximumf %96, %97 : vector<1x4xf32>
    %99 = math.rsqrt %98 : vector<1x4xf32>
    %100 = vector.broadcast %99 : vector<1x4xf32> to vector<64x4xf32>
    %101 = arith.mulf %93, %100 : vector<64x4xf32>
    %102 = vector.extract_strided_slice %90 {offsets = [0, 0], sizes = [64, 4], strides = [1, 1]} : vector<128x4xf32> to vector<64x4xf32>
    %103 = arith.mulf %102, %102 : vector<64x4xf32>
    %cst_42 = arith.constant dense<0.000000e+00> : vector<4xf32>
    %104 = vector.multi_reduction <add>, %103, %cst_42 [0] : vector<64x4xf32> to vector<4xf32>
    %105 = vector.shape_cast %104 : vector<4xf32> to vector<1x4xf32>
    %cst_43 = arith.constant 1.000000e-24 : f32
    %106 = vector.broadcast %cst_43 : f32 to vector<1x4xf32>
    %107 = arith.maximumf %105, %106 : vector<1x4xf32>
    %108 = math.rsqrt %107 : vector<1x4xf32>
    %109 = vector.broadcast %108 : vector<1x4xf32> to vector<64x4xf32>
    %110 = arith.mulf %102, %109 : vector<64x4xf32>
    %111 = vector.extract_strided_slice %92 {offsets = [0, 0], sizes = [32, 4], strides = [1, 1]} : vector<64x4xf32> to vector<32x4xf32>
    %112 = arith.mulf %111, %111 : vector<32x4xf32>
    %cst_44 = arith.constant dense<0.000000e+00> : vector<4xf32>
    %113 = vector.multi_reduction <add>, %112, %cst_44 [0] : vector<32x4xf32> to vector<4xf32>
    %114 = vector.shape_cast %113 : vector<4xf32> to vector<1x4xf32>
    %cst_45 = arith.constant 1.000000e-24 : f32
    %115 = vector.broadcast %cst_45 : f32 to vector<1x4xf32>
    %116 = arith.maximumf %114, %115 : vector<1x4xf32>
    %117 = math.rsqrt %116 : vector<1x4xf32>
    %118 = vector.broadcast %117 : vector<1x4xf32> to vector<32x4xf32>
    %119 = arith.mulf %111, %118 : vector<32x4xf32>
    %120 = vector.extract_strided_slice %91 {offsets = [0, 0], sizes = [64, 48], strides = [1, 1]} : vector<128x48xf32> to vector<64x48xf32>
    %121 = arith.truncf %101 : vector<64x4xf32> to vector<64x4xbf16>
    %122 = arith.truncf %119 : vector<32x4xf32> to vector<32x4xbf16>
    %cst_46 = arith.constant dense<0.000000e+00> : vector<64x32xf32>
    %123 = tpu.matmul %121, %122, %cst_46 {dimension_numbers = #tpu.dot_dimension_numbers<[1], [1], [0], [0], [0, 0, 1, 0], [], []>} : vector<64x4xbf16>, vector<32x4xbf16>, vector<64x32xf32> -> vector<64x32xf32>
    %cst_47 = arith.constant dense<0xFF800000> : vector<64xf32>
    %124 = vector.multi_reduction <maximumf>, %123, %cst_47 [1] : vector<64x32xf32> to vector<64xf32>
    %125 = vector.shape_cast %124 : vector<64xf32> to vector<64x1xf32>
    %126 = vector.broadcast %125 : vector<64x1xf32> to vector<64x32xf32>
    %127 = arith.subf %123, %126 : vector<64x32xf32>
    %128 = math.exp %127 : vector<64x32xf32>
    %cst_48 = arith.constant dense<0.000000e+00> : vector<64xf32>
    %129 = vector.multi_reduction <add>, %128, %cst_48 [1] : vector<64x32xf32> to vector<64xf32>
    %130 = vector.shape_cast %129 : vector<64xf32> to vector<64x1xf32>
    %131 = tpu.reciprocal %130 {approx = true} : vector<64x1xf32> -> vector<64x1xf32>
    %132 = vector.broadcast %131 : vector<64x1xf32> to vector<64x32xf32>
    %133 = arith.mulf %128, %132 : vector<64x32xf32>
    %134 = arith.truncf %119 : vector<32x4xf32> to vector<32x4xbf16>
    %135 = arith.truncf %110 : vector<64x4xf32> to vector<64x4xbf16>
    %cst_49 = arith.constant dense<0.000000e+00> : vector<32x64xf32>
    %136 = tpu.matmul %134, %135, %cst_49 {dimension_numbers = #tpu.dot_dimension_numbers<[1], [1], [0], [0], [0, 0, 1, 0], [], []>} : vector<32x4xbf16>, vector<64x4xbf16>, vector<32x64xf32> -> vector<32x64xf32>
    %cst_50 = arith.constant dense<0xFF800000> : vector<32xf32>
    %137 = vector.multi_reduction <maximumf>, %136, %cst_50 [1] : vector<32x64xf32> to vector<32xf32>
    %138 = vector.shape_cast %137 : vector<32xf32> to vector<32x1xf32>
    %139 = vector.broadcast %138 : vector<32x1xf32> to vector<32x64xf32>
    %140 = arith.subf %136, %139 : vector<32x64xf32>
    %141 = math.exp %140 : vector<32x64xf32>
    %cst_51 = arith.constant dense<0.000000e+00> : vector<32xf32>
    %142 = vector.multi_reduction <add>, %141, %cst_51 [1] : vector<32x64xf32> to vector<32xf32>
    %143 = vector.shape_cast %142 : vector<32xf32> to vector<32x1xf32>
    %144 = tpu.reciprocal %143 {approx = true} : vector<32x1xf32> -> vector<32x1xf32>
    %145 = vector.broadcast %144 : vector<32x1xf32> to vector<32x64xf32>
    %146 = arith.mulf %141, %145 : vector<32x64xf32>
    %147 = arith.truncf %133 : vector<64x32xf32> to vector<64x32xbf16>
    %148 = arith.truncf %120 : vector<64x48xf32> to vector<64x48xbf16>
    %cst_52 = arith.constant dense<0.000000e+00> : vector<32x48xf32>
    %149 = tpu.matmul %147, %148, %cst_52 {dimension_numbers = #tpu.dot_dimension_numbers<[0], [0], [1], [1], [0, 1, 1, 1], [], []>} : vector<64x32xbf16>, vector<64x48xbf16>, vector<32x48xf32> -> vector<32x48xf32>
    %150 = arith.truncf %146 : vector<32x64xf32> to vector<32x64xbf16>
    %151 = arith.truncf %149 : vector<32x48xf32> to vector<32x48xbf16>
    %cst_53 = arith.constant dense<0.000000e+00> : vector<64x48xf32>
    %152 = tpu.matmul %150, %151, %cst_53 {dimension_numbers = #tpu.dot_dimension_numbers<[0], [0], [1], [1], [0, 1, 1, 1], [], []>} : vector<32x64xbf16>, vector<32x48xbf16>, vector<64x48xf32> -> vector<64x48xf32>
    %153 = vector.extract_strided_slice %89 {offsets = [64, 0], sizes = [64, 4], strides = [1, 1]} : vector<128x4xf32> to vector<64x4xf32>
    %154 = arith.mulf %153, %153 : vector<64x4xf32>
    %cst_54 = arith.constant dense<0.000000e+00> : vector<4xf32>
    %155 = vector.multi_reduction <add>, %154, %cst_54 [0] : vector<64x4xf32> to vector<4xf32>
    %156 = vector.shape_cast %155 : vector<4xf32> to vector<1x4xf32>
    %cst_55 = arith.constant 1.000000e-24 : f32
    %157 = vector.broadcast %cst_55 : f32 to vector<1x4xf32>
    %158 = arith.maximumf %156, %157 : vector<1x4xf32>
    %159 = math.rsqrt %158 : vector<1x4xf32>
    %160 = vector.broadcast %159 : vector<1x4xf32> to vector<64x4xf32>
    %161 = arith.mulf %153, %160 : vector<64x4xf32>
    %162 = vector.extract_strided_slice %90 {offsets = [64, 0], sizes = [64, 4], strides = [1, 1]} : vector<128x4xf32> to vector<64x4xf32>
    %163 = arith.mulf %162, %162 : vector<64x4xf32>
    %cst_56 = arith.constant dense<0.000000e+00> : vector<4xf32>
    %164 = vector.multi_reduction <add>, %163, %cst_56 [0] : vector<64x4xf32> to vector<4xf32>
    %165 = vector.shape_cast %164 : vector<4xf32> to vector<1x4xf32>
    %cst_57 = arith.constant 1.000000e-24 : f32
    %166 = vector.broadcast %cst_57 : f32 to vector<1x4xf32>
    %167 = arith.maximumf %165, %166 : vector<1x4xf32>
    %168 = math.rsqrt %167 : vector<1x4xf32>
    %169 = vector.broadcast %168 : vector<1x4xf32> to vector<64x4xf32>
    %170 = arith.mulf %162, %169 : vector<64x4xf32>
    %171 = vector.extract_strided_slice %92 {offsets = [32, 0], sizes = [32, 4], strides = [1, 1]} : vector<64x4xf32> to vector<32x4xf32>
    %172 = arith.mulf %171, %171 : vector<32x4xf32>
    %cst_58 = arith.constant dense<0.000000e+00> : vector<4xf32>
    %173 = vector.multi_reduction <add>, %172, %cst_58 [0] : vector<32x4xf32> to vector<4xf32>
    %174 = vector.shape_cast %173 : vector<4xf32> to vector<1x4xf32>
    %cst_59 = arith.constant 1.000000e-24 : f32
    %175 = vector.broadcast %cst_59 : f32 to vector<1x4xf32>
    %176 = arith.maximumf %174, %175 : vector<1x4xf32>
    %177 = math.rsqrt %176 : vector<1x4xf32>
    %178 = vector.broadcast %177 : vector<1x4xf32> to vector<32x4xf32>
    %179 = arith.mulf %171, %178 : vector<32x4xf32>
    %180 = vector.extract_strided_slice %91 {offsets = [64, 0], sizes = [64, 48], strides = [1, 1]} : vector<128x48xf32> to vector<64x48xf32>
    %181 = arith.truncf %161 : vector<64x4xf32> to vector<64x4xbf16>
    %182 = arith.truncf %179 : vector<32x4xf32> to vector<32x4xbf16>
    %cst_60 = arith.constant dense<0.000000e+00> : vector<64x32xf32>
    %183 = tpu.matmul %181, %182, %cst_60 {dimension_numbers = #tpu.dot_dimension_numbers<[1], [1], [0], [0], [0, 0, 1, 0], [], []>} : vector<64x4xbf16>, vector<32x4xbf16>, vector<64x32xf32> -> vector<64x32xf32>
    %cst_61 = arith.constant dense<0xFF800000> : vector<64xf32>
    %184 = vector.multi_reduction <maximumf>, %183, %cst_61 [1] : vector<64x32xf32> to vector<64xf32>
    %185 = vector.shape_cast %184 : vector<64xf32> to vector<64x1xf32>
    %186 = vector.broadcast %185 : vector<64x1xf32> to vector<64x32xf32>
    %187 = arith.subf %183, %186 : vector<64x32xf32>
    %188 = math.exp %187 : vector<64x32xf32>
    %cst_62 = arith.constant dense<0.000000e+00> : vector<64xf32>
    %189 = vector.multi_reduction <add>, %188, %cst_62 [1] : vector<64x32xf32> to vector<64xf32>
    %190 = vector.shape_cast %189 : vector<64xf32> to vector<64x1xf32>
    %191 = tpu.reciprocal %190 {approx = true} : vector<64x1xf32> -> vector<64x1xf32>
    %192 = vector.broadcast %191 : vector<64x1xf32> to vector<64x32xf32>
    %193 = arith.mulf %188, %192 : vector<64x32xf32>
    %194 = arith.truncf %179 : vector<32x4xf32> to vector<32x4xbf16>
    %195 = arith.truncf %170 : vector<64x4xf32> to vector<64x4xbf16>
    %cst_63 = arith.constant dense<0.000000e+00> : vector<32x64xf32>
    %196 = tpu.matmul %194, %195, %cst_63 {dimension_numbers = #tpu.dot_dimension_numbers<[1], [1], [0], [0], [0, 0, 1, 0], [], []>} : vector<32x4xbf16>, vector<64x4xbf16>, vector<32x64xf32> -> vector<32x64xf32>
    %cst_64 = arith.constant dense<0xFF800000> : vector<32xf32>
    %197 = vector.multi_reduction <maximumf>, %196, %cst_64 [1] : vector<32x64xf32> to vector<32xf32>
    %198 = vector.shape_cast %197 : vector<32xf32> to vector<32x1xf32>
    %199 = vector.broadcast %198 : vector<32x1xf32> to vector<32x64xf32>
    %200 = arith.subf %196, %199 : vector<32x64xf32>
    %201 = math.exp %200 : vector<32x64xf32>
    %cst_65 = arith.constant dense<0.000000e+00> : vector<32xf32>
    %202 = vector.multi_reduction <add>, %201, %cst_65 [1] : vector<32x64xf32> to vector<32xf32>
    %203 = vector.shape_cast %202 : vector<32xf32> to vector<32x1xf32>
    %204 = tpu.reciprocal %203 {approx = true} : vector<32x1xf32> -> vector<32x1xf32>
    %205 = vector.broadcast %204 : vector<32x1xf32> to vector<32x64xf32>
    %206 = arith.mulf %201, %205 : vector<32x64xf32>
    %207 = arith.truncf %193 : vector<64x32xf32> to vector<64x32xbf16>
    %208 = arith.truncf %180 : vector<64x48xf32> to vector<64x48xbf16>
    %cst_66 = arith.constant dense<0.000000e+00> : vector<32x48xf32>
    %209 = tpu.matmul %207, %208, %cst_66 {dimension_numbers = #tpu.dot_dimension_numbers<[0], [0], [1], [1], [0, 1, 1, 1], [], []>} : vector<64x32xbf16>, vector<64x48xbf16>, vector<32x48xf32> -> vector<32x48xf32>
    %210 = arith.truncf %206 : vector<32x64xf32> to vector<32x64xbf16>
    %211 = arith.truncf %209 : vector<32x48xf32> to vector<32x48xbf16>
    %cst_67 = arith.constant dense<0.000000e+00> : vector<64x48xf32>
    %212 = tpu.matmul %210, %211, %cst_67 {dimension_numbers = #tpu.dot_dimension_numbers<[0], [0], [1], [1], [0, 1, 1, 1], [], []>} : vector<32x64xbf16>, vector<32x48xbf16>, vector<64x48xf32> -> vector<64x48xf32>
    %213 = tpu.concatenate %152, %212 in 0 : vector<64x48xf32>, vector<64x48xf32> -> vector<128x48xf32>
    %214 = arith.addf %213, %75 : vector<128x48xf32>
    %215 = tpu.transpose %214, [1, 0] : vector<128x48xf32> -> vector<48x128xf32>
    %216 = tpu.transpose %91, [1, 0] : vector<128x48xf32> -> vector<48x128xf32>
    %217 = tpu.iota {dimensions = array<i32: 1>} : vector<48x128xi32>
    %c16_i32 = arith.constant 16 : i32
    %c0_i32 = arith.constant 0 : i32
    %218 = arith.cmpi eq, %c16_i32, %c0_i32 : i32
    %c1_i32 = arith.constant 1 : i32
    %219 = arith.select %218, %c1_i32, %c16_i32 : i32
    %220 = vector.broadcast %219 : i32 to vector<48x128xi32>
    %221 = arith.remsi %217, %220 : vector<48x128xi32>
    %c0_i32_68 = arith.constant 0 : i32
    %222 = vector.broadcast %c0_i32_68 : i32 to vector<48x128xi32>
    %223 = arith.cmpi ne, %221, %222 : vector<48x128xi32>
    %c0_i32_69 = arith.constant 0 : i32
    %224 = vector.broadcast %c0_i32_69 : i32 to vector<48x128xi32>
    %225 = arith.cmpi slt, %221, %224 : vector<48x128xi32>
    %c0_i32_70 = arith.constant 0 : i32
    %226 = arith.cmpi slt, %219, %c0_i32_70 : i32
    %227 = vector.broadcast %226 : i1 to vector<48x128xi1>
    %228 = vector.broadcast %227 : vector<48x128xi1> to vector<48x128xi1>
    %229 = arith.xori %225, %228 : vector<48x128xi1>
    %230 = arith.andi %229, %223 : vector<48x128xi1>
    %231 = vector.broadcast %219 : i32 to vector<48x128xi32>
    %232 = arith.addi %221, %231 : vector<48x128xi32>
    %233 = arith.select %230, %232, %221 : vector<48x128xi1>, vector<48x128xi32>
    %c0_71 = arith.constant 0 : index
    %c0_72 = arith.constant 0 : index
    %234 = vector.load %arg8[%c0_71, %c0_72] : memref<48x4xf32, #tpu.memory_space<vmem>>, vector<48x4xf32>
    %cst_73 = arith.constant 0.000000e+00 : f32
    %235 = vector.broadcast %cst_73 : f32 to vector<48x128xf32>
    %c2_i32 = arith.constant 2 : i32
    %236 = tpu.dynamic_rotate %216 by %c2_i32 dim 1 : vector<48x128xf32>, i32 -> vector<48x128xf32>
    %c-2_i32 = arith.constant -2 : i32
    %237 = vector.broadcast %c-2_i32 : i32 to vector<48x128xi32>
    %238 = arith.addi %233, %237 : vector<48x128xi32>
    %c0_i32_74 = arith.constant 0 : i32
    %239 = vector.broadcast %c0_i32_74 : i32 to vector<48x128xi32>
    %240 = arith.cmpi sge, %238, %239 : vector<48x128xi32>
    %c-2_i32_75 = arith.constant -2 : i32
    %241 = vector.broadcast %c-2_i32_75 : i32 to vector<48x128xi32>
    %242 = arith.addi %233, %241 : vector<48x128xi32>
    %c16_i32_76 = arith.constant 16 : i32
    %243 = vector.broadcast %c16_i32_76 : i32 to vector<48x128xi32>
    %244 = arith.cmpi slt, %242, %243 : vector<48x128xi32>
    %245 = arith.andi %240, %244 : vector<48x128xi1>
    %cst_77 = arith.constant 0.000000e+00 : f32
    %246 = vector.broadcast %cst_77 : f32 to vector<48x128xf32>
    %247 = arith.select %245, %236, %246 : vector<48x128xi1>, vector<48x128xf32>
    %248 = vector.extract_strided_slice %234 {offsets = [0, 0], sizes = [48, 1], strides = [1, 1]} : vector<48x4xf32> to vector<48x1xf32>
    %249 = vector.broadcast %248 : vector<48x1xf32> to vector<48x128xf32>
    %250 = arith.mulf %247, %249 : vector<48x128xf32>
    %251 = arith.addf %235, %250 : vector<48x128xf32>
    %c1_i32_78 = arith.constant 1 : i32
    %252 = tpu.dynamic_rotate %216 by %c1_i32_78 dim 1 : vector<48x128xf32>, i32 -> vector<48x128xf32>
    %c-1_i32 = arith.constant -1 : i32
    %253 = vector.broadcast %c-1_i32 : i32 to vector<48x128xi32>
    %254 = arith.addi %233, %253 : vector<48x128xi32>
    %c0_i32_79 = arith.constant 0 : i32
    %255 = vector.broadcast %c0_i32_79 : i32 to vector<48x128xi32>
    %256 = arith.cmpi sge, %254, %255 : vector<48x128xi32>
    %c-1_i32_80 = arith.constant -1 : i32
    %257 = vector.broadcast %c-1_i32_80 : i32 to vector<48x128xi32>
    %258 = arith.addi %233, %257 : vector<48x128xi32>
    %c16_i32_81 = arith.constant 16 : i32
    %259 = vector.broadcast %c16_i32_81 : i32 to vector<48x128xi32>
    %260 = arith.cmpi slt, %258, %259 : vector<48x128xi32>
    %261 = arith.andi %256, %260 : vector<48x128xi1>
    %cst_82 = arith.constant 0.000000e+00 : f32
    %262 = vector.broadcast %cst_82 : f32 to vector<48x128xf32>
    %263 = arith.select %261, %252, %262 : vector<48x128xi1>, vector<48x128xf32>
    %264 = vector.extract_strided_slice %234 {offsets = [0, 1], sizes = [48, 1], strides = [1, 1]} : vector<48x4xf32> to vector<48x1xf32>
    %265 = vector.broadcast %264 : vector<48x1xf32> to vector<48x128xf32>
    %266 = arith.mulf %263, %265 : vector<48x128xf32>
    %267 = arith.addf %251, %266 : vector<48x128xf32>
    %268 = vector.extract_strided_slice %234 {offsets = [0, 2], sizes = [48, 1], strides = [1, 1]} : vector<48x4xf32> to vector<48x1xf32>
    %269 = vector.broadcast %268 : vector<48x1xf32> to vector<48x128xf32>
    %270 = arith.mulf %216, %269 : vector<48x128xf32>
    %271 = arith.addf %267, %270 : vector<48x128xf32>
    %c127_i32 = arith.constant 127 : i32
    %272 = tpu.dynamic_rotate %216 by %c127_i32 dim 1 : vector<48x128xf32>, i32 -> vector<48x128xf32>
    %c1_i32_83 = arith.constant 1 : i32
    %273 = vector.broadcast %c1_i32_83 : i32 to vector<48x128xi32>
    %274 = arith.addi %233, %273 : vector<48x128xi32>
    %c0_i32_84 = arith.constant 0 : i32
    %275 = vector.broadcast %c0_i32_84 : i32 to vector<48x128xi32>
    %276 = arith.cmpi sge, %274, %275 : vector<48x128xi32>
    %c1_i32_85 = arith.constant 1 : i32
    %277 = vector.broadcast %c1_i32_85 : i32 to vector<48x128xi32>
    %278 = arith.addi %233, %277 : vector<48x128xi32>
    %c16_i32_86 = arith.constant 16 : i32
    %279 = vector.broadcast %c16_i32_86 : i32 to vector<48x128xi32>
    %280 = arith.cmpi slt, %278, %279 : vector<48x128xi32>
    %281 = arith.andi %276, %280 : vector<48x128xi1>
    %cst_87 = arith.constant 0.000000e+00 : f32
    %282 = vector.broadcast %cst_87 : f32 to vector<48x128xf32>
    %283 = arith.select %281, %272, %282 : vector<48x128xi1>, vector<48x128xf32>
    %284 = vector.extract_strided_slice %234 {offsets = [0, 3], sizes = [48, 1], strides = [1, 1]} : vector<48x4xf32> to vector<48x1xf32>
    %285 = vector.broadcast %284 : vector<48x1xf32> to vector<48x128xf32>
    %286 = arith.mulf %283, %285 : vector<48x128xf32>
    %287 = arith.addf %271, %286 : vector<48x128xf32>
    %cst_88 = arith.constant dense<0.000000e+00> : vector<48xf32>
    %288 = vector.multi_reduction <add>, %287, %cst_88 [1] : vector<48x128xf32> to vector<48xf32>
    %289 = vector.shape_cast %288 : vector<48xf32> to vector<48x1xf32>
    %cst_89 = arith.constant 7.812500e-03 : f32
    %290 = vector.broadcast %cst_89 : f32 to vector<48x1xf32>
    %291 = arith.mulf %289, %290 : vector<48x1xf32>
    %292 = vector.broadcast %291 : vector<48x1xf32> to vector<48x128xf32>
    %293 = arith.subf %287, %292 : vector<48x128xf32>
    %294 = arith.mulf %293, %293 : vector<48x128xf32>
    %cst_90 = arith.constant dense<0.000000e+00> : vector<48xf32>
    %295 = vector.multi_reduction <add>, %294, %cst_90 [1] : vector<48x128xf32> to vector<48xf32>
    %296 = vector.shape_cast %295 : vector<48xf32> to vector<48x1xf32>
    %cst_91 = arith.constant 7.812500e-03 : f32
    %297 = vector.broadcast %cst_91 : f32 to vector<48x1xf32>
    %298 = arith.mulf %296, %297 : vector<48x1xf32>
    %c0_92 = arith.constant 0 : index
    %c0_93 = arith.constant 0 : index
    %299 = vector.load %arg9[%c0_92, %c0_93] : memref<48x1xf32, #tpu.memory_space<vmem>>, vector<48x1xf32>
    %300 = vector.broadcast %291 : vector<48x1xf32> to vector<48x128xf32>
    %301 = arith.subf %287, %300 : vector<48x128xf32>
    %302 = vector.broadcast %299 : vector<48x1xf32> to vector<48x128xf32>
    %303 = arith.mulf %302, %301 : vector<48x128xf32>
    %cst_94 = arith.constant 9.99999974E-6 : f32
    %304 = vector.broadcast %cst_94 : f32 to vector<48x1xf32>
    %305 = arith.addf %298, %304 : vector<48x1xf32>
    %306 = math.rsqrt %305 : vector<48x1xf32>
    %307 = vector.broadcast %306 : vector<48x1xf32> to vector<48x128xf32>
    %308 = arith.mulf %303, %307 : vector<48x128xf32>
    %c0_95 = arith.constant 0 : index
    %c0_96 = arith.constant 0 : index
    %309 = vector.load %arg10[%c0_95, %c0_96] : memref<48x1xf32, #tpu.memory_space<vmem>>, vector<48x1xf32>
    %310 = vector.broadcast %309 : vector<48x1xf32> to vector<48x128xf32>
    %311 = arith.addf %308, %310 : vector<48x128xf32>
    %cst_97 = arith.constant 0.000000e+00 : f32
    %312 = vector.broadcast %cst_97 : f32 to vector<48x128xf32>
    %313 = arith.cmpf ogt, %311, %312 : vector<48x128xf32>
    %cst_98 = arith.constant 0.000000e+00 : f32
    %314 = vector.broadcast %cst_98 : f32 to vector<48x128xf32>
    %315 = arith.minimumf %311, %314 : vector<48x128xf32>
    %316 = math.exp %315 : vector<48x128xf32>
    %cst_99 = arith.constant 1.000000e+00 : f32
    %317 = vector.broadcast %cst_99 : f32 to vector<48x128xf32>
    %318 = arith.subf %316, %317 : vector<48x128xf32>
    %319 = arith.select %313, %311, %318 : vector<48x128xi1>, vector<48x128xf32>
    %320 = arith.addf %215, %319 : vector<48x128xf32>
    %cst_100 = arith.constant dense<0.000000e+00> : vector<48xf32>
    %321 = vector.multi_reduction <add>, %320, %cst_100 [1] : vector<48x128xf32> to vector<48xf32>
    %322 = vector.shape_cast %321 : vector<48xf32> to vector<48x1xf32>
    %cst_101 = arith.constant 7.812500e-03 : f32
    %323 = vector.broadcast %cst_101 : f32 to vector<48x1xf32>
    %324 = arith.mulf %322, %323 : vector<48x1xf32>
    %325 = vector.broadcast %324 : vector<48x1xf32> to vector<48x128xf32>
    %326 = arith.subf %320, %325 : vector<48x128xf32>
    %327 = arith.mulf %326, %326 : vector<48x128xf32>
    %cst_102 = arith.constant dense<0.000000e+00> : vector<48xf32>
    %328 = vector.multi_reduction <add>, %327, %cst_102 [1] : vector<48x128xf32> to vector<48xf32>
    %329 = vector.shape_cast %328 : vector<48xf32> to vector<48x1xf32>
    %cst_103 = arith.constant 7.812500e-03 : f32
    %330 = vector.broadcast %cst_103 : f32 to vector<48x1xf32>
    %331 = arith.mulf %329, %330 : vector<48x1xf32>
    %c0_104 = arith.constant 0 : index
    %c0_105 = arith.constant 0 : index
    %332 = vector.load %arg11[%c0_104, %c0_105] : memref<48x1xf32, #tpu.memory_space<vmem>>, vector<48x1xf32>
    %333 = vector.broadcast %324 : vector<48x1xf32> to vector<48x128xf32>
    %334 = arith.subf %320, %333 : vector<48x128xf32>
    %335 = vector.broadcast %332 : vector<48x1xf32> to vector<48x128xf32>
    %336 = arith.mulf %335, %334 : vector<48x128xf32>
    %cst_106 = arith.constant 9.99999974E-6 : f32
    %337 = vector.broadcast %cst_106 : f32 to vector<48x1xf32>
    %338 = arith.addf %331, %337 : vector<48x1xf32>
    %339 = math.rsqrt %338 : vector<48x1xf32>
    %340 = vector.broadcast %339 : vector<48x1xf32> to vector<48x128xf32>
    %341 = arith.mulf %336, %340 : vector<48x128xf32>
    %c0_107 = arith.constant 0 : index
    %c0_108 = arith.constant 0 : index
    %342 = vector.load %arg12[%c0_107, %c0_108] : memref<48x1xf32, #tpu.memory_space<vmem>>, vector<48x1xf32>
    %343 = vector.broadcast %342 : vector<48x1xf32> to vector<48x128xf32>
    %344 = arith.addf %341, %343 : vector<48x128xf32>
    %c0_109 = arith.constant 0 : index
    %c0_110 = arith.constant 0 : index
    %345 = vector.load %arg13[%c0_109, %c0_110] : memref<48x128xf32, #tpu.memory_space<vmem>>, vector<48x128xf32>
    tpu.vector_store %arg13[%c0_109, %c0_110], %344 {strides = array<i32>} : memref<48x128xf32, #tpu.memory_space<vmem>>, vector<48x128xf32>,
    return
  }
}

</mosaic_0001>

<bundles_post_ra>
// kernel: tpu_custom_call.1
= control target key start
LH: loop header
LB: loop body
LE: loop exit
PB: predicated region body
PF: predicated region fallthrough
CT: control target
= control target key end

     0   :  { %vm62_vm0 = vcmask 392192   ;;  %s4117_s0 = inlined_call_operand.vmem [shape: f32[128,48], index: 0, kind: input, shape index: {}]   ;;  %s4118_s1 = inlined_call_operand.vmem [shape: f32[64,48], index: 1, kind: input, shape index: {}]   ;;  %s4119_s2 = inlined_call_operand.vmem [shape: f32[3,48], index: 2, kind: input, shape index: {}]   ;;  %s4120_s3 = inlined_call_operand.vmem [shape: f32[3,1], index: 3, kind: input, shape index: {}]   ;;  %s4121_s4 = inlined_call_operand.vmem [shape: f32[3,48], index: 4, kind: input, shape index: {}]   ;;  %s4122_s5 = inlined_call_operand.vmem [shape: f32[1,48], index: 5, kind: input, shape index: {}]   ;;  %s4123_s6 = inlined_call_operand.vmem [shape: f32[48,60], index: 6, kind: input, shape index: {}]   ;;  %s4124_s7 = inlined_call_operand.vmem [shape: f32[1,60], index: 7, kind: input, shape index: {}]   ;;  %s4125_s8 = inlined_call_operand.vmem [shape: f32[48,4], index: 8, kind: input, shape index: {}]   ;;  %s4126_s9 = inlined_call_operand.vmem [shape: f32[48,1], index: 9, kind: input, shape index: {}]   ;;  %s4127_s10 = inlined_call_operand.vmem [shape: f32[48,1], index: 10, kind: input, shape index: {}]   ;;  %s4128_s11 = inlined_call_operand.vmem [shape: f32[48,1], index: 11, kind: input, shape index: {}]   ;;  %s4129_s12 = inlined_call_operand.vmem [shape: f32[48,1], index: 12, kind: input, shape index: {}]   ;;  %s4130_s13 = inlined_call_operand.hbm [shape: f32[48,128], index: 13, kind: output, shape index: {}]  }
   0x1   :  { %v2889_v0 = vld [vmem:[%s4117_s0] sm:$0xff]  ;;  %v2894_v1 = vld [vmem:[%s4117_s0 + $0x8] sm:$0xff]  ;;  %v2899_v2 = vld [vmem:[%s4117_s0 + $0x10] sm:$0xff] }
   0x2   :  { %v2904_v3 = vld [vmem:[%s4117_s0 + $0x18] sm:$0xff]  ;;  %v63_v4 = vsel %vm62_vm0, %v2889_v0, 0.0  ;;  %v64_v5 = vsel %vm62_vm0, %v2894_v1, 0.0  ;;  %v66_v6 = vsel %vm62_vm0, %v2899_v2, 0.0  ;;  %v2915_v7 = vld [vmem:[%s4117_s0 + $0x20] sm:$0xff]  ;;  %v2927_v11 = vld [vmem:[%s4117_s0 + $0x48] sm:$0xff] }
   0x3   :  { %v65_v8 = vadd.f32 %v64_v5, %v63_v4  ;;  %v2920_v9 = vld [vmem:[%s4117_s0 + $0x40] sm:$0xff]  ;;  %v68_v10 = vsel %vm62_vm0, %v2904_v3, 0.0  ;;  %v2932_v12 = vld [vmem:[%s4117_s0 + $0x50] sm:$0xff]  ;;  %v2937_v13 = vld [vmem:[%s4117_s0 + $0x28] sm:$0xff]  ;;  %v127_v17 = vsel %vm62_vm0, %v2927_v11, 0.0  ;;  %v70_v19 = vsel %vm62_vm0, %v2915_v7, 0.0 }
   0x4   :  { %v2942_v15 = vld [vmem:[%s4117_s0 + $0x58] sm:$0xff]  ;;  %v126_v16 = vsel %vm62_vm0, %v2920_v9, 0.0  ;;  %v129_v18 = vsel %vm62_vm0, %v2932_v12, 0.0  ;;  %v2955_v20 = vld [vmem:[%s4117_s0 + $0x60] sm:$0xff]  ;;  %v2960_v22 = vld [vmem:[%s4117_s0 + $0x30] sm:$0xff] }
   0x5   :  { %v67_v14 = vadd.f32 %v66_v6, %v65_v8  ;;  %v128_v21 = vadd.f32 %v127_v17, %v126_v16  ;;  %v131_v24 = vsel %vm62_vm0, %v2942_v15, 0.0 }
   0x7   :  { %v69_v23 = vadd.f32 %v68_v10, %v67_v14 }
   0x8   :  { %18 = vsyncpa [#allocation3], 0  ;;  %v72_v25 = vsel %vm62_vm0, %v2937_v13, 0.0  ;;  %v2969_v26 = vld [vmem:[%s4117_s0 + $0x68] sm:$0xff]  ;;  %v130_v27 = vadd.f32 %v129_v18, %v128_v21  ;;  %v2974_v28 = vld [vmem:[%s4117_s0 + $0x38] sm:$0xff]  ;;  %v133_v30 = vsel %vm62_vm0, %v2955_v20, 0.0 }
   0x9   :  { %v71_v29 = vadd.f32 %v70_v19, %v69_v23  ;;  %v74_v31 = vsel %vm62_vm0, %v2960_v22, 0.0  ;;  %v2983_v32 = vld [vmem:[%s4117_s0 + $0x70] sm:$0xff]  ;;  %v135_v35 = vsel %vm62_vm0, %v2969_v26, 0.0  ;;  %v76_v36 = vsel %vm62_vm0, %v2974_v28, 0.0  ;;  %v2992_v37 = vld [vmem:[%s4117_s0 + $0x78] sm:$0xff]  ;;  %s2806_s18 = smov 116  }
   0xa   :  { %v132_v33 = vadd.f32 %v131_v24, %v130_v27  ;;  %v137_v40 = vsel %vm62_vm0, %v2983_v32, 0.0  ;;  %v139_v43 = vsel %vm62_vm0, %v2992_v37, 0.0  ;;  %v86_v56 = vld [vmem:[%s4119_s2] sm:$0x7]  ;;  %vm88_vm1 = vcmask 387072   ;;  %s2812_s26 = smov 127  }
   0xb   :  { %v73_v34 = vadd.f32 %v72_v25, %v71_v29  ;;  %v4132_v5 = vmov 0   ;;  %v92_v6 = vld [vmem:[%s4120_s3] sm:$0x7]  ;;  %vm434_vm4 = vcmask 31744   ;;  %vm466_vm5 = vcmask 64544  }
   0xc   :  { %v134_v38 = vadd.f32 %v133_v30, %v132_v33  ;;  %2614 = vset.pattern.permute.xlu1 %v4132_v5  ;;  %v234_v33 = vld [vmem:[%s4123_s6 + $0x8] sm:$0xff]  ;;  %vm502_vm6 = vcmask 97344   ;;  %vm617_vm7 = vcmask 261120   ;;  %vm783_vm8 = vcmask 523264  }
   0xd   :  { %v75_v39 = vadd.f32 %v74_v31, %v73_v34  ;;  %v233_v31 = vld [vmem:[%s4123_s6] sm:$0xff] }
   0xe   :  { %v136_v41 = vadd.f32 %v135_v35, %v134_v38  ;;  %v251_v34 = vpack.c.bf16 %v234_v33, %v233_v31  ;;  %v235_v35 = vld [vmem:[%s4123_s6 + $0x10] sm:$0xff] }
   0xf   :  { %v77_v42 = vadd.f32 %v76_v36, %v75_v39  ;;  %v236_v36 = vld [vmem:[%s4123_s6 + $0x18] sm:$0xff]  ;;  %v237_v39 = vld [vmem:[%s4123_s6 + $0x20] sm:$0xff] }
  0x10   :  { %v138_v44 = vadd.f32 %v137_v40, %v136_v41  ;;  %2463 = vmatprep.subr.bf16.mxu0 %v251_v34  ;;  %v252_v38 = vpack.c.bf16 %v236_v36, %v235_v35  ;;  %v238_v40 = vld [vmem:[%s4123_s6 + $0x28] sm:$0xff] }
  0x11   :  { %v78_v45 = vrot.slane %v77_v42, 4  ;;  %2464 = vmatpush3.bf16.msra.mxu0 %v251_v34  ;;  %v253_v41 = vpack.c.bf16 %v238_v40, %v237_v39 }
  0x12   :  { %v140_v46 = vadd.f32 %v139_v43, %v138_v44  ;;  %2465 = vmatprep.subr.bf16.mxu0 %v252_v38 }
  0x13   :  { %v79_v47 = vadd.f32 %v78_v45, %v77_v42  ;;  %v100_v42 = vld [vmem:[%s4121_s4] sm:$0x7]  ;;  %s2808_s4 = smov 2  }
  0x14   :  { %v141_v48 = vrot.slane %v140_v46, 4 }
  0x15   :  { %v80_v49 = vrot.slane %v79_v47, 2  ;;  %2466 = vmatpush3.bf16.msra.mxu0 %v252_v38 }
  0x16   :  { %v142_v50 = vadd.f32 %v141_v48, %v140_v46  ;;  %2467 = vmatprep.subr.bf16.mxu0 %v253_v41 }
  0x17   :  { %v81_v51 = vadd.f32 %v80_v49, %v79_v47 }
  0x18   :  { %v143_v52 = vrot.slane %v142_v50, 2 }
  0x19   :  { %v82_v53 = vrot.slane %v81_v51, 1  ;;  %2468 = vmatpush3.bf16.msra.mxu0 %v253_v41 }
  0x1a   :  { %v144_v54 = vadd.f32 %v143_v52, %v142_v50 }
  0x1b   :  { %v83_v55 = vadd.f32 %v82_v53, %v81_v51 }
  0x1c   :  { %v145_v57 = vrot.slane %v144_v54, 1 }
  0x1d   :  { %v85_v58 = vmul.f32 0.015625, %v83_v55 }
  0x1e   :  { %v146_v59 = vadd.f32 %v145_v57, %v144_v54  ;;  %v114_v57 = vld [vmem:[%s4122_s5] sm:$0x1] }
  0x1f   :  { %v87_v60 = vmul.f32 %v86_v56, %v85_v58 }
  0x20   :  { %v147_v61 = vmul.f32 0.015625, %v146_v59 }
  0x21   :  { %v89_v62 = vsel %vm88_vm1, %v87_v60, 0.0 }
  0x22   :  { %90 = vadd.xlane.f32.xlu0 %v89_v62  ;;  %v148_v63 = vmul.f32 %v147_v61, %v86_v56 }
  0x24   :  { %v149_v4 = vsel %vm88_vm1, %v148_v63, 0.0 }
  0x26   :  { %150 = vadd.xlane.f32.xlu0 %v149_v4 }
  0xaf   :  { %v91_v8 = vpop.xlane.xlu0 %90 }
  0xb0   :  { %v93_v10 = vadd.f32 %v92_v6, %v91_v8 }
  0xb2   :  { %v95_v14 = vmin.f32 %v93_v10, 0.0  ;;  %vm94_vm2 = vcmp.gt.f32.partialorder %v93_v10, 0.0 }
  0xb3   :  { %v151_v16 = vpop.xlane.xlu0 %150 }
  0xb4   :  { %v96_v17 = vmul.f32 1.442695, %v95_v14  ;;  %v152_v18 = vadd.f32 %v151_v16, %v92_v6  ;;  %v4131_v14 = vlaneseq }
  0xb6   :  { %2623 = vpow2.f32 %v96_v17  ;;  %v154_v19 = vmin.f32 %v152_v18, 0.0  ;;  %vm153_vm3 = vcmp.gt.f32.partialorder %v152_v18, 0.0 }
  0xb8   :  { %v155_v21 = vmul.f32 1.442695, %v154_v19 }
  0xba   :  { %2625 = vpow2.f32 %v155_v21 }
  0xc0   :  { %v2624_v23 = vpop.eup %2623 }
  0xc1   :  { %v2353_v24 = vadd.f32 -1.0, %v2624_v23 }
  0xc3   :  { %v99_v25 = vsel %vm94_vm2, %v93_v10, %v2353_v24 }
  0xc4   :  { %v2626_v27 = vpop.eup %2625  ;;  %103 = vperm.xlu1 %2614, %v99_v25  }
  0xc5   :  { %v2355_v29 = vadd.f32 -1.0, %v2626_v27 }
  0xc7   :  { %v158_v30 = vsel %vm153_vm3, %v152_v18, %v2355_v29  ;;  %v123_v18 = vshrl.u32 %v4131_v14, 7 }
  0xc8   :  { %161 = vperm.xlu1 %2614, %v158_v30  }
  0xc9   :  { %v124_v19 = vsub.s32 0, %v123_v18 }
 0x143   :  { %v104_v43 = vpop.permute.xlu1 %103 }
 0x144   :  { %v106_v44 = vmul.f32 %v104_v43, %v100_v42 }
 0x146   :  { %v107_v45 = vsel %vm88_vm1, %v106_v44, 0.0 }
 0x147   :  { %v108_v46 = vrot.slane %v107_v45, 4  ;;  %v162_v47 = vpop.permute.xlu1 %161 }
 0x148   :  { %v164_v48 = vmul.f32 %v162_v47, %v100_v42 }
 0x149   :  { %v109_v49 = vadd.f32 %v108_v46, %v107_v45 }
 0x14a   :  { %v165_v50 = vsel %vm88_vm1, %v164_v48, 0.0 }
 0x14b   :  { %v110_v51 = vrot.slane %v109_v49, 2  ;;  %v166_v52 = vrot.slane %v165_v50, 4 }
 0x14d   :  { %v111_v53 = vadd.f32 %v110_v51, %v109_v49  ;;  %v167_v54 = vadd.f32 %v166_v52, %v165_v50 }
 0x14f   :  { %v112_v55 = vrot.slane %v111_v53, 1  ;;  %v168_v56 = vrot.slane %v167_v54, 2 }
 0x151   :  { %v113_v58 = vadd.f32 %v112_v55, %v111_v53  ;;  %v169_v59 = vadd.f32 %v168_v56, %v167_v54 }
 0x153   :  { %v115_v60 = vadd.f32 %v114_v57, %v113_v58  ;;  %v170_v61 = vrot.slane %v169_v59, 1 }
 0x155   :  { %v2354_v62 = vmul.f32 -1.442695, %v115_v60  ;;  %v171_v63 = vadd.f32 %v170_v61, %v169_v59 }
 0x157   :  { %2627 = vpow2.f32 %v2354_v62  ;;  %v172_v4 = vadd.f32 %v171_v63, %v114_v57  ;;  %v219_v62 = vld [vmem:[%s4118_s1 + $0x10] sm:$0xff]  ;;  %v220_v63 = vld [vmem:[%s4118_s1 + $0x18] sm:$0xff] }
 0x159   :  { %v2356_v6 = vmul.f32 -1.442695, %v172_v4 }
 0x15b   :  { %2629 = vpow2.f32 %v2356_v6 }
 0x161   :  { %v2628_v8 = vpop.eup %2627 }
 0x162   :  { %v119_v10 = vadd.f32 1.0, %v2628_v8 }
 0x164   :  { %2631 = vrcp.f32 %v119_v10 }
 0x165   :  { %v2630_v16 = vpop.eup %2629 }
 0x166   :  { %v176_v17 = vadd.f32 1.0, %v2630_v16 }
 0x168   :  { %2633 = vrcp.f32 %v176_v17 }
 0x16e   :  { %v2632_v21 = vpop.eup %2631 }
 0x16f   :  { %v125_v23 = vrot.slane %v2632_v21, %v124_v19  ;;  %v224_v21 = vld [vmem:[%s4118_s1 + $0x38] sm:$0xff] }
 0x171   :  { %v3035_v24 = vmul.f32 %v125_v23, %v2889_v0  ;;  %v3038_v25 = vmul.f32 %v125_v23, %v2894_v1  ;;  %v3041_v27 = vmul.f32 %v125_v23, %v2899_v2  ;;  %v3044_v29 = vmul.f32 %v125_v23, %v2904_v3 }
 0x172   :  { %v2634_v30 = vpop.eup %2633  ;;  %v3047_v31 = vmul.f32 %v125_v23, %v2915_v7  ;;  %v3050_v33 = vmul.f32 %v125_v23, %v2937_v13  ;;  %v3065_v44 = vmul.f32 %v125_v23, %v2960_v22  ;;  %v215_v57 = vadd.f32 1.0, %v125_v23 }
 0x173   :  { %v182_v34 = vrot.slane %v2634_v30, %v124_v19  ;;  %v199_v35 = vadd.f32 %v3035_v24, %v2889_v0  ;;  %v200_v36 = vadd.f32 %v3038_v25, %v2894_v1  ;;  %v201_v38 = vadd.f32 %v3041_v27, %v2899_v2  ;;  %v223_v19 = vld [vmem:[%s4118_s1 + $0x30] sm:$0xff] }
 0x174   :  { %4146 = vst [vmem:[#allocation5_spill] sm:$0xff] %v3047_v31  ;;  %4147 = vst [vmem:[#allocation6_spill] sm:$0xff] %v3050_v33  ;;  %v202_v39 = vadd.f32 %v3044_v29, %v2904_v3  ;;  %v203_v40 = vadd.f32 %v3047_v31, %v2915_v7  ;;  %v204_v41 = vadd.f32 %v3050_v33, %v2937_v13 }
 0x175   :  { %v239_v42 = vpack.c.bf16 %v200_v36, %v199_v35  ;;  %4148 = vst [vmem:[#allocation7_spill] sm:$0xff] %v3065_v44  ;;  %v3068_v0 = vmul.f32 %v125_v23, %v2974_v28  ;;  %v3072_v2 = vmul.f32 %v182_v34, %v2920_v9  ;;  %v3075_v3 = vmul.f32 %v182_v34, %v2927_v11  ;;  %v3153_v35 = vld [vmem:[%s4124_s7] ss:$0 sm:$0xff]  ;;  %s2805_s7 = smov 124  }
 0x176   :  { %v240_v43 = vpack.c.bf16 %v202_v39, %v201_v38  ;;  %v241_v1 = vpack.c.bf16 %v204_v41, %v203_v40  ;;  %v205_v7 = vadd.f32 %v3065_v44, %v2960_v22  ;;  %v3088_v48 = vmul.f32 %v182_v34, %v2932_v12 }
 0x177   :  { %4149 = vst [vmem:[#allocation8_spill] sm:$0xff] %v3068_v0  ;;  %2469 = vmatprep.mubr.msk.bf16.mxu0 %vm62_vm0, %v239_v42  ;;  %4150 = vst [vmem:[#allocation9_spill] sm:$0xff] %v3072_v2  ;;  %v206_v13 = vadd.f32 %v3068_v0, %v2974_v28  ;;  %v207_v45 = vadd.f32 %v3072_v2, %v2920_v9  ;;  %v208_v46 = vadd.f32 %v3075_v3, %v2927_v11 }
 0x178   :  { %4151 = vst [vmem:[#allocation10_spill] sm:$0xff] %v3075_v3  ;;  %2470 = vmatmul.mubr.msk.bf16.vlgmr.msra.gmra.mrb[0].mxu0 %vm62_vm0, %v240_v43  ;;  %4152 = vst [vmem:[#allocation11_spill] sm:$0xff] %v3088_v48  ;;  %v3091_v49 = vmul.f32 %v182_v34, %v2942_v15  ;;  %v3094_v51 = vmul.f32 %v182_v34, %v2955_v20  ;;  %v3097_v22 = vmul.f32 %v182_v34, %v2969_v26 }
 0x179   :  { %2473 = vmatprep.mubr.msk.bf16.mxu0 %vm62_vm0, %v241_v1  ;;  %v242_v47 = vpack.c.bf16 %v206_v13, %v205_v7  ;;  %v243_v50 = vpack.c.bf16 %v208_v46, %v207_v45  ;;  %v209_v9 = vadd.f32 %v3088_v48, %v2932_v12  ;;  %v3110_v54 = vmul.f32 %v182_v34, %v2983_v32  ;;  %v217_v12 = vld [vmem:[%s4118_s1] sm:$0xff] }
 0x17a   :  { %4153 = vst [vmem:[#allocation12_spill] sm:$0xff] %v3091_v49  ;;  %4154 = vst [vmem:[#allocation13_spill] sm:$0xff] %v3094_v51  ;;  %v210_v11 = vadd.f32 %v3091_v49, %v2942_v15  ;;  %v211_v28 = vadd.f32 %v3094_v51, %v2955_v20  ;;  %v212_v52 = vadd.f32 %v3097_v22, %v2969_v26  ;;  %v218_v15 = vld [vmem:[%s4118_s1 + $0x8] sm:$0xff]  ;;  %v216_v4 = vadd.f32 1.0, %v182_v34 }
 0x17b   :  { %4155 = vst [vmem:[#allocation14_spill] sm:$0xff] %v3097_v22  ;;  %4156 = vst [vmem:[#allocation15_spill] sm:$0xff] %v3110_v54  ;;  %v3113_v55 = vmul.f32 %v182_v34, %v2992_v37  ;;  %v213_v20 = vadd.f32 %v3110_v54, %v2983_v32  ;;  %v225_v58 = vmul.f32 %v217_v12, %v215_v57  ;;  %v221_v32 = vld [vmem:[%s4118_s1 + $0x20] sm:$0xff] }
 0x17c   :  { %v244_v53 = vpack.c.bf16 %v210_v11, %v209_v9  ;;  %v245_v56 = vpack.c.bf16 %v212_v52, %v211_v28  ;;  %v226_v59 = vmul.f32 %v218_v15, %v215_v57  ;;  %v227_v6 = vmul.f32 %v219_v62, %v215_v57 }
 0x17d   :  { %4157 = vst [vmem:[#allocation16_spill] sm:$0xff] %v3113_v55  ;;  %v214_v26 = vadd.f32 %v3113_v55, %v2992_v37  ;;  %v222_v37 = vld [vmem:[%s4118_s1 + $0x28] sm:$0xff]  ;;  %v228_v8 = vmul.f32 %v220_v63, %v215_v57  ;;  %v229_v10 = vmul.f32 %v221_v32, %v216_v4  ;;  %v231_v23 = vmul.f32 %v223_v19, %v216_v4  ;;  %s2804_s1 = smov 120  }
 0x17e   :  { %v247_v61 = vpack.c.bf16 %v226_v59, %v225_v58  ;;  %v230_v16 = vmul.f32 %v222_v37, %v216_v4  ;;  %v232_v30 = vmul.f32 %v224_v21, %v216_v4 }
 0x17f   :  { %v246_v60 = vpack.c.bf16 %v214_v26, %v213_v20  ;;  %v248_v17 = vpack.c.bf16 %v228_v8, %v227_v6 }
 0x180   :  { %2474 = vmatmul.mubr.msk.bf16.gmra.mrb[4].mxu0 %vm62_vm0, %v242_v47  ;;  %v249_v18 = vpack.c.bf16 %v230_v16, %v229_v10  ;;  %v250_v34 = vpack.c.bf16 %v232_v30, %v231_v23 }
 0x181   :  { %2477 = vmatprep.mubr.msk.bf16.mxu0 %vm62_vm0, %v243_v50 }
 0x188   :  { %2478 = vmatmul.mubr.msk.bf16.gmra.mrb[8].mxu0 %vm62_vm0, %v244_v53 }
 0x189   :  { %2481 = vmatprep.mubr.msk.bf16.mxu0 %vm62_vm0, %v245_v56 }
 0x190   :  { %2482 = vmatmul.mubr.msk.bf16.gmra.mrb[12].mxu0 %vm62_vm0, %v246_v60 }
 0x191   :  { %2485 = vmatprep.mubr.msk.bf16.mxu0 %vm62_vm0, %v247_v61 }
 0x198   :  { %2486 = vmatmul.mubr.msk.bf16.gmra.mrb[16].mxu0 %vm62_vm0, %v248_v17 }
 0x199   :  { %2489 = vmatprep.mubr.msk.bf16.mxu0 %vm62_vm0, %v249_v18 }
 0x1a0   :  { %2490 = vmatmul.mubr.msk.bf16.gmra.mrb[20].mxu0 %vm62_vm0, %v250_v34 }
 0x24b   :  { %v2471_v36 = vpop.f32.mrb[0].mxu0 }
 0x24c   :  { %v331_v38 = vpop.f32.mrb[1].mxu0  ;;  %v3156_v39 = vadd.f32 %v2471_v36, %v3153_v35 }
 0x24d   :  { %v3159_v40 = vadd.f32 %v3153_v35, %v331_v38  ;;  %v2472_v41 = vpop.f32.mrb[2].mxu0 }
 0x24e   :  { %v3162_v42 = vadd.f32 %v2472_v41, %v3153_v35  ;;  %v334_v43 = vpop.f32.mrb[3].mxu0  ;;  %v428_v13 = vmul.f32 %v3156_v39, %v3156_v39 }
 0x24f   :  { %v426_v1 = vmul.f32 %v3159_v40, %v3159_v40  ;;  %v3167_v7 = vadd.f32 %v3153_v35, %v334_v43 }
 0x250   :  { %v429_v46 = vmul.f32 %v3162_v42, %v3162_v42  ;;  %v438_v57 = vsel %vm434_vm4, %v428_v13, 0.0  ;;  %v470_v12 = vsel %vm466_vm5, %v428_v13, 0.0 }
 0x251   :  { %v427_v45 = vmul.f32 %v3167_v7, %v3167_v7  ;;  %v435_v47 = vsel %vm434_vm4, %v426_v1, 0.0  ;;  %v467_v50 = vsel %vm466_vm5, %v426_v1, 0.0 }
 0x252   :  { %v440_v58 = vsel %vm434_vm4, %v429_v46, 0.0  ;;  %v472_v62 = vsel %vm466_vm5, %v429_v46, 0.0 }
 0x253   :  { %v436_v9 = vsel %vm434_vm4, %v427_v45, 0.0  ;;  %v468_v11 = vsel %vm466_vm5, %v427_v45, 0.0  ;;  %v2475_v28 = vpop.f32.mrb[4].mxu0 }
 0x254   :  { %v437_v52 = vadd.f32 %v436_v9, %v435_v47  ;;  %v469_v53 = vadd.f32 %v468_v11, %v467_v50  ;;  %v347_v56 = vpop.f32.mrb[5].mxu0  ;;  %v3182_v15 = vadd.f32 %v2475_v28, %v3153_v35 }
 0x255   :  { %v3185_v20 = vadd.f32 %v3153_v35, %v347_v56  ;;  %v2476_v26 = vpop.f32.mrb[6].mxu0 }
 0x256   :  { %v439_v59 = vadd.f32 %v438_v57, %v437_v52  ;;  %v471_v60 = vadd.f32 %v470_v12, %v469_v53  ;;  %v350_v61 = vpop.f32.mrb[7].mxu0  ;;  %v3192_v4 = vadd.f32 %v2476_v26, %v3153_v35  ;;  %v432_v8 = vmul.f32 %v3182_v15, %v3182_v15 }
 0x257   :  { %v430_v63 = vmul.f32 %v3185_v20, %v3185_v20  ;;  %v3195_v32 = vadd.f32 %v3153_v35, %v350_v61 }
 0x258   :  { %v441_v37 = vadd.f32 %v440_v58, %v439_v59  ;;  %v473_v6 = vadd.f32 %v472_v62, %v471_v60  ;;  %v433_v21 = vmul.f32 %v3192_v4, %v3192_v4  ;;  %v446_v43 = vsel %vm434_vm4, %v432_v8, 0.0 }
 0x259   :  { %v442_v10 = vsel %vm434_vm4, %v430_v63, 0.0  ;;  %v474_v16 = vsel %vm466_vm5, %v430_v63, 0.0  ;;  %v431_v17 = vmul.f32 %v3195_v32, %v3195_v32  ;;  %v478_v57 = vsel %vm466_vm5, %v432_v8, 0.0 }
 0x25a   :  { %v443_v18 = vadd.f32 %v442_v10, %v441_v37  ;;  %v475_v19 = vadd.f32 %v474_v16, %v473_v6  ;;  %v448_v11 = vsel %vm434_vm4, %v433_v21, 0.0  ;;  %v480_v10 = vsel %vm466_vm5, %v433_v21, 0.0 }
 0x25b   :  { %v444_v23 = vsel %vm434_vm4, %v431_v17, 0.0  ;;  %v476_v30 = vsel %vm466_vm5, %v431_v17, 0.0  ;;  %v2479_v34 = vpop.f32.mrb[8].mxu0 }
 0x25c   :  { %v445_v36 = vadd.f32 %v444_v23, %v443_v18  ;;  %v3208_v38 = vadd.f32 %v2479_v34, %v3153_v35  ;;  %v363_v41 = vpop.f32.mrb[9].mxu0  ;;  %v477_v46 = vadd.f32 %v476_v30, %v475_v19 }
 0x25d   :  { %v3212_v1 = vadd.f32 %v3153_v35, %v363_v41  ;;  %v2480_v13 = vpop.f32.mrb[10].mxu0 }
 0x25e   :  { %v447_v45 = vadd.f32 %v446_v43, %v445_v36  ;;  %v3216_v47 = vmul.f32 %v3208_v38, %v3208_v38  ;;  %v3219_v50 = vadd.f32 %v2480_v13, %v3153_v35  ;;  %v366_v9 = vpop.f32.mrb[11].mxu0  ;;  %v479_v60 = vadd.f32 %v478_v57, %v477_v46 }
 0x25f   :  { %v3224_v28 = vmul.f32 %v3212_v1, %v3212_v1  ;;  %v3227_v52 = vadd.f32 %v3153_v35, %v366_v9 }
 0x260   :  { %v449_v53 = vadd.f32 %v448_v11, %v447_v45  ;;  %v1062_v56 = vsel %vm466_vm5, %v3216_v47, 0.0  ;;  %v3236_v26 = vmul.f32 %v3219_v50, %v3219_v50  ;;  %v481_v23 = vadd.f32 %v480_v10, %v479_v60 }
 0x261   :  { %v1059_v12 = vsel %vm466_vm5, %v3224_v28, 0.0  ;;  %v3240_v58 = vmul.f32 %v3227_v52, %v3227_v52 }
 0x262   :  { %v450_v59 = vrot.slane %v449_v53, 4  ;;  %v1064_v61 = vsel %vm466_vm5, %v3236_v26, 0.0 }
 0x263   :  { %v1060_v62 = vsel %vm466_vm5, %v3240_v58, 0.0  ;;  %v2483_v63 = vpop.f32.mrb[12].mxu0 }
 0x264   :  { %v451_v37 = vadd.f32 %v450_v59, %v449_v53  ;;  %v1061_v6 = vadd.f32 %v1060_v62, %v1059_v12  ;;  %v379_v8 = vpop.f32.mrb[13].mxu0  ;;  %v3248_v16 = vadd.f32 %v2483_v63, %v3153_v35 }
 0x265   :  { %v3251_v17 = vadd.f32 %v3153_v35, %v379_v8  ;;  %v2484_v18 = vpop.f32.mrb[14].mxu0 }
 0x266   :  { %v452_v19 = vrot.slane %v451_v37, 2  ;;  %v1063_v30 = vadd.f32 %v1062_v56, %v1061_v6  ;;  %v382_v34 = vpop.f32.mrb[15].mxu0  ;;  %v3255_v36 = vmul.f32 %v3248_v16, %v3248_v16  ;;  %v3262_v21 = vadd.f32 %v2484_v18, %v3153_v35 }
 0x267   :  { %v3259_v41 = vmul.f32 %v3251_v17, %v3251_v17  ;;  %v3265_v43 = vadd.f32 %v3153_v35, %v382_v34  ;;  %v482_v56 = vrot.slane %v481_v23, 4 }
 0x268   :  { %v453_v13 = vadd.f32 %v452_v19, %v451_v37  ;;  %v1065_v45 = vadd.f32 %v1064_v61, %v1063_v30  ;;  %v1070_v46 = vsel %vm466_vm5, %v3255_v36, 0.0  ;;  %v3273_v57 = vmul.f32 %v3262_v21, %v3262_v21 }
 0x269   :  { %v1066_v9 = vsel %vm466_vm5, %v3259_v41, 0.0  ;;  %v3277_v12 = vmul.f32 %v3265_v43, %v3265_v43  ;;  %v483_v19 = vadd.f32 %v482_v56, %v481_v23 }
 0x26a   :  { %v454_v11 = vrot.slane %v453_v13, 1  ;;  %v1067_v53 = vadd.f32 %v1066_v9, %v1065_v45  ;;  %v1072_v62 = vsel %vm466_vm5, %v3273_v57, 0.0 }
 0x26b   :  { %v2487_v59 = vpop.f32.mrb[16].mxu0  ;;  %v1068_v63 = vsel %vm466_vm5, %v3277_v12, 0.0  ;;  %v484_v56 = vrot.slane %v483_v19, 2 }
 0x26c   :  { %v455_v60 = vadd.f32 %v454_v11, %v453_v13  ;;  %v395_v61 = vpop.f32.mrb[17].mxu0  ;;  %v1069_v8 = vadd.f32 %v1068_v63, %v1067_v53  ;;  %v3284_v10 = vadd.f32 %v2487_v59, %v3153_v35 }
 0x26d   :  { %v2488_v37 = vpop.f32.mrb[18].mxu0  ;;  %v3287_v30 = vadd.f32 %v3153_v35, %v395_v61  ;;  %v485_v55 = vadd.f32 %v484_v56, %v483_v19 }
 0x26e   :  { %v456_v6 = vmax.f32 %v455_v60, 1e-24  ;;  %v398_v18 = vpop.f32.mrb[19].mxu0  ;;  %v1071_v13 = vadd.f32 %v1070_v46, %v1069_v8  ;;  %v3293_v45 = vadd.f32 %v2488_v37, %v3153_v35  ;;  %v500_v23 = vmul.f32 %v3284_v10, %v3284_v10 }
 0x26f   :  { %v3290_v34 = vadd.f32 %v3153_v35, %v398_v18  ;;  %v498_v9 = vmul.f32 %v3287_v30, %v3287_v30  ;;  %v486_v19 = vrot.slane %v485_v55, 1 }
 0x270   :  { %2635 = vrsqrt.f32 %v456_v6  ;;  %v3297_v11 = vadd.f32 %v1072_v62, %v1071_v13  ;;  %v501_v46 = vmul.f32 %v3293_v45, %v3293_v45  ;;  %v506_v18 = vsel %vm502_vm6, %v500_v23, 0.0 }
 0x271   :  { %v499_v53 = vmul.f32 %v3290_v34, %v3290_v34  ;;  %v503_v60 = vsel %vm502_vm6, %v498_v9, 0.0 }
 0x273   :  { %v2491_v59 = vpop.f32.mrb[20].mxu0  ;;  %v504_v61 = vsel %vm502_vm6, %v499_v53, 0.0 }
 0x274   :  { %v3308_v63 = vadd.f32 %v2491_v59, %v3153_v35  ;;  %v411_v62 = vpop.f32.mrb[21].mxu0  ;;  %v505_v37 = vadd.f32 %v504_v61, %v503_v60  ;;  %v508_v60 = vsel %vm502_vm6, %v501_v46, 0.0 }
 0x275   :  { %v3311_v6 = vadd.f32 %v3153_v35, %v411_v62  ;;  %v2492_v8 = vpop.f32.mrb[22].mxu0 }
 0x276   :  { %v1092_v13 = vmul.f32 %v3308_v63, %v3308_v63  ;;  %v423_v9 = vadd.f32 %v2492_v8, %v3153_v35  ;;  %v414_v14 = vpop.f32.mrb[23].mxu0  ;;  %v507_v5 = vadd.f32 %v506_v18, %v505_v37 }
 0x277   :  { %v1090_v53 = vmul.f32 %v3311_v6, %v3311_v6  ;;  %v415_v59 = vadd.f32 %v3153_v35, %v414_v14 }
 0x278   :  { %v1097_v61 = vsel %vm502_vm6, %v1092_v13, 0.0  ;;  %v1093_v62 = vmul.f32 %v423_v9, %v423_v9  ;;  %v509_v54 = vadd.f32 %v508_v60, %v507_v5  ;;  %v487_v60 = vadd.f32 %v486_v19, %v485_v55 }
 0x279   :  { %v1094_v23 = vsel %vm502_vm6, %v1090_v53, 0.0  ;;  %v1091_v22 = vmul.f32 %v415_v59, %v415_v59 }
 0x27a   :  { %v3323_v51 = vpop.eup %2635  ;;  %v1099_v8 = vsel %vm502_vm6, %v1093_v62, 0.0  ;;  %v510_v37 = vrot.slane %v509_v54, 4 }
 0x27b   :  { %v1095_v18 = vsel %vm502_vm6, %v1091_v22, 0.0  ;;  %v458_v14 = vmul.f32 %v3323_v51, %v3159_v40  ;;  %v459_v35 = vmul.f32 %v3323_v51, %v3167_v7  ;;  %v488_v22 = vmax.f32 %v487_v60, 1e-24 }
 0x27c   :  { %v1096_v56 = vadd.f32 %v1095_v18, %v1094_v23  ;;  %v511_v46 = vadd.f32 %v510_v37, %v509_v54  ;;  %v1028_v60 = vsel %vm434_vm4, %v3224_v28, 0.0  ;;  %v1039_v28 = vsel %vm434_vm4, %v3255_v36, 0.0 }
 0x27d   :  { %v522_v5 = vpack.c.bf16 %v459_v35, %v458_v14  ;;  %2637 = vrsqrt.f32 %v488_v22  ;;  %v1031_v22 = vsel %vm434_vm4, %v3216_v47, 0.0  ;;  %v1041_v47 = vsel %vm434_vm4, %v3273_v57, 0.0 }
 0x27e   :  { %v1098_v13 = vadd.f32 %v1097_v61, %v1096_v56  ;;  %v512_v53 = vrot.slane %v511_v46, 2  ;;  %v460_v57 = vmul.f32 %v3323_v51, %v3156_v39 }
 0x27f   :  { %2497 = vmatprep.mubr.msk.bf16.mxu1 %vm434_vm4, %v522_v5 }
 0x280   :  { %v1100_v49 = vadd.f32 %v1099_v8, %v1098_v13  ;;  %v513_v62 = vadd.f32 %v512_v53, %v511_v46  ;;  %v1029_v53 = vsel %vm434_vm4, %v3240_v58, 0.0 }
 0x282   :  { %v1101_v48 = vrot.slane %v1100_v49, 4  ;;  %v514_v3 = vrot.slane %v513_v62, 1 }
 0x284   :  { %v1102_v2 = vadd.f32 %v1101_v48, %v1100_v49  ;;  %v515_v0 = vadd.f32 %v514_v3, %v513_v62  ;;  %v1030_v62 = vadd.f32 %v1029_v53, %v1028_v60 }
 0x286   :  { %v1103_v44 = vrot.slane %v1102_v2, 2  ;;  %v516_v33 = vmax.f32 %v515_v0, 1e-24 }
 0x287   :  { %v2638_v61 = vpop.eup %2637 }
 0x288   :  { %v1104_v31 = vadd.f32 %v1103_v44, %v1102_v2  ;;  %2639 = vrsqrt.f32 %v516_v33  ;;  %v490_v0 = vmul.f32 %v2638_v61, %v3159_v40  ;;  %v491_v33 = vmul.f32 %v2638_v61, %v3167_v7 }
 0x289   :  { %v492_v2 = vmul.f32 %v2638_v61, %v3156_v39  ;;  %v497_v5 = vmul.f32 %v2638_v61, %v3192_v4 }
 0x28a   :  { %v1105_v23 = vrot.slane %v1104_v31, 1  ;;  %v706_v44 = vpack.c.bf16 %v491_v33, %v490_v0  ;;  %v461_v33 = vmul.f32 %v3323_v51, %v3162_v42 }
 0x28c   :  { %v1106_v54 = vadd.f32 %v1105_v23, %v1104_v31  ;;  %v1032_v23 = vadd.f32 %v1031_v22, %v1030_v62 }
 0x28e   :  { %v1107_v37 = vmax.f32 %v1106_v54, 1e-24  ;;  %v1033_v54 = vsel %vm434_vm4, %v3236_v26, 0.0 }
 0x290   :  { %2641 = vrsqrt.f32 %v1107_v37  ;;  %v1034_v37 = vadd.f32 %v1033_v54, %v1032_v23 }
 0x292   :  { %v2640_v18 = vpop.eup %2639 }
 0x293   :  { %v519_v55 = vmul.f32 %v2640_v18, %v3290_v34  ;;  %v520_v8 = vmul.f32 %v2640_v18, %v3284_v10  ;;  %v521_v14 = vmul.f32 %v2640_v18, %v3293_v45  ;;  %v518_v48 = vmul.f32 %v2640_v18, %v3287_v30 }
 0x294   :  { %v493_v10 = vmul.f32 %v2638_v61, %v3162_v42 }
 0x295   :  { %v527_v3 = vpack.c.bf16 %v521_v14, %v520_v8  ;;  %v526_v49 = vpack.c.bf16 %v519_v55, %v518_v48  ;;  %v1037_v55 = vsel %vm434_vm4, %v3277_v12, 0.0 }
 0x296   :  { %v707_v46 = vpack.c.bf16 %v493_v10, %v492_v2  ;;  %v523_v10 = vpack.c.bf16 %v461_v33, %v460_v57 }
 0x297   :  { %532 = vrot.lane.b32.xlu1 %v527_v3, %s2804_s1  ;;  %530 = vrot.lane.b32.xlu0 %v526_v49, %s2804_s1 }
 0x29a   :  { %v2642_v31 = vpop.eup %2641 }
 0x29b   :  { %v3342_v34 = vmul.f32 %v2642_v31, %v415_v59  ;;  %v3345_v30 = vmul.f32 %v2642_v31, %v3311_v6  ;;  %v3348_v45 = vmul.f32 %v2642_v31, %v3308_v63  ;;  %v3350_v35 = vmul.f32 %v2642_v31, %v423_v9  ;;  %714 = vrot.lane.b32.xlu1 %v706_v44, %s2805_s7 }
 0x29c   :  { %v494_v59 = vmul.f32 %v2638_v61, %v3185_v20  ;;  %v495_v6 = vmul.f32 %v2638_v61, %v3195_v32  ;;  %v496_v9 = vmul.f32 %v2638_v61, %v3182_v15  ;;  %v1035_v61 = vsel %vm434_vm4, %v3259_v41, 0.0 }
 0x29d   :  { %v1117_v19 = vpack.c.bf16 %v3342_v34, %v3345_v30  ;;  %v1118_v56 = vpack.c.bf16 %v3350_v35, %v3348_v45  ;;  %v1036_v18 = vadd.f32 %v1035_v61, %v1034_v37  ;;  %v462_v31 = vmul.f32 %v3323_v51, %v3185_v20 }
 0x29e   :  { %v708_v63 = vpack.c.bf16 %v495_v6, %v494_v59  ;;  %v709_v13 = vpack.c.bf16 %v497_v5, %v496_v9  ;;  %v463_v44 = vmul.f32 %v3323_v51, %v3195_v32  ;;  %v464_v9 = vmul.f32 %v3323_v51, %v3182_v15 }
 0x29f   :  { %716 = vrot.lane.b32.xlu1 %v707_v46, %s2805_s7  ;;  %v1038_v58 = vadd.f32 %v1037_v55, %v1036_v18  ;;  %v465_v5 = vmul.f32 %v3323_v51, %v3192_v4 }
 0x2a0   :  { %v524_v46 = vpack.c.bf16 %v463_v44, %v462_v31 }
 0x2a1   :  { %v1040_v8 = vadd.f32 %v1039_v28, %v1038_v58  ;;  %v525_v53 = vpack.c.bf16 %v465_v5, %v464_v9 }
 0x2a3   :  { %718 = vrot.lane.b32.xlu1 %v708_v63, %s2805_s7  ;;  %v1042_v14 = vadd.f32 %v1041_v47, %v1040_v8 }
 0x2a5   :  { %v1043_v41 = vrot.slane %v1042_v14, 4 }
 0x2a7   :  { %720 = vrot.lane.b32.xlu1 %v709_v13, %s2805_s7  ;;  %v1044_v12 = vadd.f32 %v1043_v41, %v1042_v14 }
 0x2a9   :  { %v1045_v36 = vrot.slane %v1044_v12, 2 }
 0x2ab   :  { %v1046_v2 = vadd.f32 %v1045_v36, %v1044_v12 }
 0x2ad   :  { %v1047_v63 = vrot.slane %v1046_v2, 1 }
 0x2af   :  { %v1048_v13 = vadd.f32 %v1047_v63, %v1046_v2 }
 0x2b1   :  { %v1049_v22 = vmax.f32 %v1048_v13, 1e-24 }
 0x2b3   :  { %2643 = vrsqrt.f32 %v1049_v22 }
 0x2bd   :  { %v3407_v51 = vpop.eup %2643 }
 0x2be   :  { %v1051_v61 = vmul.f32 %v3407_v51, %v3212_v1  ;;  %v1052_v18 = vmul.f32 %v3407_v51, %v3227_v52 }
 0x2c0   :  { %v1113_v55 = vpack.c.bf16 %v1052_v18, %v1051_v61 }
 0x309   :  { %v531_v48 = vpop.permute.xlu0 %530  ;;  %v533_v3 = vpop.permute.xlu1 %532 }
 0x30a   :  { %2589 = vmatprep.subr.msk.bf16.mxu1 %vm434_vm4, %v531_v48  ;;  %v547_v26 = vsel %vm434_vm4, %v531_v48, 0  ;;  %v550_v49 = vsel %vm434_vm4, %v533_v3, 0 }
 0x30b   :  { %2494 = vmatpush3.bf16.xpose.msra.mxu1 %v547_v26 }
 0x30c   :  { %2590 = vmatprep.subr.msk.bf16.mxu1 %vm434_vm4, %v533_v3 }
 0x30d   :  { %v715_v0 = vpop.permute.xlu1 %714 }
 0x30e   :  { %v723_v59 = vsel %vm434_vm4, %v715_v0, 0 }
 0x311   :  { %v717_v6 = vpop.permute.xlu1 %716 }
 0x312   :  { %v726_v60 = vsel %vm434_vm4, %v717_v6, 0 }
 0x313   :  { %2496 = vmatpush3.bf16.xpose.msra.mxu1 %v550_v49 }
 0x314   :  { %2591 = vmatprep.subr.msk.bf16.mxu1 %vm434_vm4, %v715_v0 }
 0x315   :  { %v719_v62 = vpop.permute.xlu1 %718 }
 0x316   :  { %v729_v23 = vsel %vm434_vm4, %v719_v62, 0 }
 0x319   :  { %v721_v54 = vpop.permute.xlu1 %720 }
 0x31a   :  { %2498 = vmatmul.mubr.msk.bf16.vlgmr.msra.gmra.mrb[0].mxu1 %vm434_vm4, %v523_v10  ;;  %v732_v37 = vsel %vm434_vm4, %v721_v54, 0 }
 0x31b   :  { %2501 = vmatprep.mubr.msk.bf16.mxu1 %vm434_vm4, %v524_v46  ;;  %2506 = vmatpush3.bf16.xpose.msra.mxu1 %v723_v59 }
 0x31c   :  { %2592 = vmatprep.subr.msk.bf16.mxu1 %vm434_vm4, %v717_v6 }
 0x322   :  { %2502 = vmatmul.mubr.msk.bf16.gmra.mrb[4].mxu1 %vm434_vm4, %v525_v53 }
 0x323   :  { %2508 = vmatpush3.bf16.xpose.msra.mxu1 %v726_v60  ;;  %2513 = vmatprep.mubr.msk.bf16.mxu1 %vm434_vm4, %v531_v48 }
 0x324   :  { %2593 = vmatprep.subr.msk.bf16.mxu1 %vm434_vm4, %v719_v62 }
 0x32b   :  { %2510 = vmatpush3.bf16.xpose.msra.mxu1 %v729_v23 }
 0x32c   :  { %2594 = vmatprep.subr.msk.bf16.mxu1 %vm434_vm4, %v721_v54 }
 0x333   :  { %2512 = vmatpush3.bf16.xpose.msra.mxu1 %v732_v37 }
 0x33a   :  { %2514 = vmatmul.mubr.msk.bf16.vlgmr.msra.gmra.mrb[8].mxu1 %vm434_vm4, %v533_v3 }
 0x33b   :  { %2545 = vmatprep.mubr.msk.bf16.mxu1 %vm434_vm4, %v1113_v55 }
 0x3ed   :  { %v2499_v58 = vpop.f32.mrb[0].mxu1 }
 0x3ee   :  { %v586_v28 = vpop.f32.mrb[1].mxu1  ;;  %v624_v8 = vsel %vm617_vm7, %v2499_v58, -inf }
 0x3ef   :  { %625 = vmax.xlane.f32.xlu0 %v624_v8  ;;  %v2500_v47 = vpop.f32.mrb[2].mxu1  ;;  %v618_v14 = vsel %vm617_vm7, %v586_v28, -inf }
 0x3f0   :  { %619 = vmax.xlane.f32.xlu1 %v618_v14  ;;  %v589_v48 = vpop.f32.mrb[3].mxu1  ;;  %v627_v41 = vsel %vm617_vm7, %v2500_v47, -inf }
 0x3f1   :  { %v621_v26 = vsel %vm617_vm7, %v589_v48, -inf }
 0x3f3   :  { %622 = vmax.xlane.f32.xlu0 %v621_v26 }
 0x3f4   :  { %628 = vmax.xlane.f32.xlu1 %v627_v41 }
 0x3f5   :  { %v2503_v3 = vpop.f32.mrb[4].mxu1 }
 0x3f6   :  { %v602_v12 = vpop.f32.mrb[5].mxu1  ;;  %v636_v33 = vsel %vm617_vm7, %v2503_v3, -inf }
 0x3f7   :  { %v2504_v49 = vpop.f32.mrb[6].mxu1  ;;  %v630_v0 = vsel %vm617_vm7, %v602_v12, -inf }
 0x3f8   :  { %631 = vmax.xlane.f32.xlu0 %v630_v0  ;;  %v605_v36 = vpop.f32.mrb[7].mxu1  ;;  %v639_v31 = vsel %vm617_vm7, %v2504_v49, -inf }
 0x3f9   :  { %v633_v57 = vsel %vm617_vm7, %v605_v36, -inf }
 0x3fa   :  { %634 = vmax.xlane.f32.xlu1 %v633_v57 }
 0x3fc   :  { %637 = vmax.xlane.f32.xlu0 %v636_v33 }
 0x3fe   :  { %640 = vmax.xlane.f32.xlu1 %v639_v31 }
 0x40d   :  { %v3424_v44 = vpop.f32.mrb[8].mxu1 }
 0x40e   :  { %v3426_v2 = vpop.f32.mrb[9].mxu1 }
 0x40f   :  { %v3428_v10 = vpop.f32.mrb[10].mxu1 }
 0x410   :  { %v3430_v46 = vpop.f32.mrb[11].mxu1 }
 0x47c   :  { %v626_v59 = vpop.xlane.xlu0 %625 }
 0x47d   :  { %v644_v6 = vsub.f32 %v2499_v58, %v626_v59  ;;  %v620_v63 = vpop.xlane.xlu1 %619 }
 0x47e   :  { %v642_v9 = vsub.f32 %v586_v28, %v620_v63 }
 0x47f   :  { %v654_v5 = vmul.f32 1.442695, %v644_v6 }
 0x480   :  { %v650_v13 = vmul.f32 1.442695, %v642_v9  ;;  %v623_v53 = vpop.xlane.xlu0 %622 }
 0x481   :  { %2645 = vpow2.f32 %v654_v5  ;;  %v643_v60 = vsub.f32 %v589_v48, %v623_v53  ;;  %v629_v62 = vpop.xlane.xlu1 %628 }
 0x482   :  { %v645_v22 = vsub.f32 %v2500_v47, %v629_v62  ;;  %2647 = vpow2.f32 %v650_v13  ;;  %v833_v62 = vpack.c.bf16 %v3162_v42, %v3156_v39 }
 0x483   :  { %v652_v23 = vmul.f32 1.442695, %v643_v60 }
 0x484   :  { %v656_v54 = vmul.f32 1.442695, %v645_v22  ;;  %v832_v22 = vpack.c.bf16 %v3167_v7, %v3159_v40 }
 0x485   :  { %v632_v37 = vpop.xlane.xlu0 %631 }
 0x486   :  { %2649 = vpow2.f32 %v656_v54  ;;  %v646_v61 = vsub.f32 %v602_v12, %v632_v37  ;;  %v835_v54 = vpack.c.bf16 %v3192_v4, %v3182_v15  ;;  %v784_v37 = vsel %vm783_vm8, %v3426_v2, -inf }
 0x487   :  { %v635_v18 = vpop.xlane.xlu1 %634  ;;  %2651 = vpow2.f32 %v652_v23  ;;  %v834_v23 = vpack.c.bf16 %v3195_v32, %v3185_v20 }
 0x488   :  { %v658_v55 = vmul.f32 1.442695, %v646_v61  ;;  %v647_v8 = vsub.f32 %v605_v36, %v635_v18  ;;  %v790_v61 = vsel %vm783_vm8, %v3424_v44, -inf  ;;  %v793_v18 = vsel %vm783_vm8, %v3428_v10, -inf }
 0x489   :  { %v638_v58 = vpop.xlane.xlu0 %637 }
 0x48a   :  { %2653 = vpow2.f32 %v658_v55  ;;  %v660_v28 = vmul.f32 1.442695, %v647_v8  ;;  %v648_v14 = vsub.f32 %v2503_v3, %v638_v58 }
 0x48b   :  { %v3432_v26 = vpop.eup %2645  ;;  %v641_v41 = vpop.xlane.xlu1 %640 }
 0x48c   :  { %2655 = vpow2.f32 %v660_v28  ;;  %v662_v48 = vmul.f32 1.442695, %v648_v14  ;;  %v649_v47 = vsub.f32 %v2504_v49, %v641_v41  ;;  %v672_v0 = vsel %vm617_vm7, %v3432_v26, 0.0  ;;  %v3436_v57 = vpop.eup %2647 }
 0x48d   :  { %673 = vadd.xlane.f32.xlu0 %v672_v0  ;;  %v666_v3 = vsel %vm617_vm7, %v3436_v57, 0.0 }
 0x48e   :  { %2657 = vpow2.f32 %v662_v48  ;;  %v664_v12 = vmul.f32 1.442695, %v649_v47 }
 0x490   :  { %v3438_v33 = vpop.eup %2649  ;;  %2659 = vpow2.f32 %v664_v12 }
 0x491   :  { %667 = vadd.xlane.f32.xlu0 %v666_v3  ;;  %v675_v36 = vsel %vm617_vm7, %v3438_v33, 0.0  ;;  %v2652_v31 = vpop.eup %2651 }
 0x492   :  { %676 = vadd.xlane.f32.xlu1 %v675_v36  ;;  %v669_v6 = vsel %vm617_vm7, %v2652_v31, 0.0 }
 0x494   :  { %v3444_v49 = vpop.eup %2653 }
 0x495   :  { %v678_v59 = vsel %vm617_vm7, %v3444_v49, 0.0 }
 0x496   :  { %v3449_v63 = vpop.eup %2655  ;;  %679 = vadd.xlane.f32.xlu0 %v678_v59  ;;  %670 = vadd.xlane.f32.xlu1 %v669_v6 }
 0x497   :  { %v681_v13 = vsel %vm617_vm7, %v3449_v63, 0.0 }
 0x498   :  { %v3451_v9 = vpop.eup %2657 }
 0x499   :  { %v684_v5 = vsel %vm617_vm7, %v3451_v9, 0.0 }
 0x49a   :  { %v3457_v53 = vpop.eup %2659  ;;  %685 = vadd.xlane.f32.xlu0 %v684_v5  ;;  %682 = vadd.xlane.f32.xlu1 %v681_v13 }
 0x49b   :  { %v687_v60 = vsel %vm617_vm7, %v3457_v53, 0.0 }
 0x49e   :  { %688 = vadd.xlane.f32.xlu1 %v687_v60 }
 0x4af   :  { %858 = vrot.lane.b32.xlu1 %v833_v62, %s2806_s18 }
 0x4b0   :  { %856 = vrot.lane.b32.xlu0 %v832_v22, %s2806_s18 }
 0x4b3   :  { %860 = vrot.lane.b32.xlu1 %v834_v23, %s2806_s18 }
 0x4b4   :  { %862 = vrot.lane.b32.xlu0 %v835_v54, %s2806_s18 }
 0x4b7   :  { %1121 = vrot.lane.b32.xlu1 %v1117_v19, %s2804_s1 }
 0x4bb   :  { %1123 = vrot.lane.b32.xlu1 %v1118_v56, %s2804_s1 }
 0x4df   :  { %785 = vmax.xlane.f32.xlu1 %v784_v37 }
 0x4e3   :  { %791 = vmax.xlane.f32.xlu1 %v790_v61 }
 0x4e7   :  { %794 = vmax.xlane.f32.xlu1 %v793_v18 }
 0x51a   :  { %v674_v34 = vpop.xlane.xlu0 %673 }
 0x51e   :  { %v668_v30 = vpop.xlane.xlu0 %667 }
 0x51f   :  { %v677_v19 = vpop.xlane.xlu1 %676  ;;  %2661 = vrcp.f32 %v668_v30  ;;  %v1055_v30 = vmul.f32 %v3407_v51, %v3251_v17 }
 0x520   :  { %2663 = vrcp.f32 %v677_v19  ;;  %v1056_v19 = vmul.f32 %v3407_v51, %v3265_v43 }
 0x523   :  { %v680_v55 = vpop.xlane.xlu0 %679  ;;  %v671_v45 = vpop.xlane.xlu1 %670 }
 0x524   :  { %2665 = vrcp.f32 %v671_v45  ;;  %v1057_v45 = vmul.f32 %v3407_v51, %v3248_v16 }
 0x525   :  { %2667 = vrcp.f32 %v674_v34 }
 0x527   :  { %v686_v35 = vpop.xlane.xlu0 %685  ;;  %v683_v56 = vpop.xlane.xlu1 %682 }
 0x528   :  { %2669 = vrcp.f32 %v683_v56  ;;  %v787_v56 = vsel %vm783_vm8, %v3430_v46, -inf }
 0x529   :  { %2671 = vrcp.f32 %v680_v55  ;;  %v2662_v28 = vpop.eup %2661 }
 0x52a   :  { %v2664_v14 = vpop.eup %2663  ;;  %v698_v47 = vmul.f32 %v2662_v28, %v3436_v57 }
 0x52b   :  { %v857_v8 = vpop.permute.xlu0 %856  ;;  %v689_v58 = vpop.xlane.xlu1 %688  ;;  %v701_v36 = vmul.f32 %v2664_v14, %v3438_v33 }
 0x52c   :  { %2517 = vmatprep.subr.bf16.mxu0 %v857_v8  ;;  %2673 = vrcp.f32 %v689_v58  ;;  %v1074_v58 = vrot.slane %v3297_v11, 4 }
 0x52d   :  { %2518 = vmatpush3.bf16.msra.mxu0 %v857_v8  ;;  %2675 = vrcp.f32 %v686_v35  ;;  %v1058_v35 = vmul.f32 %v3407_v51, %v3262_v21 }
 0x52e   :  { %v2666_v41 = vpop.eup %2665  ;;  %v1075_v28 = vadd.f32 %v1074_v58, %v3297_v11 }
 0x52f   :  { %v859_v48 = vpop.permute.xlu1 %858  ;;  %v699_v0 = vmul.f32 %v2666_v41, %v2652_v31  ;;  %v2668_v12 = vpop.eup %2667  ;;  %v1116_v8 = vpack.c.bf16 %v1058_v35, %v1057_v45 }
 0x530   :  { %2519 = vmatprep.subr.bf16.mxu0 %v859_v48  ;;  %v700_v5 = vmul.f32 %v2668_v12, %v3432_v26  ;;  %v863_v60 = vpop.permute.xlu0 %862 }
 0x531   :  { %2520 = vmatpush3.bf16.msra.mxu0 %v859_v48  ;;  %v828_v3 = vpack.c.bf16 %v699_v0, %v698_v47  ;;  %v1076_v47 = vrot.slane %v1075_v28, 2 }
 0x532   :  { %v2670_v59 = vpop.eup %2669  ;;  %v829_v62 = vpack.c.bf16 %v701_v36, %v700_v5 }
 0x533   :  { %v861_v6 = vpop.permute.xlu1 %860  ;;  %836 = vxpose.xlu0.c.b16.start [1/4] (short) (narrow) %v828_v3, 32  ;;  %v2672_v13 = vpop.eup %2671  ;;  %v703_v22 = vmul.f32 %v2670_v59, %v3449_v63  ;;  %v1077_v3 = vadd.f32 %v1076_v47, %v1075_v28 }
 0x534   :  { %2521 = vmatprep.subr.bf16.mxu0 %v861_v6  ;;  %v702_v23 = vmul.f32 %v2672_v13, %v3444_v49  ;;  %v1053_v49 = vmul.f32 %v3407_v51, %v3208_v38 }
 0x535   :  { %2522 = vmatpush3.bf16.msra.mxu0 %v861_v6  ;;  %v1078_v36 = vrot.slane %v1077_v3, 1 }
 0x536   :  { %2523 = vmatprep.subr.bf16.mxu0 %v863_v60  ;;  %v2674_v57 = vpop.eup %2673  ;;  %v830_v54 = vpack.c.bf16 %v703_v22, %v702_v23 }
 0x537   :  { %v3491_v31 = vpop.permute.xlu1 %1121  ;;  %837 = vxpose.xlu0.c.b16.cont [2/4] (short) (narrow) %v829_v62, 32  ;;  %v2676_v26 = vpop.eup %2675  ;;  %v705_v37 = vmul.f32 %v2674_v57, %v3457_v53  ;;  %v1054_v53 = vmul.f32 %v3407_v51, %v3219_v50  ;;  %v1079_v6 = vadd.f32 %v1078_v36, %v1077_v3 }
 0x538   :  { %2595 = vmatprep.subr.msk.bf16.mxu1 %vm434_vm4, %v3491_v31  ;;  %v1138_v33 = vsel %vm434_vm4, %v3491_v31, 0  ;;  %v704_v63 = vmul.f32 %v2676_v26, %v3451_v9  ;;  %v1115_v9 = vpack.c.bf16 %v1056_v19, %v1055_v30 }
 0x539   :  { %2524 = vmatpush3.bf16.msra.mxu0 %v863_v60  ;;  %2542 = vmatpush3.bf16.xpose.msra.mxu1 %v1138_v33  ;;  %v1114_v55 = vpack.c.bf16 %v1054_v53, %v1053_v49 }
 0x53a   :  { %v831_v18 = vpack.c.bf16 %v705_v37, %v704_v63 }
 0x53b   :  { %v3499_v61 = vpop.permute.xlu1 %1123  ;;  %838 = vxpose.xlu0.c.b16.cont [3/4] (short) (narrow) %v830_v54, 32 }
 0x53c   :  { %2596 = vmatprep.subr.msk.bf16.mxu1 %vm434_vm4, %v3499_v61  ;;  %v1141_v34 = vsel %vm434_vm4, %v3499_v61, 0 }
 0x53f   :  { %839 = vxpose.xlu0.c.b16.end [4/4] (short) (narrow) %v831_v18, 32 }
 0x541   :  { %2544 = vmatpush3.bf16.xpose.msra.mxu1 %v1141_v34 }
 0x548   :  { %2546 = vmatmul.mubr.msk.bf16.vlgmr.msra.gmra.mrb[12].mxu1 %vm434_vm4, %v1114_v55 }
 0x549   :  { %2549 = vmatprep.mubr.msk.bf16.mxu1 %vm434_vm4, %v1115_v9 }
 0x54c   :  { %788 = vmax.xlane.f32.xlu0 %v787_v56 }
 0x550   :  { %2550 = vmatmul.mubr.msk.bf16.gmra.mrb[16].mxu1 %vm434_vm4, %v1116_v8 }
 0x56c   :  { %v786_v14 = vpop.xlane.xlu1 %785 }
 0x56d   :  { %v796_v41 = vsub.f32 %v3426_v2, %v786_v14  ;;  %v1080_v2 = vmax.f32 %v1079_v6, 1e-24 }
 0x56f   :  { %v800_v48 = vmul.f32 1.442695, %v796_v41 }
 0x570   :  { %v792_v0 = vpop.xlane.xlu1 %791 }
 0x571   :  { %2677 = vpow2.f32 %v800_v48  ;;  %v798_v51 = vsub.f32 %v3424_v44, %v792_v0 }
 0x573   :  { %v804_v12 = vmul.f32 1.442695, %v798_v51 }
 0x574   :  { %v795_v23 = vpop.xlane.xlu1 %794 }
 0x575   :  { %2679 = vpow2.f32 %v804_v12  ;;  %v799_v26 = vsub.f32 %v3428_v10, %v795_v23 }
 0x576   :  { %2681 = vrsqrt.f32 %v1080_v2 }
 0x577   :  { %v806_v63 = vmul.f32 1.442695, %v799_v26 }
 0x57b   :  { %v3527_v59 = vpop.eup %2677 }
 0x57c   :  { %v808_v5 = vsel %vm783_vm8, %v3527_v59, 0.0 }
 0x57d   :  { %809 = vadd.xlane.f32.xlu1 %v808_v5 }
 0x57f   :  { %v3531_v11 = vpop.eup %2679 }
 0x580   :  { %v814_v13 = vsel %vm783_vm8, %v3531_v11, 0.0  ;;  %v2682_v44 = vpop.eup %2681 }
 0x581   :  { %815 = vadd.xlane.f32.xlu0 %v814_v13  ;;  %v1082_v60 = vmul.f32 %v2682_v44, %v3212_v1  ;;  %v1083_v62 = vmul.f32 %v2682_v44, %v3227_v52  ;;  %v1084_v19 = vmul.f32 %v2682_v44, %v3208_v38  ;;  %v1085_v10 = vmul.f32 %v2682_v44, %v3219_v50 }
 0x582   :  { %v1087_v9 = vmul.f32 %v2682_v44, %v3265_v43  ;;  %v1088_v35 = vmul.f32 %v2682_v44, %v3248_v16  ;;  %v1089_v56 = vmul.f32 %v2682_v44, %v3262_v21 }
 0x583   :  { %v1296_v22 = vpack.c.bf16 %v1083_v62, %v1082_v60  ;;  %v1297_v55 = vpack.c.bf16 %v1085_v10, %v1084_v19 }
 0x584   :  { %v1299_v8 = vpack.c.bf16 %v1089_v56, %v1088_v35 }
 0x597   :  { %1304 = vrot.lane.b32.xlu0 %v1296_v22, %s2805_s7 }
 0x599   :  { %v844_v57 = vpop.trf.xlu0 }
 0x59a   :  { %2525 = vmatprep.mubr.msk.bf16.mxu0 %vm783_vm8, %v844_v57 }
 0x59d   :  { %v845_v33 = vpop.trf.xlu0 }
 0x59e   :  { %2526 = vmatmul.mubr.msk.bf16.vlgmr.msra.gmra.mrb[24].mxu0 %vm783_vm8, %v845_v33 }
 0x5d9   :  { %v789_v54 = vpop.xlane.xlu0 %788 }
 0x5da   :  { %v797_v37 = vsub.f32 %v3430_v46, %v789_v54  ;;  %v1086_v46 = vmul.f32 %v2682_v44, %v3251_v17 }
 0x5dc   :  { %v802_v18 = vmul.f32 1.442695, %v797_v37  ;;  %v1298_v45 = vpack.c.bf16 %v1087_v9, %v1086_v46 }
 0x5de   :  { %2683 = vpow2.f32 %v802_v18 }
 0x5df   :  { %2685 = vpow2.f32 %v806_v63 }
 0x5e8   :  { %v2684_v34 = vpop.eup %2683 }
 0x5e9   :  { %v811_v49 = vsel %vm783_vm8, %v2684_v34, 0.0  ;;  %v3543_v53 = vpop.eup %2685 }
 0x5ea   :  { %812 = vadd.xlane.f32.xlu1 %v811_v49  ;;  %v817_v30 = vsel %vm783_vm8, %v3543_v53, 0.0 }
 0x5ee   :  { %818 = vadd.xlane.f32.xlu1 %v817_v30 }
 0x5ff   :  { %1306 = vrot.lane.b32.xlu1 %v1297_v55, %s2805_s7 }
 0x603   :  { %1308 = vrot.lane.b32.xlu1 %v1298_v45, %s2805_s7 }
 0x607   :  { %1310 = vrot.lane.b32.xlu1 %v1299_v8, %s2805_s7 }
 0x60a   :  { %v810_v60 = vpop.xlane.xlu1 %809 }
 0x60b   :  { %2687 = vrcp.f32 %v810_v60 }
 0x60e   :  { %v816_v23 = vpop.xlane.xlu0 %815 }
 0x612   :  { %v1305_v37 = vpop.permute.xlu0 %1304 }
 0x615   :  { %v2688_v63 = vpop.eup %2687 }
 0x616   :  { %v824_v49 = vmul.f32 %v2688_v63, %v3527_v59 }
 0x61b   :  { %v3556_v58 = vpop.f32.mrb[12].mxu1 }
 0x61c   :  { %v1177_v28 = vpop.f32.mrb[13].mxu1  ;;  %v1214_v3 = vsel %vm617_vm7, %v3556_v58, -inf }
 0x61d   :  { %v3558_v14 = vpop.f32.mrb[14].mxu1  ;;  %v1208_v12 = vsel %vm617_vm7, %v1177_v28, -inf }
 0x61e   :  { %v3560_v41 = vpop.f32.mrb[15].mxu1  ;;  %v1217_v36 = vsel %vm617_vm7, %v3558_v14, -inf }
 0x61f   :  { %v1211_v35 = vsel %vm617_vm7, %v3560_v41, -inf }
 0x623   :  { %v3562_v48 = vpop.f32.mrb[16].mxu1 }
 0x624   :  { %v3564_v47 = vpop.f32.mrb[17].mxu1  ;;  %v1226_v56 = vsel %vm617_vm7, %v3562_v48, -inf }
 0x625   :  { %v3566_v0 = vpop.f32.mrb[18].mxu1  ;;  %v1220_v6 = vsel %vm617_vm7, %v3564_v47, -inf }
 0x626   :  { %v3568_v51 = vpop.f32.mrb[19].mxu1  ;;  %v1229_v2 = vsel %vm617_vm7, %v3566_v0, -inf }
 0x627   :  { %v1223_v5 = vsel %vm617_vm7, %v3568_v51, -inf }
 0x62b   :  { %1209 = vmax.xlane.f32.xlu1 %v1208_v12 }
 0x62f   :  { %1215 = vmax.xlane.f32.xlu1 %v1214_v3 }
 0x633   :  { %1218 = vmax.xlane.f32.xlu1 %v1217_v36 }
 0x637   :  { %1221 = vmax.xlane.f32.xlu1 %v1220_v6 }
 0x63b   :  { %1224 = vmax.xlane.f32.xlu1 %v1223_v5 }
 0x63f   :  { %1230 = vmax.xlane.f32.xlu1 %v1229_v2 }
 0x671   :  { %v2527_v13 = vpop.f32.mrb[24].mxu0 }
 0x672   :  { %v908_v44 = vpop.f32.mrb[25].mxu0 }
 0x673   :  { %v2528_v62 = vpop.f32.mrb[26].mxu0 }
 0x674   :  { %v926_v22 = vpack.c.bf16 %v2528_v62, %v2527_v13  ;;  %v911_v57 = vpop.f32.mrb[27].mxu0 }
 0x675   :  { %v925_v33 = vpack.c.bf16 %v911_v57, %v908_v44 }
 0x677   :  { %2529 = vmatprep.subr.bf16.mxu0 %v925_v33  ;;  %v813_v26 = vpop.xlane.xlu1 %812 }
 0x678   :  { %2689 = vrcp.f32 %v813_v26  ;;  %2530 = vmatpush3.bf16.msra.mxu0 %v925_v33 }
 0x679   :  { %2531 = vmatprep.subr.bf16.mxu0 %v926_v22  ;;  %2691 = vrcp.f32 %v816_v23  ;;  %v1313_v23 = vsel %vm434_vm4, %v1305_v37, 0 }
 0x67b   :  { %v819_v54 = vpop.xlane.xlu1 %818 }
 0x67c   :  { %2693 = vrcp.f32 %v819_v54  ;;  %2532 = vmatpush3.bf16.msra.mxu0 %v926_v22 }
 0x67d   :  { %2597 = vmatprep.subr.msk.bf16.mxu0 %vm434_vm4, %v1305_v37 }
 0x67f   :  { %v1307_v59 = vpop.permute.xlu1 %1306 }
 0x680   :  { %v1316_v63 = vsel %vm434_vm4, %v1307_v59, 0 }
 0x682   :  { %v2690_v18 = vpop.eup %2689 }
 0x683   :  { %v825_v30 = vmul.f32 %v2690_v18, %v2684_v34  ;;  %v2692_v19 = vpop.eup %2691  ;;  %v1309_v34 = vpop.permute.xlu1 %1308 }
 0x684   :  { %v826_v46 = vmul.f32 %v2692_v19, %v3531_v11  ;;  %v1319_v18 = vsel %vm434_vm4, %v1309_v34, 0 }
 0x685   :  { %v923_v10 = vpack.c.bf16 %v825_v30, %v824_v49 }
 0x686   :  { %v2694_v55 = vpop.eup %2693 }
 0x687   :  { %927 = vxpose.xlu0.c.b16.start [1/2] (short) (narrow) %v923_v10, 64  ;;  %v827_v9 = vmul.f32 %v2694_v55, %v3543_v53  ;;  %v1311_v8 = vpop.permute.xlu1 %1310 }
 0x688   :  { %v1322_v37 = vsel %vm434_vm4, %v1311_v8, 0 }
 0x689   :  { %v924_v45 = vpack.c.bf16 %v827_v9, %v826_v46 }
 0x68b   :  { %928 = vxpose.xlu0.c.b16.end [2/2] (short) (narrow) %v924_v45, 64 }
 0x6a0   :  { %1212 = vmax.xlane.f32.xlu0 %v1211_v35 }
 0x6a4   :  { %1227 = vmax.xlane.f32.xlu0 %v1226_v56 }
 0x6b8   :  { %v1210_v12 = vpop.xlane.xlu1 %1209 }
 0x6b9   :  { %v1232_v3 = vsub.f32 %v1177_v28, %v1210_v12 }
 0x6bb   :  { %v1240_v36 = vmul.f32 1.442695, %v1232_v3 }
 0x6bc   :  { %v1216_v6 = vpop.xlane.xlu1 %1215 }
 0x6bd   :  { %2695 = vpow2.f32 %v1240_v36  ;;  %v1234_v11 = vsub.f32 %v3556_v58, %v1216_v6 }
 0x6bf   :  { %v1244_v53 = vmul.f32 1.442695, %v1234_v11  ;;  %v1421_v11 = vpack.c.bf16 %v3227_v52, %v3212_v1 }
 0x6c0   :  { %v1219_v5 = vpop.xlane.xlu1 %1218 }
 0x6c1   :  { %2697 = vpow2.f32 %v1244_v53  ;;  %v1235_v30 = vsub.f32 %v3558_v14, %v1219_v5  ;;  %v1422_v53 = vpack.c.bf16 %v3219_v50, %v3208_v38  ;;  %v1424_v5 = vpack.c.bf16 %v3262_v21, %v3248_v16 }
 0x6c4   :  { %v1222_v2 = vpop.xlane.xlu1 %1221 }
 0x6c5   :  { %v1236_v13 = vsub.f32 %v3564_v47, %v1222_v2  ;;  %v1423_v2 = vpack.c.bf16 %v3265_v43, %v3251_v17 }
 0x6c7   :  { %v3591_v44 = vpop.eup %2695  ;;  %v1248_v60 = vmul.f32 1.442695, %v1236_v13 }
 0x6c8   :  { %v1256_v62 = vsel %vm617_vm7, %v3591_v44, 0.0  ;;  %v1225_v49 = vpop.xlane.xlu1 %1224 }
 0x6c9   :  { %2699 = vpow2.f32 %v1248_v60  ;;  %1257 = vadd.xlane.f32.xlu0 %v1256_v62  ;;  %v1237_v55 = vsub.f32 %v3568_v51, %v1225_v49 }
 0x6cb   :  { %v3595_v28 = vpop.eup %2697  ;;  %v1250_v56 = vmul.f32 1.442695, %v1237_v55 }
 0x6cc   :  { %v1262_v22 = vsel %vm617_vm7, %v3595_v28, 0.0  ;;  %v1231_v9 = vpop.xlane.xlu1 %1230 }
 0x6cd   :  { %1263 = vadd.xlane.f32.xlu0 %v1262_v22 }
 0x6d3   :  { %v3599_v58 = vpop.eup %2699 }
 0x6d4   :  { %v1268_v57 = vsel %vm617_vm7, %v3599_v58, 0.0 }
 0x6d5   :  { %1269 = vadd.xlane.f32.xlu0 %v1268_v57 }
 0x6ed   :  { %v935_v47 = vpop.trf.xlu0 }
 0x6ee   :  { %2533 = vmatprep.mubr.msk.bf16.mxu0 %vm617_vm7, %v935_v47 }
 0x6f1   :  { %v936_v33 = vpop.trf.xlu0 }
 0x6f2   :  { %2534 = vmatmul.mubr.msk.bf16.vlgmr.msra.gmra.mrb[28].mxu0 %vm617_vm7, %v936_v33 }
 0x6f3   :  { %2554 = vmatpush3.bf16.xpose.msra.mxu0 %v1313_v23 }
 0x6f4   :  { %2598 = vmatprep.subr.msk.bf16.mxu0 %vm434_vm4, %v1307_v59  ;;  %v1239_v59 = vsub.f32 %v3566_v0, %v1231_v9 }
 0x6f5   :  { %v937_v26 = vpop.trf.xlu0 }
 0x6f6   :  { %2537 = vmatprep.mubr.msk.bf16.mxu0 %vm617_vm7, %v937_v26  ;;  %v1254_v14 = vmul.f32 1.442695, %v1239_v59 }
 0x6f9   :  { %v938_v54 = vpop.trf.xlu0 }
 0x6fa   :  { %2538 = vmatmul.mubr.msk.bf16.gmra.mrb[32].mxu0 %vm617_vm7, %v938_v54 }
 0x6fb   :  { %2556 = vmatpush3.bf16.xpose.msra.mxu0 %v1316_v63  ;;  %2561 = vmatprep.mubr.msk.bf16.mxu0 %vm434_vm4, %v3491_v31  ;;  %v1246_v31 = vmul.f32 1.442695, %v1235_v30 }
 0x6fc   :  { %2599 = vmatprep.subr.msk.bf16.mxu0 %vm434_vm4, %v1309_v34 }
 0x703   :  { %2558 = vmatpush3.bf16.xpose.msra.mxu0 %v1319_v18 }
 0x704   :  { %2600 = vmatprep.subr.msk.bf16.mxu0 %vm434_vm4, %v1311_v8 }
 0x70b   :  { %2560 = vmatpush3.bf16.xpose.msra.mxu0 %v1322_v37 }
 0x712   :  { %2562 = vmatmul.mubr.msk.bf16.vlgmr.msra.gmra.mrb[36].mxu0 %vm434_vm4, %v3499_v61 }
 0x72d   :  { %v1213_v19 = vpop.xlane.xlu0 %1212 }
 0x72e   :  { %v1233_v10 = vsub.f32 %v3560_v41, %v1213_v19 }
 0x730   :  { %v1242_v46 = vmul.f32 1.442695, %v1233_v10 }
 0x731   :  { %v1228_v45 = vpop.xlane.xlu0 %1227 }
 0x732   :  { %2701 = vpow2.f32 %v1242_v46  ;;  %v1238_v35 = vsub.f32 %v3562_v48, %v1228_v45 }
 0x733   :  { %2703 = vpow2.f32 %v1246_v31 }
 0x734   :  { %v1252_v61 = vmul.f32 1.442695, %v1238_v35 }
 0x736   :  { %2705 = vpow2.f32 %v1252_v61 }
 0x737   :  { %2707 = vpow2.f32 %v1250_v56 }
 0x738   :  { %2709 = vpow2.f32 %v1254_v14 }
 0x73c   :  { %v2702_v34 = vpop.eup %2701 }
 0x73d   :  { %v1259_v41 = vsel %vm617_vm7, %v2702_v34, 0.0  ;;  %v2704_v8 = vpop.eup %2703 }
 0x73e   :  { %1260 = vadd.xlane.f32.xlu1 %v1259_v41  ;;  %v1265_v48 = vsel %vm617_vm7, %v2704_v8, 0.0 }
 0x740   :  { %v3624_v51 = vpop.eup %2705 }
 0x741   :  { %v1274_v12 = vsel %vm617_vm7, %v3624_v51, 0.0  ;;  %v2708_v3 = vpop.eup %2707 }
 0x742   :  { %1275 = vadd.xlane.f32.xlu0 %v1274_v12  ;;  %1266 = vadd.xlane.f32.xlu1 %v1265_v48  ;;  %v1271_v0 = vsel %vm617_vm7, %v2708_v3, 0.0  ;;  %v3630_v36 = vpop.eup %2709 }
 0x743   :  { %v1277_v6 = vsel %vm617_vm7, %v3630_v36, 0.0 }
 0x746   :  { %1272 = vadd.xlane.f32.xlu1 %v1271_v0 }
 0x74a   :  { %1278 = vadd.xlane.f32.xlu1 %v1277_v6 }
 0x756   :  { %v1258_v13 = vpop.xlane.xlu0 %1257 }
 0x757   :  { %2711 = vrcp.f32 %v1258_v13 }
 0x758   :  { %1445 = vrot.lane.b32.xlu0 %v1421_v11, %s2806_s18 }
 0x75a   :  { %v1264_v22 = vpop.xlane.xlu0 %1263 }
 0x75b   :  { %1447 = vrot.lane.b32.xlu1 %v1422_v53, %s2806_s18 }
 0x75c   :  { %1451 = vrot.lane.b32.xlu0 %v1424_v5, %s2806_s18 }
 0x75f   :  { %1449 = vrot.lane.b32.xlu1 %v1423_v2, %s2806_s18 }
 0x761   :  { %v2712_v19 = vpop.eup %2711 }
 0x762   :  { %v1270_v33 = vpop.xlane.xlu0 %1269  ;;  %v1288_v55 = vmul.f32 %v2712_v19, %v3591_v44 }
 0x7c5   :  { %v3646_v60 = vpop.f32.mrb[28].mxu0 }
 0x7c6   :  { %v3648_v62 = vpop.f32.mrb[29].mxu0 }
 0x7c7   :  { %v3650_v57 = vpop.f32.mrb[30].mxu0 }
 0x7c8   :  { %v3652_v47 = vpop.f32.mrb[31].mxu0 }
 0x7cb   :  { %v1261_v23 = vpop.xlane.xlu1 %1260 }
 0x7cc   :  { %2713 = vrcp.f32 %v1261_v23 }
 0x7cd   :  { %v3654_v26 = vpop.f32.mrb[32].mxu0  ;;  %2715 = vrcp.f32 %v1264_v22 }
 0x7ce   :  { %v3656_v54 = vpop.f32.mrb[33].mxu0 }
 0x7cf   :  { %v3658_v63 = vpop.f32.mrb[34].mxu0  ;;  %v1276_v18 = vpop.xlane.xlu0 %1275 }
 0x7d0   :  { %v1267_v37 = vpop.xlane.xlu1 %1266  ;;  %v3660_v49 = vpop.f32.mrb[35].mxu0 }
 0x7d1   :  { %2717 = vrcp.f32 %v1267_v37 }
 0x7d2   :  { %2719 = vrcp.f32 %v1270_v33 }
 0x7d3   :  { %v1446_v30 = vpop.permute.xlu0 %1445 }
 0x7d4   :  { %v1273_v10 = vpop.xlane.xlu1 %1272  ;;  %2565 = vmatprep.subr.bf16.mxu1 %v1446_v30 }
 0x7d5   :  { %2721 = vrcp.f32 %v1273_v10  ;;  %2566 = vmatpush3.bf16.msra.mxu1 %v1446_v30 }
 0x7d6   :  { %v2714_v31 = vpop.eup %2713  ;;  %2723 = vrcp.f32 %v1276_v18 }
 0x7d7   :  { %v1289_v46 = vmul.f32 %v2714_v31, %v2702_v34  ;;  %v2716_v45 = vpop.eup %2715  ;;  %v1452_v11 = vpop.permute.xlu0 %1451 }
 0x7d8   :  { %v1279_v9 = vpop.xlane.xlu1 %1278  ;;  %v1290_v61 = vmul.f32 %v2716_v45, %v3595_v28 }
 0x7d9   :  { %2725 = vrcp.f32 %v1279_v9  ;;  %v1417_v35 = vpack.c.bf16 %v1289_v46, %v1288_v55 }
 0x7db   :  { %v2718_v56 = vpop.eup %2717  ;;  %1425 = vxpose.xlu1.c.b16.start [1/4] (short) (narrow) %v1417_v35, 32 }
 0x7dc   :  { %v1448_v59 = vpop.permute.xlu1 %1447  ;;  %v1291_v14 = vmul.f32 %v2718_v56, %v2704_v8  ;;  %v2720_v41 = vpop.eup %2719 }
 0x7dd   :  { %2567 = vmatprep.subr.bf16.mxu1 %v1448_v59  ;;  %v1292_v44 = vmul.f32 %v2720_v41, %v3599_v58 }
 0x7de   :  { %2568 = vmatpush3.bf16.msra.mxu1 %v1448_v59  ;;  %v1418_v12 = vpack.c.bf16 %v1291_v14, %v1290_v61  ;;  %v2807_v14 = vmov 1  }
 0x7df   :  { %v2722_v48 = vpop.eup %2721  ;;  %2616 = vset.pattern.permute.xlu0 %v2807_v14 }
 0x7e0   :  { %1426 = vxpose.xlu1.c.b16.cont [2/4] (short) (narrow) %v1418_v12, 32  ;;  %v1450_v0 = vpop.permute.xlu1 %1449  ;;  %v1293_v34 = vmul.f32 %v2722_v48, %v2708_v3  ;;  %v2724_v6 = vpop.eup %2723 }
 0x7e1   :  { %2569 = vmatprep.subr.bf16.mxu1 %v1450_v0  ;;  %v1294_v28 = vmul.f32 %v2724_v6, %v3624_v51 }
 0x7e2   :  { %2570 = vmatpush3.bf16.msra.mxu1 %v1450_v0  ;;  %v1419_v53 = vpack.c.bf16 %v1293_v34, %v1292_v44 }
 0x7e3   :  { %v2726_v5 = vpop.eup %2725  ;;  %2571 = vmatprep.subr.bf16.mxu1 %v1452_v11 }
 0x7e4   :  { %1427 = vxpose.xlu1.c.b16.cont [3/4] (short) (narrow) %v1419_v53, 32  ;;  %v1295_v8 = vmul.f32 %v2726_v5, %v3630_v36 }
 0x7e5   :  { %v2563_v2 = vpop.f32.mrb[36].mxu0 }
 0x7e6   :  { %v1358_v13 = vpop.f32.mrb[37].mxu0  ;;  %2572 = vmatpush3.bf16.msra.mxu1 %v1452_v11  ;;  %v1379_v22 = vsel %vm783_vm8, %v2563_v2, -inf  ;;  %v1420_v33 = vpack.c.bf16 %v1295_v8, %v1294_v28 }
 0x7e7   :  { %v2564_v58 = vpop.f32.mrb[38].mxu0  ;;  %1380 = vmax.xlane.f32.xlu0 %v1379_v22  ;;  %v1373_v23 = vsel %vm783_vm8, %v1358_v13, -inf  ;;  %v3737_v22 = vld [vmem:[%s4125_s8 + $0x20] sm:$0xff] }
 0x7e8   :  { %v3668_v3 = vpop.f32.mrb[39].mxu0  ;;  %1428 = vxpose.xlu1.c.b16.end [4/4] (short) (narrow) %v1420_v33, 32  ;;  %v1382_v36 = vsel %vm783_vm8, %v2564_v58, -inf }
 0x7e9   :  { %v1376_v51 = vsel %vm783_vm8, %v3668_v3, -inf }
 0x7eb   :  { %1374 = vmax.xlane.f32.xlu0 %v1373_v23 }
 0x7ec   :  { %1675 = vrot.lane.b32.xlu1 %v3167_v7, %s2806_s18 }
 0x7ef   :  { %1377 = vmax.xlane.f32.xlu0 %v1376_v51 }
 0x7f0   :  { %1677 = vrot.lane.b32.xlu1 %v3156_v39, %s2806_s18 }
 0x7f3   :  { %1383 = vmax.xlane.f32.xlu0 %v1382_v36 }
 0x7f4   :  { %1681 = vrot.lane.b32.xlu1 %v3185_v20, %s2806_s18 }
 0x7f8   :  { %1685 = vrot.lane.b32.xlu1 %v3182_v15, %s2806_s18 }
 0x7fc   :  { %1689 = vrot.lane.b32.xlu1 %v3212_v1, %s2806_s18 }
 0x800   :  { %1693 = vrot.lane.b32.xlu1 %v3208_v38, %s2806_s18 }
 0x804   :  { %1697 = vrot.lane.b32.xlu1 %v3251_v17, %s2806_s18 }
 0x808   :  { %1701 = vrot.lane.b32.xlu1 %v3248_v16, %s2806_s18 }
 0x809   :  { %1673 = vrot.lane.b32.xlu0 %v3159_v40, %s2806_s18 }
 0x80d   :  { %1679 = vrot.lane.b32.xlu0 %v3162_v42, %s2806_s18 }
 0x811   :  { %1683 = vrot.lane.b32.xlu0 %v3195_v32, %s2806_s18 }
 0x842   :  { %v1433_v39 = vpop.trf.xlu1 }
 0x843   :  { %2573 = vmatprep.mubr.msk.bf16.mxu1 %vm783_vm8, %v1433_v39  ;;  %v1768_v39 = vld [vmem:[%s4125_s8 + $0x8] sm:$0xff] }
 0x846   :  { %v1434_v7 = vpop.trf.xlu1 }
 0x847   :  { %2574 = vmatmul.mubr.msk.bf16.vlgmr.msra.gmra.mrb[20].mxu1 %vm783_vm8, %v1434_v7  ;;  %v3758_v7 = vld [vmem:[%s4125_s8 + $0x18] sm:$0xff] }
 0x85e   :  { %v1676_v10 = vpop.permute.xlu1 %1675 }
 0x862   :  { %v1678_v46 = vpop.permute.xlu1 %1677 }
 0x866   :  { %v1682_v56 = vpop.permute.xlu1 %1681 }
 0x86a   :  { %v1686_v61 = vpop.permute.xlu1 %1685 }
 0x874   :  { %v1381_v15 = vpop.xlane.xlu0 %1380 }
 0x875   :  { %v1387_v20 = vsub.f32 %v2563_v2, %v1381_v15  ;;  %v3765_v15 = vld [vmem:[%s4125_s8 + $0x28] sm:$0xff] }
 0x877   :  { %v1393_v38 = vmul.f32 1.442695, %v1387_v20  ;;  %v3770_v20 = vld [vmem:[%s4125_s8 + $0x10] sm:$0xff] }
 0x878   :  { %v1375_v1 = vpop.xlane.xlu0 %1374 }
 0x879   :  { %2727 = vpow2.f32 %v1393_v38  ;;  %v1385_v16 = vsub.f32 %v1358_v13, %v1375_v1  ;;  %v3731_v13 = vld [vmem:[%s4125_s8] sm:$0xff]  ;;  %v2810_v38 = vmov 3   ;;  %s2811_s8 = smov 1  }
 0x87b   :  { %v1389_v17 = vmul.f32 1.442695, %v1385_v16  ;;  %v4158_v16 = vmov 0  }
 0x87c   :  { %v3698_v40 = vpop.xlane.xlu0 %1377 }
 0x87d   :  { %2729 = vpow2.f32 %v1389_v17  ;;  %v1386_v33 = vsub.f32 %v3668_v3, %v3698_v40  ;;  %v2809_v3 = vmov 2  }
 0x880   :  { %v1384_v42 = vpop.xlane.xlu0 %1383 }
 0x881   :  { %v1388_v18 = vsub.f32 %v2564_v58, %v1384_v42  ;;  %v1391_v58 = vmul.f32 1.442695, %v1386_v33 }
 0x883   :  { %v3700_v37 = vpop.eup %2727  ;;  %v1395_v32 = vmul.f32 1.442695, %v1388_v18 }
 0x884   :  { %v1674_v30 = vpop.permute.xlu0 %1673  ;;  %v1403_v19 = vsel %vm783_vm8, %v3700_v37, 0.0 }
 0x885   :  { %2731 = vpow2.f32 %v1395_v32  ;;  %1404 = vadd.xlane.f32.xlu0 %v1403_v19  ;;  %1721 = vxpose.xlu1.b32.start [1/16] (narrow) %v1674_v30, 48 }
 0x886   :  { %2733 = vpow2.f32 %v1391_v58 }
 0x887   :  { %v3704_v31 = vpop.eup %2729 }
 0x888   :  { %v1397_v55 = vsel %vm783_vm8, %v3704_v31, 0.0  ;;  %v1680_v45 = vpop.permute.xlu0 %1679 }
 0x889   :  { %1398 = vadd.xlane.f32.xlu0 %v1397_v55  ;;  %1722 = vxpose.xlu1.b32.cont [2/16] (narrow) %v1676_v10, 48 }
 0x88c   :  { %v1684_v59 = vpop.permute.xlu0 %1683 }
 0x88d   :  { %1723 = vxpose.xlu1.b32.cont [3/16] (narrow) %v1678_v46, 48 }
 0x88f   :  { %v3708_v9 = vpop.eup %2731 }
 0x890   :  { %v1406_v35 = vsel %vm783_vm8, %v3708_v9, 0.0  ;;  %v3742_v23 = vpop.eup %2733 }
 0x891   :  { %1407 = vadd.xlane.f32.xlu0 %v1406_v35  ;;  %1724 = vxpose.xlu1.b32.cont [4/16] (narrow) %v1680_v45, 48  ;;  %v1400_v36 = vsel %vm783_vm8, %v3742_v23, 0.0 }
 0x895   :  { %1725 = vxpose.xlu1.b32.cont [5/16] (narrow) %v1682_v56, 48 }
 0x899   :  { %1726 = vxpose.xlu1.b32.cont [6/16] (narrow) %v1684_v59, 48 }
 0x89d   :  { %1727 = vxpose.xlu1.b32.cont [7/16] (narrow) %v1686_v61, 48 }
 0x8a7   :  { %1687 = vrot.lane.b32.xlu0 %v3192_v4, %s2806_s18 }
 0x8ab   :  { %1691 = vrot.lane.b32.xlu0 %v3227_v52, %s2806_s18  ;;  %v1690_v52 = vpop.permute.xlu1 %1689 }
 0x8af   :  { %1695 = vrot.lane.b32.xlu0 %v3219_v50, %s2806_s18  ;;  %v1694_v50 = vpop.permute.xlu1 %1693 }
 0x8b3   :  { %1699 = vrot.lane.b32.xlu0 %v3265_v43, %s2806_s18  ;;  %v1698_v44 = vpop.permute.xlu1 %1697 }
 0x8b7   :  { %1703 = vrot.lane.b32.xlu0 %v3262_v21, %s2806_s18  ;;  %v1702_v34 = vpop.permute.xlu1 %1701 }
 0x912   :  { %v3722_v41 = vpop.xlane.xlu0 %1404 }
 0x916   :  { %v3724_v12 = vpop.xlane.xlu0 %1398 }
 0x917   :  { %2735 = vrcp.f32 %v3724_v12 }
 0x91a   :  { %v2575_v11 = vpop.f32.mrb[20].mxu1 }
 0x91b   :  { %v1497_v53 = vpop.f32.mrb[21].mxu1 }
 0x91c   :  { %v2576_v5 = vpop.f32.mrb[22].mxu1 }
 0x91d   :  { %v1515_v28 = vpack.c.bf16 %v2576_v5, %v2575_v11  ;;  %v1500_v8 = vpop.f32.mrb[23].mxu1 }
 0x91e   :  { %v3726_v48 = vpop.xlane.xlu0 %1407  ;;  %v1514_v2 = vpack.c.bf16 %v1500_v8, %v1497_v53 }
 0x91f   :  { %2737 = vrcp.f32 %v3726_v48 }
 0x920   :  { %2577 = vmatprep.subr.bf16.mxu1 %v1514_v2 }
 0x921   :  { %2578 = vmatpush3.bf16.msra.mxu1 %v1514_v2  ;;  %v2736_v59 = vpop.eup %2735 }
 0x922   :  { %v1688_v4 = vpop.permute.xlu0 %1687  ;;  %2579 = vmatprep.subr.bf16.mxu1 %v1515_v28 }
 0x923   :  { %1728 = vxpose.xlu1.b32.cont [8/16] (narrow) %v1688_v4, 48 }
 0x925   :  { %2580 = vmatpush3.bf16.msra.mxu1 %v1515_v28 }
 0x926   :  { %v1692_v0 = vpop.permute.xlu0 %1691 }
 0x927   :  { %1729 = vxpose.xlu1.b32.cont [9/16] (narrow) %v1690_v52, 48  ;;  %v1413_v52 = vmul.f32 %v2736_v59, %v3704_v31 }
 0x929   :  { %v2738_v61 = vpop.eup %2737 }
 0x92a   :  { %v1696_v43 = vpop.permute.xlu0 %1695  ;;  %v1416_v12 = vmul.f32 %v2738_v61, %v3708_v9 }
 0x92b   :  { %1730 = vxpose.xlu1.b32.cont [10/16] (narrow) %v1692_v0, 48 }
 0x92e   :  { %v1700_v21 = vpop.permute.xlu0 %1699 }
 0x92f   :  { %1731 = vxpose.xlu1.b32.cont [11/16] (narrow) %v1694_v50, 48 }
 0x932   :  { %v1704_v6 = vpop.permute.xlu0 %1703 }
 0x933   :  { %1732 = vxpose.xlu1.b32.cont [12/16] (narrow) %v1696_v43, 48 }
 0x937   :  { %1733 = vxpose.xlu1.b32.cont [13/16] (narrow) %v1698_v44, 48 }
 0x93b   :  { %1734 = vxpose.xlu1.b32.cont [14/16] (narrow) %v1700_v21, 48 }
 0x93f   :  { %1735 = vxpose.xlu1.b32.cont [15/16] (narrow) %v1702_v34, 48 }
 0x943   :  { %1736 = vxpose.xlu1.b32.end [16/16] (narrow) %v1704_v6, 48  ;;  %v4159_v6 = vlaneseq }
 0x945   :  { %v1754_v11 = vand.u32 127, %v4159_v6 }
 0x947   :  { %v1759_v31 = vand.u32 15, %v1754_v11 }
 0x949   :  { %v3839_v9 = vadd.s32 4294967294, %v1759_v31 }
 0x94b   :  { %vm1786_vm9 = vcmp.ge.s32.totalorder %v3839_v9, 0 }
 0x961   :  { %1797 = vperm.xlu1 %2614, %v3731_v13  }
 0x965   :  { %1817 = vperm.xlu1 %2614, %v3737_v22  }
 0x969   :  { %2615 = vset.pattern.permute.xlu1 %v2807_v14 }
 0x987   :  { %v3744_v51 = vpop.trf.xlu1 }
 0x988   :  { %1773 = vrot.lane.b32.xlu0 %v3744_v51, %s2808_s4 }
 0x989   :  { %1401 = vadd.xlane.f32.xlu1 %v1400_v36  ;;  %v3849_v36 = vadd.s32 4294967295, %v1759_v31 }
 0x98b   :  { %v3778_v1 = vpop.trf.xlu1  ;;  %vm1850_vm10 = vcmp.ge.s32.totalorder %v3849_v36, 0 }
 0x98c   :  { %1864 = vperm.xlu0 %2616, %v1768_v39  }
 0x98f   :  { %v3781_v17 = vpop.trf.xlu1 }
 0x990   :  { %1876 = vperm.xlu0 %2616, %v3737_v22  }
 0x993   :  { %v3785_v40 = vpop.trf.xlu1 }
 0x994   :  { %2617 = vset.pattern.permute.xlu0 %v2809_v3 }
 0x995   :  { %1896 = vperm.xlu0 %2617, %v3731_v13  }
 0x997   :  { %v3788_v42 = vpop.trf.xlu1 }
 0x999   :  { %1908 = vperm.xlu0 %2617, %v3758_v7  }
 0x99a   :  { %1860 = vperm.xlu1 %2615, %v3731_v13  }
 0x99b   :  { %v3794_v18 = vpop.trf.xlu1 }
 0x99d   :  { %1916 = vperm.xlu0 %2617, %v3765_v15  }
 0x99e   :  { %1868 = vperm.xlu1 %2615, %v3770_v20  }
 0x9a1   :  { %2620 = vset.pattern.permute.xlu0 %v2810_v38 }
 0x9a2   :  { %1872 = vperm.xlu1 %2615, %v3758_v7   ;;  %1958 = vperm.xlu0 %2620, %v1768_v39  }
 0x9a6   :  { %1880 = vperm.xlu1 %2615, %v3765_v15   ;;  %1970 = vperm.xlu0 %2620, %v3737_v22  }
 0x9aa   :  { %2618 = vset.pattern.permute.xlu1 %v2809_v3  ;;  %2621 = vset.pattern.permute.xlu0 %v4158_v16 }
 0x9ab   :  { %1900 = vperm.xlu1 %2618, %v1768_v39   ;;  %1802 = vperm.xlu0 %2621, %v1768_v39  }
 0x9af   :  { %1807 = vperm.xlu0 %2621, %v3770_v20  }
 0x9b3   :  { %1812 = vperm.xlu0 %2621, %v3758_v7  }
 0x9b7   :  { %1822 = vperm.xlu0 %2621, %v3765_v15  }
 0x9bb   :  { %1775 = vrot.lane.b32.xlu0 %v3778_v1, %s2808_s4 }
 0x9bf   :  { %1779 = vrot.lane.b32.xlu0 %v3785_v40, %s2808_s4 }
 0x9c3   :  { %1783 = vrot.lane.b32.xlu0 %v3794_v18, %s2808_s4 }
 0x9c7   :  { %1839 = vrot.lane.b32.xlu0 %v3778_v1, %s2811_s8 }
 0x9cb   :  { %1843 = vrot.lane.b32.xlu0 %v3785_v40, %s2811_s8 }
 0x9cf   :  { %1847 = vrot.lane.b32.xlu0 %v3794_v18, %s2811_s8 }
 0x9d3   :  { %1933 = vrot.lane.b32.xlu0 %v3778_v1, %s2812_s26 }
 0x9d7   :  { %1937 = vrot.lane.b32.xlu0 %v3785_v40, %s2812_s26 }
 0x9db   :  { %1941 = vrot.lane.b32.xlu0 %v3794_v18, %s2812_s26 }
 0x9e0   :  { %v3812_v19 = vpop.permute.xlu1 %1797 }
 0x9e4   :  { %v3816_v55 = vpop.permute.xlu1 %1817 }
 0x9fa   :  { %v3810_v32 = vpop.permute.xlu0 %1773 }
 0xa0b   :  { %v1865_v30 = vpop.permute.xlu0 %1864 }
 0xa0f   :  { %v3814_v10 = vpop.permute.xlu0 %1876 }
 0xa14   :  { %v3818_v46 = vpop.permute.xlu0 %1896 }
 0xa16   :  { %v1402_v45 = vpop.xlane.xlu1 %1401 }
 0xa17   :  { %2739 = vrcp.f32 %v1402_v45 }
 0xa18   :  { %v1909_v35 = vpop.permute.xlu0 %1908  ;;  %2741 = vrcp.f32 %v3722_v41 }
 0xa1a   :  { %v3837_v28 = vpop.permute.xlu1 %1860 }
 0xa1c   :  { %v3823_v56 = vpop.permute.xlu0 %1916 }
 0xa21   :  { %v2740_v14 = vpop.eup %2739  ;;  %v3825_v4 = vpop.permute.xlu0 %1958 }
 0xa22   :  { %v1414_v0 = vmul.f32 %v2740_v14, %v3742_v23  ;;  %v2742_v50 = vpop.eup %2741 }
 0xa23   :  { %v1415_v44 = vmul.f32 %v2742_v50, %v3700_v37  ;;  %v3842_v37 = vpop.permute.xlu1 %1868  ;;  %v3863_v50 = vadd.s32 1, %v1759_v31 }
 0xa24   :  { %v1512_v48 = vpack.c.bf16 %v1414_v0, %v1413_v52 }
 0xa25   :  { %v3830_v43 = vpop.permute.xlu0 %1970  ;;  %v1513_v41 = vpack.c.bf16 %v1416_v12, %v1415_v44  ;;  %vm1945_vm11 = vcmp.lt.s32.totalorder %v3863_v50, 16 }
 0xa26   :  { %1516 = vxpose.xlu1.c.b16.start [1/2] (short) (narrow) %v1512_v48, 64 }
 0xa27   :  { %v1873_v39 = vpop.permute.xlu1 %1872 }
 0xa2a   :  { %v1803_v21 = vpop.permute.xlu0 %1802  ;;  %1517 = vxpose.xlu1.c.b16.end [2/2] (short) (narrow) %v1513_v41, 64 }
 0xa2e   :  { %v3833_v34 = vpop.permute.xlu0 %1807 }
 0xa32   :  { %v1813_v53 = vpop.permute.xlu0 %1812 }
 0xa36   :  { %v1823_v5 = vpop.permute.xlu0 %1822  ;;  %1904 = vperm.xlu1 %2618, %v3770_v20  }
 0xa3a   :  { %v1776_v8 = vpop.permute.xlu0 %1775  ;;  %1912 = vperm.xlu1 %2618, %v3737_v22  }
 0xa3e   :  { %v1780_v2 = vpop.permute.xlu0 %1779  ;;  %2619 = vset.pattern.permute.xlu1 %v2810_v38  ;;  %v1881_v38 = vpop.permute.xlu1 %1880 }
 0xa3f   :  { %v1792_v33 = vsel %vm1786_vm9, %v1780_v2, 0.0  ;;  %1954 = vperm.xlu1 %2619, %v3731_v13   ;;  %v1790_v13 = vsel %vm1786_vm9, %v1776_v8, 0.0 }
 0xa40   :  { %v1828_v58 = vmul.f32 %v1813_v53, %v1792_v33 }
 0xa42   :  { %v1784_v23 = vpop.permute.xlu0 %1783  ;;  %v1901_v44 = vpop.permute.xlu1 %1900 }
 0xa43   :  { %v1794_v22 = vsel %vm1786_vm9, %v1784_v23, 0.0  ;;  %1962 = vperm.xlu1 %2619, %v3770_v20   ;;  %v1826_v20 = vmul.f32 %v1803_v21, %v1790_v13 }
 0xa44   :  { %v1830_v3 = vmul.f32 %v1823_v5, %v1794_v22 }
 0xa46   :  { %v1840_v45 = vpop.permute.xlu0 %1839 }
 0xa47   :  { %1966 = vperm.xlu1 %2619, %v3758_v7   ;;  %v1854_v59 = vsel %vm1850_vm10, %v1840_v45, 0.0  ;;  %v1922_v7 = vmul.f32 %v1909_v35, %v3785_v40  ;;  %v1924_v40 = vmul.f32 %v3823_v56, %v3794_v18 }
 0xa48   :  { %v1884_v52 = vmul.f32 %v1865_v30, %v1854_v59  ;;  %v1920_v30 = vmul.f32 %v1901_v44, %v3778_v1 }
 0xa4a   :  { %v1844_v61 = vpop.permute.xlu0 %1843  ;;  %v1890_v6 = vadd.f32 %v1884_v52, %v1826_v20  ;;  %v1919_v20 = vmul.f32 %v3818_v46, %v3744_v51 }
 0xa4b   :  { %v1856_v14 = vsel %vm1850_vm10, %v1844_v61, 0.0  ;;  %1974 = vperm.xlu1 %2619, %v3765_v15  }
 0xa4c   :  { %v1886_v0 = vmul.f32 %v1873_v39, %v1856_v14  ;;  %v1926_v31 = vadd.f32 %v1920_v30, %v1890_v6 }
 0xa4e   :  { %v1892_v12 = vadd.f32 %v1886_v0, %v1828_v58  ;;  %v1848_v48 = vpop.permute.xlu0 %1847 }
 0xa4f   :  { %v1858_v41 = vsel %vm1850_vm10, %v1848_v48, 0.0  ;;  %1777 = vrot.lane.b32.xlu1 %v3781_v17, %s2808_s4 }
 0xa50   :  { %v1888_v11 = vmul.f32 %v1881_v38, %v1858_v41  ;;  %v3871_v15 = vadd.f32 %v1922_v7, %v1892_v12  ;;  %2622 = vset.pattern.permute.xlu1 %v4158_v16  ;;  %v1789_v38 = vsel %vm1786_vm9, %v3810_v32, 0.0 }
 0xa51   :  { %v1825_v61 = vmul.f32 %v3812_v19, %v1789_v38 }
 0xa52   :  { %v1894_v35 = vadd.f32 %v1888_v11, %v1830_v3  ;;  %v1934_v21 = vpop.permute.xlu0 %1933 }
 0xa53   :  { %v1948_v53 = vsel %vm1945_vm11, %v1934_v21, 0.0  ;;  %1781 = vrot.lane.b32.xlu1 %v3788_v42, %s2808_s4 }
 0xa54   :  { %v1978_v5 = vmul.f32 %v3825_v4, %v1948_v53  ;;  %v3882_v8 = vadd.f32 %v1924_v40, %v1894_v35 }
 0xa56   :  { %v3884_v2 = vadd.f32 %v1978_v5, %v1926_v31  ;;  %v1938_v44 = vpop.permute.xlu0 %1937 }
 0xa57   :  { %1837 = vrot.lane.b32.xlu1 %v3744_v51, %s2811_s8 }
 0xa58   :  { %1991 = vadd.xlane.f32.xlu0 %v3884_v2 }
 0xa5b   :  { %1841 = vrot.lane.b32.xlu1 %v3781_v17, %s2811_s8 }
 0xa5f   :  { %1845 = vrot.lane.b32.xlu1 %v3788_v42, %s2811_s8 }
 0xa63   :  { %1931 = vrot.lane.b32.xlu1 %v3744_v51, %s2812_s26  ;;  %v1942_v51 = vpop.permute.xlu0 %1941 }
 0xa67   :  { %1935 = vrot.lane.b32.xlu1 %v3781_v17, %s2812_s26 }
 0xa6b   :  { %1939 = vrot.lane.b32.xlu1 %v3788_v42, %s2812_s26 }
 0xa8c   :  { %v1524_v1 = vpop.trf.xlu1 }
 0xa8d   :  { %2581 = vmatprep.mubr.msk.bf16.mxu1 %vm617_vm7, %v1524_v1 }
 0xa90   :  { %v1525_v16 = vpop.trf.xlu1 }
 0xa91   :  { %2582 = vmatmul.mubr.msk.bf16.vlgmr.msra.gmra.mrb[24].mxu1 %vm617_vm7, %v1525_v16 }
 0xa94   :  { %v1526_v18 = vpop.trf.xlu1 }
 0xa95   :  { %2585 = vmatprep.mubr.msk.bf16.mxu1 %vm617_vm7, %v1526_v18 }
 0xa98   :  { %v1527_v56 = vpop.trf.xlu1 }
 0xa99   :  { %2586 = vmatmul.mubr.msk.bf16.gmra.mrb[28].mxu1 %vm617_vm7, %v1527_v56 }
 0xab5   :  { %v1905_v4 = vpop.permute.xlu1 %1904 }
 0xab6   :  { %v1921_v36 = vmul.f32 %v1905_v4, %v3781_v17 }
 0xab9   :  { %v1913_v33 = vpop.permute.xlu1 %1912 }
 0xaba   :  { %v1923_v56 = vmul.f32 %v1913_v33, %v3788_v42 }
 0xabe   :  { %v1955_v58 = vpop.permute.xlu1 %1954 }
 0xac2   :  { %v1963_v23 = vpop.permute.xlu1 %1962 }
 0xac6   :  { %v1967_v39 = vpop.permute.xlu1 %1966 }
 0xaca   :  { %v1975_v22 = vpop.permute.xlu1 %1974 }
 0xace   :  { %v1778_v3 = vpop.permute.xlu1 %1777 }
 0xacf   :  { %v1791_v32 = vsel %vm1786_vm9, %v1778_v3, 0.0 }
 0xad2   :  { %v1782_v45 = vpop.permute.xlu1 %1781 }
 0xad3   :  { %v1793_v46 = vsel %vm1786_vm9, %v1782_v45, 0.0 }
 0xad6   :  { %v1838_v13 = vpop.permute.xlu1 %1837 }
 0xad7   :  { %v1853_v59 = vsel %vm1850_vm10, %v1838_v13, 0.0 }
 0xad8   :  { %v1883_v14 = vmul.f32 %v3837_v28, %v1853_v59  ;;  %v1827_v28 = vmul.f32 %v3833_v34, %v1791_v32  ;;  %v1829_v34 = vmul.f32 %v3816_v55, %v1793_v46 }
 0xada   :  { %v1889_v52 = vadd.f32 %v1883_v14, %v1825_v61  ;;  %v1842_v0 = vpop.permute.xlu1 %1841 }
 0xadb   :  { %v1855_v12 = vsel %vm1850_vm10, %v1842_v0, 0.0 }
 0xadc   :  { %v1925_v7 = vadd.f32 %v1919_v20, %v1889_v52  ;;  %v1885_v41 = vmul.f32 %v3842_v37, %v1855_v12  ;;  %v1950_v37 = vsel %vm1945_vm11, %v1938_v44, 0.0 }
 0xadd   :  { %v1980_v21 = vmul.f32 %v1967_v39, %v1950_v37 }
 0xade   :  { %v1846_v48 = vpop.permute.xlu1 %1845  ;;  %v1891_v40 = vadd.f32 %v1885_v41, %v1827_v28 }
 0xadf   :  { %v1857_v19 = vsel %vm1850_vm10, %v1846_v48, 0.0  ;;  %v1986_v17 = vadd.f32 %v1980_v21, %v3871_v15  ;;  %v2039_v21 = vld [vmem:[%s4126_s9 + $0x10] sm:$0xff] }
 0xae0   :  { %v1887_v30 = vmul.f32 %v3814_v10, %v1857_v19  ;;  %v1927_v16 = vadd.f32 %v1921_v36, %v1891_v40  ;;  %v1952_v10 = vsel %vm1945_vm11, %v1942_v51, 0.0  ;;  %v2038_v36 = vld [vmem:[%s4126_s9 + $0x8] sm:$0xff] }
 0xae1   :  { %v1982_v4 = vmul.f32 %v1975_v22, %v1952_v10  ;;  %v2100_v10 = vld [vmem:[%s4127_s10 + $0x18] sm:$0xff] }
 0xae2   :  { %v1932_v6 = vpop.permute.xlu1 %1931  ;;  %v1893_v1 = vadd.f32 %v1887_v30, %v1829_v34  ;;  %v2037_v34 = vld [vmem:[%s4126_s9] sm:$0xff] }
 0xae3   :  { %v1947_v11 = vsel %vm1945_vm11, %v1932_v6, 0.0 }
 0xae4   :  { %v1977_v35 = vmul.f32 %v1955_v58, %v1947_v11  ;;  %v1929_v45 = vadd.f32 %v1923_v56, %v1893_v1  ;;  %v2042_v1 = vld [vmem:[%s4126_s9 + $0x28] sm:$0xff] }
 0xae5   :  { %v1992_v5 = vpop.xlane.xlu0 %1991  ;;  %v2102_v56 = vld [vmem:[%s4127_s10 + $0x28] sm:$0xff] }
 0xae6   :  { %v1983_v53 = vadd.f32 %v1977_v35, %v1925_v7  ;;  %v1936_v31 = vpop.permute.xlu1 %1935  ;;  %v2002_v58 = vmul.f32 0.0078125, %v1992_v5  ;;  %v2041_v5 = vld [vmem:[%s4126_s9 + $0x20] sm:$0xff] }
 0xae7   :  { %v1949_v9 = vsel %vm1945_vm11, %v1936_v31, 0.0  ;;  %v2099_v31 = vld [vmem:[%s4127_s10 + $0x10] sm:$0xff] }
 0xae8   :  { %v1979_v18 = vmul.f32 %v1963_v23, %v1949_v9  ;;  %1989 = vadd.xlane.f32.xlu1 %v1983_v53  ;;  %v1988_v23 = vadd.f32 %v1982_v4, %v3882_v8  ;;  %v3940_v13 = vsub.f32 %v3884_v2, %v2002_v58  ;;  %v2101_v9 = vld [vmem:[%s4127_s10 + $0x20] sm:$0xff]  ;;  %v1609_v4 = vadd.f32 %v3648_v62, %v3035_v24 }
 0xae9   :  { %v1610_v58 = vadd.f32 %v3652_v47, %v3038_v25  ;;  %v4162_v62 = vld [vmem:[#allocation7_spill] sm:$0xff]  ;;  %v4163_v47 = vld [vmem:[#allocation8_spill] sm:$0xff] }
 0xaea   :  { %v1985_v55 = vadd.f32 %v1979_v18, %v1927_v16  ;;  %v1940_v39 = vpop.permute.xlu1 %1939  ;;  %v2014_v15 = vmul.f32 %v3940_v13, %v3940_v13  ;;  %v2097_v16 = vld [vmem:[%s4127_s10] sm:$0xff]  ;;  %v2098_v18 = vld [vmem:[%s4127_s10 + $0x8] sm:$0xff]  ;;  %v1615_v25 = vadd.f32 %v3654_v26, %v4162_v62 }
 0xaeb   :  { %v1951_v3 = vsel %vm1945_vm11, %v1940_v39, 0.0  ;;  %v1612_v39 = vadd.f32 %v3650_v57, %v3044_v29  ;;  %v4165_v57 = vld [vmem:[#allocation10_spill] sm:$0xff] }
 0xaec   :  { %v1981_v38 = vmul.f32 %v3830_v43, %v1951_v3  ;;  %1995 = vadd.xlane.f32.xlu1 %v1986_v17  ;;  %1993 = vadd.xlane.f32.xlu0 %v1985_v55  ;;  %v4160_v3 = vld [vmem:[#allocation5_spill] sm:$0xff] }
 0xaee   :  { %v1987_v42 = vadd.f32 %v1981_v38, %v1929_v45  ;;  %v1613_v45 = vadd.f32 %v3656_v54, %v4160_v3  ;;  %v4161_v38 = vld [vmem:[#allocation6_spill] sm:$0xff] }
 0xaef   :  { %v1614_v24 = vadd.f32 %v3660_v49, %v4161_v38 }
 0xaf0   :  { %1999 = vadd.xlane.f32.xlu1 %v1988_v23  ;;  %1997 = vadd.xlane.f32.xlu0 %v1987_v42 }
 0xaf4   :  { %2021 = vadd.xlane.f32.xlu1 %v2014_v15  ;;  %v4168_v15 = vld [vmem:[#allocation13_spill] sm:$0xff] }
 0xb64   :  { %v3944_v33 = vpop.f32.mrb[24].mxu1 }
 0xb65   :  { %v3946_v50 = vpop.f32.mrb[25].mxu1 }
 0xb66   :  { %v3948_v22 = vpop.f32.mrb[26].mxu1 }
 0xb67   :  { %v3950_v43 = vpop.f32.mrb[27].mxu1 }
 0xb68   :  { %v1618_v54 = vadd.f32 %v3950_v43, %v4165_v57 }
 0xb6c   :  { %v3952_v59 = vpop.f32.mrb[28].mxu1 }
 0xb6d   :  { %v3954_v8 = vpop.f32.mrb[29].mxu1 }
 0xb6e   :  { %v3956_v2 = vpop.f32.mrb[30].mxu1 }
 0xb6f   :  { %v3958_v61 = vpop.f32.mrb[31].mxu1 }
 0xb75   :  { %v1990_v14 = vpop.xlane.xlu1 %1989 }
 0xb76   :  { %v2001_v20 = vmul.f32 0.0078125, %v1990_v14  ;;  %v4169_v14 = vld [vmem:[#allocation14_spill] sm:$0xff] }
 0xb78   :  { %v3960_v52 = vsub.f32 %v1983_v53, %v2001_v20  ;;  %v2040_v53 = vld [vmem:[%s4126_s9 + $0x18] sm:$0xff]  ;;  %v4170_v20 = vld [vmem:[#allocation15_spill] sm:$0xff] }
 0xb79   :  { %v1994_v0 = vpop.xlane.xlu0 %1993  ;;  %v1996_v7 = vpop.xlane.xlu1 %1995  ;;  %v1623_v43 = vadd.f32 %v3952_v59, %v4170_v20 }
 0xb7a   :  { %v2003_v12 = vmul.f32 0.0078125, %v1994_v0  ;;  %v2004_v48 = vmul.f32 0.0078125, %v1996_v7  ;;  %v2013_v44 = vmul.f32 %v3960_v52, %v3960_v52  ;;  %v4171_v0 = vld [vmem:[#allocation16_spill] sm:$0xff] }
 0xb7c   :  { %v3964_v32 = vsub.f32 %v1985_v55, %v2003_v12  ;;  %v3966_v41 = vsub.f32 %v1986_v17, %v2004_v48  ;;  %2019 = vadd.xlane.f32.xlu0 %v2013_v44  ;;  %v2229_v17 = vld [vmem:[%s4128_s11] sm:$0xff]  ;;  %v1611_v55 = vadd.f32 %v3646_v60, %v3041_v27  ;;  %v1616_v27 = vadd.f32 %v3658_v63, %v4163_v47  ;;  %v4164_v60 = vld [vmem:[#allocation9_spill] sm:$0xff] }
 0xb7d   :  { %v1998_v19 = vpop.xlane.xlu0 %1997  ;;  %v2000_v28 = vpop.xlane.xlu1 %1999  ;;  %v1617_v29 = vadd.f32 %v3946_v50, %v4164_v60  ;;  %v1621_v63 = vadd.f32 %v3954_v8, %v4168_v15  ;;  %v1622_v50 = vadd.f32 %v3958_v61, %v4169_v14 }
 0xb7e   :  { %v2005_v6 = vmul.f32 0.0078125, %v1998_v19  ;;  %v2006_v51 = vmul.f32 0.0078125, %v2000_v28  ;;  %v2015_v46 = vmul.f32 %v3964_v32, %v3964_v32  ;;  %v2016_v11 = vmul.f32 %v3966_v41, %v3966_v41 }
 0xb80   :  { %v3972_v40 = vsub.f32 %v1987_v42, %v2005_v6  ;;  %v3974_v30 = vsub.f32 %v1988_v23, %v2006_v51  ;;  %2023 = vadd.xlane.f32.xlu0 %v2015_v46  ;;  %2025 = vadd.xlane.f32.xlu1 %v2016_v11  ;;  %v4166_v23 = vld [vmem:[#allocation11_spill] sm:$0xff]  ;;  %v4167_v42 = vld [vmem:[#allocation12_spill] sm:$0xff] }
 0xb81   :  { %v1619_v49 = vadd.f32 %v3944_v33, %v4166_v23  ;;  %v1620_v26 = vadd.f32 %v3948_v22, %v4167_v42  ;;  %v1624_v33 = vadd.f32 %v3956_v2, %v4171_v0  ;;  %v2022_v7 = vpop.xlane.xlu1 %2021 }
 0xb82   :  { %v2017_v35 = vmul.f32 %v3972_v40, %v3972_v40  ;;  %v2018_v37 = vmul.f32 %v3974_v30, %v3974_v30  ;;  %v2032_v51 = vmul.f32 0.0078125, %v2022_v7 }
 0xb84   :  { %2027 = vadd.xlane.f32.xlu0 %v2017_v35  ;;  %2029 = vadd.xlane.f32.xlu1 %v2018_v37  ;;  %v2080_v35 = vadd.f32 1e-05, %v2032_v51 }
 0xb95   :  { %2050 = vperm.xlu1 %2622, %v2038_v36  }
 0xb99   :  { %2055 = vperm.xlu1 %2622, %v2039_v21  }
 0xb9a   :  { %2045 = vperm.xlu0 %2621, %v2037_v34  }
 0xb9d   :  { %2060 = vperm.xlu1 %2622, %v2040_v53  }
 0xb9e   :  { %2115 = vperm.xlu0 %2621, %v2099_v31  }
 0xba1   :  { %2065 = vperm.xlu1 %2622, %v2041_v5  }
 0xba2   :  { %2125 = vperm.xlu0 %2621, %v2101_v9  }
 0xba5   :  { %2070 = vperm.xlu1 %2622, %v2042_v1  }
 0xba9   :  { %2105 = vperm.xlu1 %2622, %v2097_v16  }
 0xbad   :  { %2110 = vperm.xlu1 %2622, %v2098_v18  }
 0xbb1   :  { %2120 = vperm.xlu1 %2622, %v2100_v10  }
 0xbb5   :  { %2130 = vperm.xlu1 %2622, %v2102_v56  }
 0xbb9   :  { %2237 = vperm.xlu1 %2622, %v2229_v17  }
 0xbc0   :  { %1625 = vxpose.xlu0.b32.start [1/16] (narrow) %v1609_v4, 48 }
 0xbc4   :  { %1626 = vxpose.xlu0.b32.cont [2/16] (narrow) %v1610_v58, 48 }
 0xbc8   :  { %1627 = vxpose.xlu0.b32.cont [3/16] (narrow) %v1611_v55, 48 }
 0xbcc   :  { %1628 = vxpose.xlu0.b32.cont [4/16] (narrow) %v1612_v39, 48 }
 0xbd0   :  { %1629 = vxpose.xlu0.b32.cont [5/16] (narrow) %v1613_v45, 48 }
 0xbd4   :  { %1630 = vxpose.xlu0.b32.cont [6/16] (narrow) %v1614_v24, 48 }
 0xbd8   :  { %1631 = vxpose.xlu0.b32.cont [7/16] (narrow) %v1615_v25, 48 }
 0xbdc   :  { %1632 = vxpose.xlu0.b32.cont [8/16] (narrow) %v1616_v27, 48 }
 0xbe0   :  { %1633 = vxpose.xlu0.b32.cont [9/16] (narrow) %v1617_v29, 48 }
 0xbe4   :  { %1634 = vxpose.xlu0.b32.cont [10/16] (narrow) %v1618_v54, 48 }
 0xbe8   :  { %1635 = vxpose.xlu0.b32.cont [11/16] (narrow) %v1619_v49, 48 }
 0xbec   :  { %1636 = vxpose.xlu0.b32.cont [12/16] (narrow) %v1620_v26, 48 }
 0xbf0   :  { %1637 = vxpose.xlu0.b32.cont [13/16] (narrow) %v1621_v63, 48 }
 0xbf4   :  { %1638 = vxpose.xlu0.b32.cont [14/16] (narrow) %v1622_v50, 48 }
 0xbf8   :  { %1639 = vxpose.xlu0.b32.cont [15/16] (narrow) %v1623_v43, 48 }
 0xbfc   :  { %1640 = vxpose.xlu0.b32.end [16/16] (narrow) %v1624_v33, 48 }
 0xc09   :  { %v2020_v12 = vpop.xlane.xlu0 %2019 }
 0xc0a   :  { %v2031_v8 = vmul.f32 0.0078125, %v2020_v12 }
 0xc0c   :  { %v2079_v61 = vadd.f32 1e-05, %v2031_v8 }
 0xc0d   :  { %v2026_v22 = vpop.xlane.xlu1 %2025  ;;  %v2024_v48 = vpop.xlane.xlu0 %2023 }
 0xc0e   :  { %v2033_v19 = vmul.f32 0.0078125, %v2024_v48  ;;  %v2034_v37 = vmul.f32 0.0078125, %v2026_v22 }
 0xc10   :  { %v2081_v6 = vadd.f32 1e-05, %v2033_v19  ;;  %v2082_v21 = vadd.f32 1e-05, %v2034_v37 }
 0xc11   :  { %v2030_v44 = vpop.xlane.xlu1 %2029  ;;  %v2028_v46 = vpop.xlane.xlu0 %2027 }
 0xc12   :  { %2743 = vrsqrt.f32 %v2081_v6  ;;  %v2035_v59 = vmul.f32 0.0078125, %v2028_v46  ;;  %v2036_v31 = vmul.f32 0.0078125, %v2030_v44 }
 0xc13   :  { %2745 = vrsqrt.f32 %v2079_v61 }
 0xc14   :  { %v2083_v36 = vadd.f32 1e-05, %v2035_v59  ;;  %2747 = vrsqrt.f32 %v2080_v35  ;;  %v2084_v18 = vadd.f32 1e-05, %v2036_v31 }
 0xc15   :  { %v2051_v28 = vpop.permute.xlu1 %2050 }
 0xc16   :  { %2749 = vrsqrt.f32 %v2083_v36  ;;  %v2074_v17 = vmul.f32 %v2051_v28, %v3940_v13 }
 0xc17   :  { %2751 = vrsqrt.f32 %v2082_v21 }
 0xc18   :  { %2753 = vrsqrt.f32 %v2084_v18 }
 0xc19   :  { %v2056_v11 = vpop.permute.xlu1 %2055  ;;  %v2046_v34 = vpop.permute.xlu0 %2045 }
 0xc1a   :  { %v2075_v5 = vmul.f32 %v2056_v11, %v3964_v32  ;;  %v2073_v1 = vmul.f32 %v2046_v34, %v3960_v52 }
 0xc1c   :  { %v2744_v9 = vpop.eup %2743 }
 0xc1d   :  { %v2061_v2 = vpop.permute.xlu1 %2060  ;;  %v2746_v10 = vpop.eup %2745  ;;  %v2093_v56 = vmul.f32 %v2744_v9, %v2075_v5 }
 0xc1e   :  { %v2116_v4 = vpop.permute.xlu0 %2115  ;;  %v2091_v58 = vmul.f32 %v2746_v10, %v2073_v1  ;;  %v2748_v3 = vpop.eup %2747  ;;  %v2076_v38 = vmul.f32 %v2061_v2, %v3966_v41 }
 0xc1f   :  { %v2135_v45 = vadd.f32 %v2116_v4, %v2093_v56  ;;  %v2092_v52 = vmul.f32 %v2748_v3, %v2074_v17  ;;  %v2234_v3 = vld [vmem:[%s4128_s11 + $0x28] sm:$0xff] }
 0xc20   :  { %v2750_v25 = vpop.eup %2749 }
 0xc21   :  { %v2066_v53 = vpop.permute.xlu1 %2065  ;;  %v2752_v60 = vpop.eup %2751  ;;  %v2147_v29 = vmin.f32 %v2135_v45, 0.0  ;;  %vm2141_vm14 = vcmp.gt.f32.partialorder %v2135_v45, 0.0 }
 0xc22   :  { %v2077_v32 = vmul.f32 %v2066_v53, %v3972_v40  ;;  %v2094_v54 = vmul.f32 %v2752_v60, %v2076_v38  ;;  %v2126_v42 = vpop.permute.xlu0 %2125  ;;  %v2754_v63 = vpop.eup %2753  ;;  %v2233_v38 = vld [vmem:[%s4128_s11 + $0x20] sm:$0xff] }
 0xc23   :  { %v2155_v15 = vmul.f32 1.442695, %v2147_v29 }
 0xc24   :  { %v2095_v13 = vmul.f32 %v2750_v25, %v2077_v32  ;;  %v2290_v32 = vld [vmem:[%s4129_s12 + $0x8] sm:$0xff] }
 0xc25   :  { %v2071_v16 = vpop.permute.xlu1 %2070 }
 0xc26   :  { %v2078_v23 = vmul.f32 %v2071_v16, %v3974_v30  ;;  %v2137_v41 = vadd.f32 %v2126_v42, %v2095_v13 }
 0xc28   :  { %v2096_v50 = vmul.f32 %v2754_v63, %v2078_v23  ;;  %v2149_v43 = vmin.f32 %v2137_v41, 0.0  ;;  %vm2143_vm0 = vcmp.gt.f32.partialorder %v2137_v41, 0.0 }
 0xc29   :  { %v2106_v55 = vpop.permute.xlu1 %2105 }
 0xc2a   :  { %v2133_v39 = vadd.f32 %v2106_v55, %v2091_v58  ;;  %v2159_v22 = vmul.f32 1.442695, %v2149_v43  ;;  %v2231_v55 = vld [vmem:[%s4128_s11 + $0x10] sm:$0xff] }
 0xc2c   :  { %v2145_v24 = vmin.f32 %v2133_v39, 0.0  ;;  %vm2139_vm12 = vcmp.gt.f32.partialorder %v2133_v39, 0.0 }
 0xc2d   :  { %v2111_v62 = vpop.permute.xlu1 %2110 }
 0xc2e   :  { %v2151_v47 = vmul.f32 1.442695, %v2145_v24  ;;  %v2134_v27 = vadd.f32 %v2111_v62, %v2092_v52  ;;  %v2292_v24 = vld [vmem:[%s4129_s12 + $0x18] sm:$0xff]  ;;  %v2289_v52 = vld [vmem:[%s4129_s12] sm:$0xff]  ;;  %v2291_v62 = vld [vmem:[%s4129_s12 + $0x10] sm:$0xff] }
 0xc30   :  { %2755 = vpow2.f32 %v2151_v47  ;;  %v2146_v57 = vmin.f32 %v2134_v27, 0.0  ;;  %vm2140_vm13 = vcmp.gt.f32.partialorder %v2134_v27, 0.0 }
 0xc31   :  { %v2121_v49 = vpop.permute.xlu1 %2120 }
 0xc32   :  { %v2153_v26 = vmul.f32 1.442695, %v2146_v57  ;;  %v2136_v40 = vadd.f32 %v2121_v49, %v2094_v54 }
 0xc34   :  { %2757 = vpow2.f32 %v2153_v26  ;;  %v2148_v14 = vmin.f32 %v2136_v40, 0.0  ;;  %vm2142_vm15 = vcmp.gt.f32.partialorder %v2136_v40, 0.0 }
 0xc35   :  { %v2131_v20 = vpop.permute.xlu1 %2130  ;;  %2759 = vpow2.f32 %v2155_v15 }
 0xc36   :  { %v2157_v0 = vmul.f32 1.442695, %v2148_v14  ;;  %v2138_v33 = vadd.f32 %v2131_v20, %v2096_v50 }
 0xc38   :  { %2761 = vpow2.f32 %v2157_v0  ;;  %v2150_v12 = vmin.f32 %v2138_v33, 0.0  ;;  %vm2144_vm1 = vcmp.gt.f32.partialorder %v2138_v33, 0.0 }
 0xc39   :  { %2763 = vpow2.f32 %v2159_v22  ;;  %v2238_v25 = vpop.permute.xlu1 %2237 }
 0xc3a   :  { %v2756_v7 = vpop.eup %2755  ;;  %v2161_v44 = vmul.f32 1.442695, %v2150_v12 }
 0xc3b   :  { %v2394_v30 = vadd.f32 -1.0, %v2756_v7 }
 0xc3c   :  { %2765 = vpow2.f32 %v2161_v44  ;;  %v2293_v44 = vld [vmem:[%s4129_s12 + $0x20] sm:$0xff] }
 0xc3d   :  { %v2169_v8 = vsel %vm2139_vm12, %v2133_v39, %v2394_v30  ;;  %v2232_v39 = vld [vmem:[%s4128_s11 + $0x18] sm:$0xff] }
 0xc3e   :  { %v2758_v48 = vpop.eup %2757 }
 0xc3f   :  { %v2395_v28 = vadd.f32 -1.0, %v2758_v48  ;;  %v2760_v6 = vpop.eup %2759  ;;  %v2294_v48 = vld [vmem:[%s4129_s12 + $0x28] sm:$0xff]  ;;  %s2813_s12 = smov [#allocation2]  }
 0xc40   :  { %v1641_v19 = vpop.trf.xlu0  ;;  %v2396_v11 = vadd.f32 -1.0, %v2760_v6  ;;  %s2342_s23 = sshll.u32 %s2813_s12, 4  ;;  %s2343_s23 = int_to_ptr.vmem [resolvable:$true] %s2342_s23 }
 0xc41   :  { %v2175_v51 = vadd.f32 %v2169_v8, %v1641_v19  ;;  %v2170_v46 = vsel %vm2140_vm13, %v2134_v27, %v2395_v28  ;;  %s2779_s24 = scalar_lea.vmem %s2343_s23, 768  ;;  %p2784_p1 = scmp.lt.s32.totalorder %s2343_s23, %s2343_s23 }
 0xc42   :  { %v2762_v59 = vpop.eup %2761  ;;  %v2171_v2 = vsel %vm2141_vm14, %v2135_v45, %v2396_v11  ;;  %v2230_v45 = vld [vmem:[%s4128_s11 + $0x8] sm:$0xff]  ;;  %p2780_p0 = scmp.ne.s32.totalorder %s2343_s23, %s2779_s24  ;;  %p2785_p2 = scmp.lt.s32.totalorder %s2779_s24, %s2779_s24 }
 0xc43   :  { %2181 = vadd.xlane.f32.xlu0 %v2175_v51  ;;  %v2397_v36 = vadd.f32 -1.0, %v2762_v59  ;;  %v2764_v21 = vpop.eup %2763 }
 0xc44   :  { %v1642_v61 = vpop.trf.xlu0  ;;  %v2398_v5 = vadd.f32 -1.0, %v2764_v21  ;;  %p2786_p3 = por %p2785_p2, %p2784_p1 }
 0xc45   :  { %v2176_v35 = vadd.f32 %v2170_v46, %v1642_v61  ;;  %v2172_v31 = vsel %vm2142_vm15, %v2136_v40, %v2397_v36 }
 0xc46   :  { %v2766_v9 = vpop.eup %2765  ;;  %v2173_v18 = vsel %vm2143_vm0, %v2137_v41, %v2398_v5  ;;  %p2787_p4 = pnand %p2786_p3, %p2780_p0 }
 0xc47   :  { %2183 = vadd.xlane.f32.xlu1 %v2176_v35  ;;  %v2399_v10 = vadd.f32 -1.0, %v2766_v9 }
 0xc48   :  { %v1643_v37 = vpop.trf.xlu0 }
 0xc49   :  { %v2177_v34 = vadd.f32 %v2171_v2, %v1643_v37  ;;  %v2174_v4 = vsel %vm2144_vm1, %v2138_v33, %v2399_v10 }
 0xc4b   :  { %2185 = vadd.xlane.f32.xlu0 %v2177_v34 }
 0xc4c   :  { %v1644_v53 = vpop.trf.xlu0 }
 0xc4d   :  { %v2178_v1 = vadd.f32 %v2172_v31, %v1644_v53 }
 0xc4f   :  { %2187 = vadd.xlane.f32.xlu0 %v2178_v1 }
 0xc50   :  { %v1645_v16 = vpop.trf.xlu0 }
 0xc51   :  { %v2179_v56 = vadd.f32 %v2173_v18, %v1645_v16 }
 0xc53   :  { %2189 = vadd.xlane.f32.xlu1 %v2179_v56 }
 0xc54   :  { %v1646_v17 = vpop.trf.xlu0 }
 0xc55   :  { %v2180_v58 = vadd.f32 %v2174_v4, %v1646_v17 }
 0xc57   :  { %2191 = vadd.xlane.f32.xlu0 %v2180_v58 }
 0xc64   :  { %2247 = vperm.xlu1 %2622, %v2231_v55  }
 0xc68   :  { %2252 = vperm.xlu1 %2622, %v2232_v39  }
 0xc6c   :  { %2262 = vperm.xlu1 %2622, %v2234_v3  }
 0xc6d   :  { %2242 = vperm.xlu0 %2621, %v2230_v45  }
 0xc70   :  { %2302 = vperm.xlu1 %2622, %v2290_v32  }
 0xc71   :  { %2257 = vperm.xlu0 %2621, %v2233_v38  }
 0xc74   :  { %2312 = vperm.xlu1 %2622, %v2292_v24  }
 0xc75   :  { %2297 = vperm.xlu0 %2621, %v2289_v52  }
 0xc79   :  { %2307 = vperm.xlu0 %2621, %v2291_v62  }
 0xcd0   :  { %v2182_v47 = vpop.xlane.xlu0 %2181 }
 0xcd1   :  { %v2193_v27 = vmul.f32 0.0078125, %v2182_v47 }
 0xcd3   :  { %v2199_v60 = vsub.f32 %v2175_v51, %v2193_v27 }
 0xcd4   :  { %v2184_v29 = vpop.xlane.xlu1 %2183 }
 0xcd5   :  { %v2265_v13 = vmul.f32 %v2238_v25, %v2199_v60  ;;  %v2194_v57 = vmul.f32 0.0078125, %v2184_v29  ;;  %v2205_v54 = vmul.f32 %v2199_v60, %v2199_v60 }
 0xcd7   :  { %v2200_v23 = vsub.f32 %v2176_v35, %v2194_v57  ;;  %2211 = vadd.xlane.f32.xlu1 %v2205_v54 }
 0xcd8   :  { %v2186_v49 = vpop.xlane.xlu0 %2185 }
 0xcd9   :  { %v2195_v42 = vmul.f32 0.0078125, %v2186_v49  ;;  %v2206_v26 = vmul.f32 %v2200_v23, %v2200_v23 }
 0xcdb   :  { %v2201_v40 = vsub.f32 %v2177_v34, %v2195_v42  ;;  %2213 = vadd.xlane.f32.xlu0 %v2206_v26 }
 0xcdc   :  { %v2188_v15 = vpop.xlane.xlu0 %2187 }
 0xcdd   :  { %v2196_v41 = vmul.f32 0.0078125, %v2188_v15  ;;  %v2207_v63 = vmul.f32 %v2201_v40, %v2201_v40 }
 0xcdf   :  { %v4084_v14 = vsub.f32 %v2178_v1, %v2196_v41  ;;  %2215 = vadd.xlane.f32.xlu1 %v2207_v63 }
 0xce0   :  { %v2190_v50 = vpop.xlane.xlu1 %2189 }
 0xce1   :  { %v2197_v20 = vmul.f32 0.0078125, %v2190_v50  ;;  %v2208_v43 = vmul.f32 %v4084_v14, %v4084_v14 }
 0xce3   :  { %v4088_v0 = vsub.f32 %v2179_v56, %v2197_v20  ;;  %2217 = vadd.xlane.f32.xlu0 %v2208_v43 }
 0xce4   :  { %v2192_v33 = vpop.xlane.xlu0 %2191  ;;  %v2248_v19 = vpop.permute.xlu1 %2247 }
 0xce5   :  { %v2198_v7 = vmul.f32 0.0078125, %v2192_v33  ;;  %v2209_v12 = vmul.f32 %v4088_v0, %v4088_v0  ;;  %v2267_v38 = vmul.f32 %v2248_v19, %v2201_v40 }
 0xce7   :  { %v4092_v22 = vsub.f32 %v2180_v58, %v2198_v7  ;;  %2219 = vadd.xlane.f32.xlu1 %v2209_v12 }
 0xce8   :  { %v2253_v8 = vpop.permute.xlu1 %2252 }
 0xce9   :  { %v2210_v30 = vmul.f32 %v4092_v22, %v4092_v22  ;;  %v2268_v47 = vmul.f32 %v2253_v8, %v4084_v14 }
 0xceb   :  { %2221 = vadd.xlane.f32.xlu0 %v2210_v30 }
 0xcec   :  { %v2243_v28 = vpop.permute.xlu0 %2242  ;;  %v2263_v6 = vpop.permute.xlu1 %2262 }
 0xced   :  { %v2266_v4 = vmul.f32 %v2243_v28, %v2200_v23  ;;  %v2270_v42 = vmul.f32 %v2263_v6, %v4092_v22 }
 0xcf0   :  { %v2258_v51 = vpop.permute.xlu0 %2257  ;;  %v2303_v61 = vpop.permute.xlu1 %2302 }
 0xcf4   :  { %v2298_v46 = vpop.permute.xlu0 %2297  ;;  %v2313_v11 = vpop.permute.xlu1 %2312 }
 0xcf8   :  { %2322 = vperm.xlu1 %2622, %v2294_v48   ;;  %v2308_v59 = vpop.permute.xlu0 %2307 }
 0xd01   :  { %2317 = vperm.xlu0 %2621, %v2293_v44  }
 0xd64   :  { %v2212_v35 = vpop.xlane.xlu1 %2211 }
 0xd65   :  { %v2223_v37 = vmul.f32 0.0078125, %v2212_v35 }
 0xd67   :  { %v2271_v2 = vadd.f32 1e-05, %v2223_v37 }
 0xd68   :  { %v2214_v36 = vpop.xlane.xlu0 %2213 }
 0xd69   :  { %2767 = vrsqrt.f32 %v2271_v2  ;;  %v2224_v21 = vmul.f32 0.0078125, %v2214_v36 }
 0xd6b   :  { %v2272_v34 = vadd.f32 1e-05, %v2224_v21 }
 0xd6c   :  { %v2216_v53 = vpop.xlane.xlu1 %2215 }
 0xd6d   :  { %2769 = vrsqrt.f32 %v2272_v34  ;;  %v2225_v31 = vmul.f32 0.0078125, %v2216_v53 }
 0xd6f   :  { %v2273_v5 = vadd.f32 1e-05, %v2225_v31 }
 0xd70   :  { %v2218_v9 = vpop.xlane.xlu0 %2217 }
 0xd71   :  { %2771 = vrsqrt.f32 %v2273_v5  ;;  %v2226_v1 = vmul.f32 0.0078125, %v2218_v9 }
 0xd73   :  { %v2768_v16 = vpop.eup %2767  ;;  %v2274_v18 = vadd.f32 1e-05, %v2226_v1 }
 0xd74   :  { %v2283_v10 = vmul.f32 %v2768_v16, %v2265_v13  ;;  %v2220_v56 = vpop.xlane.xlu1 %2219  ;;  %v2269_v13 = vmul.f32 %v2258_v51, %v4088_v0 }
 0xd75   :  { %2773 = vrsqrt.f32 %v2274_v18  ;;  %v2227_v17 = vmul.f32 0.0078125, %v2220_v56 }
 0xd76   :  { %v2325_v58 = vadd.f32 %v2298_v46, %v2283_v10 }
 0xd77   :  { %v2770_v55 = vpop.eup %2769  ;;  %v2275_v39 = vadd.f32 1e-05, %v2227_v17 }
 0xd78   :  { %2331 = vst [vmem:[#allocation2] sm:$0xff] %v2325_v58  ;;  %v2284_v3 = vmul.f32 %v2770_v55, %v2266_v4  ;;  %v2222_v45 = vpop.xlane.xlu0 %2221  ;;  %v2323_v41 = vpop.permute.xlu1 %2322 }
 0xd79   :  { %2775 = vrsqrt.f32 %v2275_v39  ;;  %v2228_v32 = vmul.f32 0.0078125, %v2222_v45 }
 0xd7a   :  { %v2326_v24 = vadd.f32 %v2303_v61, %v2284_v3 }
 0xd7b   :  { %v2772_v52 = vpop.eup %2771  ;;  %v2276_v62 = vadd.f32 1e-05, %v2228_v32 }
 0xd7c   :  { %2332 = vst [vmem:[#allocation2 + $0x8] sm:$0xff] %v2326_v24  ;;  %v2285_v25 = vmul.f32 %v2772_v52, %v2267_v38 }
 0xd7d   :  { %2777 = vrsqrt.f32 %v2276_v62 }
 0xd7e   :  { %v2327_v27 = vadd.f32 %v2308_v59, %v2285_v25 }
 0xd7f   :  { %v2774_v60 = vpop.eup %2773 }
 0xd80   :  { %2333 = vst [vmem:[#allocation2 + $0x10] sm:$0xff] %v2327_v27  ;;  %v2286_v29 = vmul.f32 %v2774_v60, %v2268_v47  ;;  %v2318_v49 = vpop.permute.xlu0 %2317 }
 0xd82   :  { %v2328_v57 = vadd.f32 %v2313_v11, %v2286_v29 }
 0xd83   :  { %v2776_v54 = vpop.eup %2775 }
 0xd84   :  { %2334 = vst [vmem:[#allocation2 + $0x18] sm:$0xff] %v2328_v57  ;;  %v2287_v23 = vmul.f32 %v2776_v54, %v2269_v13 }
 0xd86   :  { %v2329_v26 = vadd.f32 %v2318_v49, %v2287_v23 }
 0xd87   :  { %v2778_v40 = vpop.eup %2777 }
 0xd88   :  { %v2288_v15 = vmul.f32 %v2778_v40, %v2270_v42  ;;  %2335 = vst [vmem:[#allocation2 + $0x20] sm:$0xff] %v2329_v26 }
 0xd8a   :  { %v2330_v63 = vadd.f32 %v2323_v41, %v2288_v15 }
 0xd8c   :  { %2336 = vst [vmem:[#allocation2 + $0x28] sm:$0xff] %v2330_v63 }
 0xd8d   :  { %2790 = shalt.err (!%p2787_p4)
}
 0xd8e   :  { %s2791_s3 = scalar_lea.hbm %s4130_s13, 768 }
 0xd8f   :  { %p2792_p5 = scmp.ne.s32.totalorder %s4130_s13, %s2791_s3  ;;  %p2795_p6 = scmp.lt.u32.totalorder %s2791_s3, %s4130_s13 }
 0xd91   :  { %p2797_p7 = pnand %p2795_p6, %p2792_p5 }
 0xd93   :  { %2800 = shalt.err (!%p2797_p7)
}
 0xd94   :  { %s2814_s27 = smov 128   ;;  %s2815_s28 = smov 8  }
 0xd95   :  { %2348 = dma.vmem_to_hbm [thread:$0]  %s2343_s23, 768, %s4130_s13, [#allocation3], %s2814_s27, %s2814_s27, %s2815_s28  }
 0xd96   :  { %2801 = dma.done.wait [#allocation3], 768  }
 0xd97   :  { %2802 = vsyncadd [#allocation3], 4294966528 }
 0xd98   :  { %2352 = vsyncpa [#allocation3], 1 }

</bundles_post_ra>
